<compile_context>
chip_gen: v5e
topology: v5e:2x2
jax: 0.10.0
libtpu: 0.0.40
codegen_flags: <defaults>
</compile_context>

<pallas_src>
import jax
import jax.numpy as jnp
from jax import lax
from jax.experimental import pallas as pl
from jax.experimental.pallas import tpu as pltpu

_EXPANSION = 4
_BN_EPS = 1e-5
_LANE = 128                      # channel dims padded to multiples of this
_TM = 1024                       # row tile for the flattened [M, C] kernels


def _vmem_limit_bytes():
    cap = 64 * 1024 * 1024       # conservative fallback (v7x physical VMEM)
    try:
        cap = int(pltpu.get_tpu_info().vmem_capacity_bytes)
    except Exception:
        pass
    # ~3/4 of physical (48 MiB on v7x, 96 MiB on v5e/v6e), capped at 100 MiB.
    return min((cap * 3) // 4, 100 * 1024 * 1024)


_VMEM_LIMIT = _vmem_limit_bytes()
_PARAMS_1D = pltpu.CompilerParams(
    dimension_semantics=("parallel",), vmem_limit_bytes=_VMEM_LIMIT)


# ----------------------------------------------------------------------------
# Small helpers
# ----------------------------------------------------------------------------
def _round_up(x, n):
    return (x + n - 1) // n * n


def _pad_rows(x, mp):
    m = x.shape[0]
    if mp == m:
        return x
    return jnp.pad(x, ((0, mp - m),) + ((0, 0),) * (x.ndim - 1))


def _fold_bn(gamma, beta, mean, var, cpad):
    """Fold BN running stats into per-channel scale/shift, zero-padded."""
    scale = (gamma / jnp.sqrt(var + _BN_EPS)).astype(jnp.float32)
    shift = (beta - mean * scale).astype(jnp.float32)
    c = scale.shape[0]
    scale = jnp.pad(scale, (0, cpad - c))
    shift = jnp.pad(shift, (0, cpad - c))
    return scale[None, :], shift[None, :]


# ----------------------------------------------------------------------------
# Kernels
# ----------------------------------------------------------------------------
def _stage1_sc_kernel(x_ref, s1_ref, b1_ref, w1_ref, b2_ref, wsc_ref,
                      a_ref, sc_ref):
    """a = relu(relu(bn1(x)) @ w1 + b2),  sc = relu(bn1(x)) @ wsc.

    bn2's scale is pre-folded into w1's columns; x is read from HBM once and
    relu(bn1(x)) feeds both MXU matmuls.
    """
    x = x_ref[...].astype(jnp.float32)
    pre = jnp.maximum(x * s1_ref[...] + b1_ref[...], 0.0).astype(jnp.bfloat16)
    a = jnp.dot(pre, w1_ref[...], preferred_element_type=jnp.float32)
    a_ref[...] = jnp.maximum(a + b2_ref[...], 0.0).astype(a_ref.dtype)
    sc = jnp.dot(pre, wsc_ref[...], preferred_element_type=jnp.float32)
    sc_ref[...] = sc.astype(sc_ref.dtype)


def _stage1_kernel(x_ref, s1_ref, b1_ref, w1_ref, b2_ref, a_ref):
    """a = relu(relu(bn1(x)) @ w1 + b2)   (bn2 scale folded into w1)."""
    x = x_ref[...].astype(jnp.float32)
    pre = jnp.maximum(x * s1_ref[...] + b1_ref[...], 0.0).astype(jnp.bfloat16)
    a = jnp.dot(pre, w1_ref[...], preferred_element_type=jnp.float32)
    a_ref[...] = jnp.maximum(a + b2_ref[...], 0.0).astype(a_ref.dtype)


def _shortcut_kernel(x_ref, s1_ref, b1_ref, wsc_ref, sc_ref):
    """sc = relu(bn1(x)) @ wsc   (strided path: rows pre-subsampled in glue)."""
    x = x_ref[...].astype(jnp.float32)
    pre = jnp.maximum(x * s1_ref[...] + b1_ref[...], 0.0).astype(jnp.bfloat16)
    sc = jnp.dot(pre, wsc_ref[...], preferred_element_type=jnp.float32)
    sc_ref[...] = sc.astype(sc_ref.dtype)


def _im2col_fused_kernel(p_ref, w2_ref, b3_ref, w3_ref, sc_ref, o_ref):
    """Fallback for strided 3x3 (im2col rows): conv2+bn3+relu+conv3+residual."""
    acc = jnp.dot(p_ref[...], w2_ref[...], preferred_element_type=jnp.float32)
    b = jnp.maximum(acc + b3_ref[...], 0.0).astype(jnp.bfloat16)
    y = jnp.dot(b, w3_ref[...], preferred_element_type=jnp.float32)
    o_ref[...] = (y + sc_ref[...].astype(jnp.float32)).astype(o_ref.dtype)


# ----------------------------------------------------------------------------
# pallas_call wrappers
# ----------------------------------------------------------------------------
def _stage1_fused(x_flat, s1, b1, w1, b2, wsc):
    m, cin_p = x_flat.shape
    cp = w1.shape[1]
    cexp_p = wsc.shape[1]
    mp = _round_up(m, _TM)
    x_flat = _pad_rows(x_flat, mp)
    a, sc = pl.pallas_call(
        _stage1_sc_kernel,
        out_shape=(jax.ShapeDtypeStruct((mp, cp), jnp.bfloat16),
                   jax.ShapeDtypeStruct((mp, cexp_p), jnp.bfloat16)),
        grid=(mp // _TM,),
        in_specs=[
            pl.BlockSpec((_TM, cin_p), lambda i: (i, 0)),
            pl.BlockSpec((1, cin_p), lambda i: (0, 0)),
            pl.BlockSpec((1, cin_p), lambda i: (0, 0)),
            pl.BlockSpec((cin_p, cp), lambda i: (0, 0)),
            pl.BlockSpec((1, cp), lambda i: (0, 0)),
            pl.BlockSpec((cin_p, cexp_p), lambda i: (0, 0)),
        ],
        out_specs=[pl.BlockSpec((_TM, cp), lambda i: (i, 0)),
                   pl.BlockSpec((_TM, cexp_p), lambda i: (i, 0))],
        compiler_params=_PARAMS_1D,
    )(x_flat, s1, b1, w1, b2, wsc)
    return a[:m], sc[:m]


def _stage1(x_flat, s1, b1, w1, b2):
    m, cin_p = x_flat.shape
    cp = w1.shape[1]
    mp = _round_up(m, _TM)
    x_flat = _pad_rows(x_flat, mp)
    out = pl.pallas_call(
        _stage1_kernel,
        out_shape=jax.ShapeDtypeStruct((mp, cp), jnp.bfloat16),
        grid=(mp // _TM,),
        in_specs=[
            pl.BlockSpec((_TM, cin_p), lambda i: (i, 0)),
            pl.BlockSpec((1, cin_p), lambda i: (0, 0)),
            pl.BlockSpec((1, cin_p), lambda i: (0, 0)),
            pl.BlockSpec((cin_p, cp), lambda i: (0, 0)),
            pl.BlockSpec((1, cp), lambda i: (0, 0)),
        ],
        out_specs=pl.BlockSpec((_TM, cp), lambda i: (i, 0)),
        compiler_params=_PARAMS_1D,
    )(x_flat, s1, b1, w1, b2)
    return out[:m]


def _shortcut(x_flat, s1, b1, wsc):
    m, cin_p = x_flat.shape
    cexp_p = wsc.shape[1]
    mp = _round_up(m, _TM)
    x_flat = _pad_rows(x_flat, mp)
    out = pl.pallas_call(
        _shortcut_kernel,
        out_shape=jax.ShapeDtypeStruct((mp, cexp_p), jnp.bfloat16),
        grid=(mp // _TM,),
        in_specs=[
            pl.BlockSpec((_TM, cin_p), lambda i: (i, 0)),
            pl.BlockSpec((1, cin_p), lambda i: (0, 0)),
            pl.BlockSpec((1, cin_p), lambda i: (0, 0)),
            pl.BlockSpec((cin_p, cexp_p), lambda i: (0, 0)),
        ],
        out_specs=pl.BlockSpec((_TM, cexp_p), lambda i: (i, 0)),
        compiler_params=_PARAMS_1D,
    )(x_flat, s1, b1, wsc)
    return out[:m]


def _conv3x3_fused(a_flat, w2, b3, w3, sc, *, ho, wo, wp):
    """out = conv3(relu(bn3(conv2_3x3(a)))) + sc, one (padded) image per step.

    a_flat : (n, hp*wp, cp) bf16; spatially padded (top 1, bottom 2, left/right
             1) and row-flattened so each 3x3 tap (di, dj) is a single static
             slice of length ho*wp along the leading axis at offset di*wp + dj.
             The 2 overrun columns per output row read only zero-padding and
             are dropped before conv3.  The 9 taps are accumulated in a
             register/SSA f32 value (no VMEM scratch read-modify-write).
    """
    n, hpwp, cp = a_flat.shape
    cexp_p = w3.shape[1]
    hw = ho * wo
    mext = ho * wp

    def kernel(a_ref, w2_ref, b3_ref, w3_ref, sc_ref, o_ref):
        acc = None
        for di in range(3):
            for dj in range(3):
                tap = a_ref[pl.ds(di * wp + dj, mext), :]          # (mext, cp)
                d = jnp.dot(tap, w2_ref[di, dj],
                            preferred_element_type=jnp.float32)
                acc = d if acc is None else acc + d
        # bn3 (scale folded into w2) + relu; narrow once (bf16, cp channels)
        # before conv3 so the second matmul / store are exactly ho*wo rows.
        b = jnp.maximum(acc + b3_ref[...], 0.0).astype(jnp.bfloat16)
        b = b.reshape(ho, wp, cp)[:, :wo, :].reshape(hw, cp)
        y = jnp.dot(b, w3_ref[...], preferred_element_type=jnp.float32)
        o_ref[...] = (y + sc_ref[...].astype(jnp.float32)).astype(o_ref.dtype)

    return pl.pallas_call(
        kernel,
        out_shape=jax.ShapeDtypeStruct((n, hw, cexp_p), jnp.float32),
        grid=(n,),
        in_specs=[
            pl.BlockSpec((None, hpwp, cp), lambda i: (i, 0, 0)),
            pl.BlockSpec((3, 3, cp, cp), lambda i: (0, 0, 0, 0)),
            pl.BlockSpec((1, cp), lambda i: (0, 0)),
            pl.BlockSpec((cp, cexp_p), lambda i: (0, 0)),
            pl.BlockSpec((None, hw, cexp_p), lambda i: (i, 0, 0)),
        ],
        out_specs=pl.BlockSpec((None, hw, cexp_p), lambda i: (i, 0, 0)),
        compiler_params=_PARAMS_1D,
    )(a_flat, w2, b3, w3, sc)


def _im2col_fused(patches, w2col, b3, w3, sc_flat):
    m, k = patches.shape
    cp = w2col.shape[1]
    cexp_p = w3.shape[1]
    mp = _round_up(m, _TM)
    patches = _pad_rows(patches, mp)
    sc_flat = _pad_rows(sc_flat, mp)
    out = pl.pallas_call(
        _im2col_fused_kernel,
        out_shape=jax.ShapeDtypeStruct((mp, cexp_p), jnp.float32),
        grid=(mp // _TM,),
        in_specs=[
            pl.BlockSpec((_TM, k), lambda i: (i, 0)),
            pl.BlockSpec((k, cp), lambda i: (0, 0)),
            pl.BlockSpec((1, cp), lambda i: (0, 0)),
            pl.BlockSpec((cp, cexp_p), lambda i: (0, 0)),
            pl.BlockSpec((_TM, cexp_p), lambda i: (i, 0)),
        ],
        out_specs=pl.BlockSpec((_TM, cexp_p), lambda i: (i, 0)),
        compiler_params=_PARAMS_1D,
    )(patches, w2col, b3, w3, sc_flat)
    return out[:m]


# ----------------------------------------------------------------------------
# PreActBottleneck forward (Pallas)
# ----------------------------------------------------------------------------
def preact_bottleneck_forward(x_nchw, params, *, stride=1):
    """Pallas implementation of PreActBottleneck.forward.  x: [N,Cin,H,W]."""
    n, cin, h, w = x_nchw.shape
    planes = params["w1"].shape[0]            # conv1 weight: [planes, cin, 1, 1]
    cexp = _EXPANSION * planes
    has_shortcut = (stride != 1) or (cin != cexp)

    cin_p = _round_up(cin, _LANE)
    cp = _round_up(planes, _LANE)
    cexp_p = _round_up(cexp, _LANE)

    # ---- glue: NCHW -> NHWC, channels zero-padded to lane multiples --------
    # TODO(synk): keep activations NHWC with padded channels across blocks.
    x = jnp.transpose(x_nchw, (0, 2, 3, 1))                       # [N,H,W,Cin]
    x = jnp.pad(x, ((0, 0), (0, 0), (0, 0), (0, cin_p - cin)))

    s1, b1 = _fold_bn(*params["bn1"], cin_p)
    s2, b2 = _fold_bn(*params["bn2"], cp)
    s3, b3 = _fold_bn(*params["bn3"], cp)

    # Conv weights, channel-padded; bn2/bn3 scales folded into output columns.
    w1 = jnp.pad(params["w1"][:, :, 0, 0].T,
                 ((0, cin_p - cin), (0, cp - planes)))
    w1 = (w1 * s2).astype(jnp.bfloat16)                           # [Cin_p, Cp]
    w2 = jnp.transpose(params["w2"], (2, 3, 1, 0))                # [3,3,Cin,Cout]
    w2 = jnp.pad(w2, ((0, 0), (0, 0), (0, cp - planes), (0, cp - planes)))
    w2 = (w2 * s3[0]).astype(jnp.bfloat16)                        # [3,3,Cp,Cp]
    w3 = jnp.pad(params["w3"][:, :, 0, 0].T,
                 ((0, cp - planes), (0, cexp_p - cexp))).astype(jnp.bfloat16)

    ho = (h - 1) // stride + 1
    wo = (w - 1) // stride + 1
    x_flat = x.reshape(n * h * w, cin_p)

    if has_shortcut:
        wsc = jnp.pad(params["wsc"][:, :, 0, 0].T,
                      ((0, cin_p - cin), (0, cexp_p - cexp))).astype(jnp.bfloat16)

    # ---- stage 1 (+ fused projection shortcut when stride == 1) ------------
    if has_shortcut and stride == 1:
        a_flat, sc_flat = _stage1_fused(x_flat, s1, b1, w1, b2, wsc)
        sc = sc_flat.reshape(n, ho * wo, cexp_p)
    else:
        a_flat = _stage1(x_flat, s1, b1, w1, b2)
        if has_shortcut:                       # stride != 1: subsampled rows
            x_s = x[:, ::stride, ::stride, :].reshape(n * ho * wo, cin_p)
            sc = _shortcut(x_s, s1, b1, wsc).reshape(n, ho * wo, cexp_p)
        else:                                  # identity (cin_p == cexp_p)
            sc = x.reshape(n, h * w, cin_p).astype(jnp.bfloat16)

    a = a_flat.reshape(n, h, w, cp)

    # ---- stages 2+3 fused: out = conv3(relu(bn3(conv2_3x3(a)))) + sc -------
    if stride == 1:
        # Pad top/left/right by 1 and bottom by 2 (the extra zero row keeps the
        # flattened shifted-tap slices in bounds), then flatten the rows.
        wp = w + 2
        a_pad = jnp.pad(a, ((0, 0), (1, 2), (1, 1), (0, 0)))      # bf16
        a_pad = a_pad.reshape(n, (h + 3) * wp, cp)
        out_flat = _conv3x3_fused(a_pad, w2, b3, w3, sc, ho=ho, wo=wo, wp=wp)
    else:
        # TODO(synk): move the strided 3x3 taps in-kernel (strided pl.ds);
        # strided blocks currently fall back to an im2col matmul built in glue.
        a_pad = jnp.pad(a, ((0, 0), (1, 1), (1, 1), (0, 0)))
        taps = [a_pad[:, di:di + stride * (ho - 1) + 1:stride,
                         dj:dj + stride * (wo - 1) + 1:stride, :]
                for di in range(3) for dj in range(3)]
        patches = jnp.concatenate(taps, axis=-1).reshape(n * ho * wo, 9 * cp)
        out2d = _im2col_fused(patches, w2.reshape(9 * cp, cp), b3, w3,
                              sc.reshape(n * ho * wo, cexp_p))
        out_flat = out2d.reshape(n, ho * wo, cexp_p)

    out = out_flat.reshape(n, ho, wo, cexp_p)[..., :cexp]          # drop pad
    return jnp.transpose(out, (0, 3, 1, 2))                        # back to NCHW


# ----------------------------------------------------------------------------
# Reference (correctness check only; mirrors the kernel's bf16 MXU precision)
# ----------------------------------------------------------------------------
def _ref_bn(x, gamma, beta, mean, var):
    c = x.shape[1]
    rs = lambda v: v.reshape(1, c, 1, 1)
    return (x - rs(mean)) / jnp.sqrt(rs(var) + _BN_EPS) * rs(gamma) + rs(beta)


def _ref_conv(x, w, stride, pad):
    return lax.conv_general_dilated(
        x.astype(jnp.bfloat16), w.astype(jnp.bfloat16),
        window_strides=(stride, stride),
        padding=((pad, pad), (pad, pad)),
        dimension_numbers=("NCHW", "OIHW", "NCHW"),
        preferred_element_type=jnp.float32)


def reference_forward(x, params, *, stride=1):
    cin = x.shape[1]
    planes = params["w1"].shape[0]
    out = jax.nn.relu(_ref_bn(x, *params["bn1"]))
    if stride != 1 or cin != _EXPANSION * planes:
        shortcut = _ref_conv(out, params["wsc"], stride, 0)
    else:
        shortcut = x
    out = _ref_conv(out, params["w1"], 1, 0)
    out = _ref_conv(jax.nn.relu(_ref_bn(out, *params["bn2"])), params["w2"], stride, 1)
    out = _ref_conv(jax.nn.relu(_ref_bn(out, *params["bn3"])), params["w3"], 1, 0)
    return out + shortcut


# ----------------------------------------------------------------------------
# Deterministic parameter init (shapes from the nn.Module __init__)
# ----------------------------------------------------------------------------
def make_params(key, in_planes, planes, stride):
    ks = jax.random.split(key, 16)

    def bn(k, c):
        k1, k2, k3, k4 = jax.random.split(k, 4)
        gamma = jax.random.uniform(k1, (c,), jnp.float32, 0.5, 1.5)
        beta = 0.1 * jax.random.normal(k2, (c,), jnp.float32)
        mean = 0.1 * jax.random.normal(k3, (c,), jnp.float32)
        var = jax.random.uniform(k4, (c,), jnp.float32, 0.5, 1.5)
        return (gamma, beta, mean, var)

    def conv(k, cout, cin, kh, kw):
        fan_in = cin * kh * kw
        return jax.random.normal(k, (cout, cin, kh, kw), jnp.float32) / jnp.sqrt(fan_in)

    cexp = _EXPANSION * planes
    params = {
        "bn1": bn(ks[0], in_planes),
        "bn2": bn(ks[1], planes),
        "bn3": bn(ks[2], planes),
        "w1": conv(ks[3], planes, in_planes, 1, 1),
        "w2": conv(ks[4], planes, planes, 3, 3),
        "w3": conv(ks[5], cexp, planes, 1, 1),
    }
    if stride != 1 or in_planes != cexp:
        params["wsc"] = conv(ks[6], cexp, in_planes, 1, 1)
    return params


if __name__ == "__main__":
    in_planes, planes, stride = 4, 4, 1
    N, H, W = 2, 16, 16

    key = jax.random.PRNGKey(0)
    kx, kp = jax.random.split(key)
    x = jax.random.normal(kx, (N, in_planes, H, W), jnp.float32)
    params = make_params(kp, in_planes, planes, stride)

    fwd = jax.jit(lambda xx, pp: preact_bottleneck_forward(xx, pp, stride=stride))
    out = jax.block_until_ready(fwd(x, params))

    ref = jax.block_until_ready(reference_forward(x, params, stride=stride))

    assert out.shape == (N, _EXPANSION * planes, H, W), out.shape
    # bf16 matmul operands / bf16 shortcut storage with f32 accumulation.
    assert jnp.allclose(out, ref, atol=5e-2, rtol=5e-2), (
        float(jnp.max(jnp.abs(out - ref))))
    print("KERNEL_OK")
</pallas_src>

<mosaic_0001>
module attributes {stable_mosaic.version = 11 : i64} {
  func.func @_stage1_sc_kernel(%arg0: i32, %arg1: memref<1024x128xf32, #tpu.memory_space<vmem>>, %arg2: memref<1x128xf32, #tpu.memory_space<vmem>>, %arg3: memref<1x128xf32, #tpu.memory_space<vmem>>, %arg4: memref<128x128xbf16, #tpu.memory_space<vmem>>, %arg5: memref<1x128xf32, #tpu.memory_space<vmem>>, %arg6: memref<128x128xbf16, #tpu.memory_space<vmem>>, %arg7: memref<1024x128xbf16, #tpu.memory_space<vmem>>, %arg8: memref<1024x128xbf16, #tpu.memory_space<vmem>>) attributes {dimension_semantics = [#tpu.dimension_semantics<parallel>], iteration_bounds = array<i64: 1>, scalar_prefetch = 0 : i64, scratch_operands = 0 : i64, tpu.core_type = #tpu.core_type<tc>, window_params = [{transform_indices = @transform_0, window_bounds = array<i64: 1024, 128>}, {pipeline_mode = #tpu.pipeline_mode<synchronous>, transform_indices = @transform_1, window_bounds = array<i64: 1, 128>}, {pipeline_mode = #tpu.pipeline_mode<synchronous>, transform_indices = @transform_2, window_bounds = array<i64: 1, 128>}, {pipeline_mode = #tpu.pipeline_mode<synchronous>, transform_indices = @transform_3, window_bounds = array<i64: 128, 128>}, {pipeline_mode = #tpu.pipeline_mode<synchronous>, transform_indices = @transform_4, window_bounds = array<i64: 1, 128>}, {pipeline_mode = #tpu.pipeline_mode<synchronous>, transform_indices = @transform_5, window_bounds = array<i64: 128, 128>}, {transform_indices = @transform_6, window_bounds = array<i64: 1024, 128>}, {transform_indices = @transform_7, window_bounds = array<i64: 1024, 128>}]} {
    %c0 = arith.constant 0 : index
    %c0_0 = arith.constant 0 : index
    %0 = vector.load %arg1[%c0, %c0_0] : memref<1024x128xf32, #tpu.memory_space<vmem>>, vector<1024x128xf32>
    %c0_1 = arith.constant 0 : index
    %c0_2 = arith.constant 0 : index
    %1 = vector.load %arg2[%c0_1, %c0_2] : memref<1x128xf32, #tpu.memory_space<vmem>>, vector<1x128xf32>
    %2 = vector.broadcast %1 : vector<1x128xf32> to vector<1024x128xf32>
    %3 = arith.mulf %0, %2 : vector<1024x128xf32>
    %c0_3 = arith.constant 0 : index
    %c0_4 = arith.constant 0 : index
    %4 = vector.load %arg3[%c0_3, %c0_4] : memref<1x128xf32, #tpu.memory_space<vmem>>, vector<1x128xf32>
    %5 = vector.broadcast %4 : vector<1x128xf32> to vector<1024x128xf32>
    %6 = arith.addf %3, %5 : vector<1024x128xf32>
    %cst = arith.constant 0.000000e+00 : f32
    %7 = vector.broadcast %cst : f32 to vector<1024x128xf32>
    %8 = arith.maximumf %6, %7 : vector<1024x128xf32>
    %9 = arith.truncf %8 : vector<1024x128xf32> to vector<1024x128xbf16>
    %c0_5 = arith.constant 0 : index
    %c0_6 = arith.constant 0 : index
    %10 = vector.load %arg4[%c0_5, %c0_6] : memref<128x128xbf16, #tpu.memory_space<vmem>>, vector<128x128xbf16>
    %cst_7 = arith.constant dense<0.000000e+00> : vector<1024x128xf32>
    %11 = tpu.matmul %9, %10, %cst_7 {dimension_numbers = #tpu.dot_dimension_numbers<[1], [0], [0], [1], [0, 0, 1, 1], [], []>} : vector<1024x128xbf16>, vector<128x128xbf16>, vector<1024x128xf32> -> vector<1024x128xf32>
    %c0_8 = arith.constant 0 : index
    %c0_9 = arith.constant 0 : index
    %12 = vector.load %arg5[%c0_8, %c0_9] : memref<1x128xf32, #tpu.memory_space<vmem>>, vector<1x128xf32>
    %13 = vector.broadcast %12 : vector<1x128xf32> to vector<1024x128xf32>
    %14 = arith.addf %11, %13 : vector<1024x128xf32>
    %cst_10 = arith.constant 0.000000e+00 : f32
    %15 = vector.broadcast %cst_10 : f32 to vector<1024x128xf32>
    %16 = arith.maximumf %14, %15 : vector<1024x128xf32>
    %17 = arith.truncf %16 : vector<1024x128xf32> to vector<1024x128xbf16>
    %c0_11 = arith.constant 0 : index
    %c0_12 = arith.constant 0 : index
    %18 = vector.load %arg7[%c0_11, %c0_12] : memref<1024x128xbf16, #tpu.memory_space<vmem>>, vector<1024x128xbf16>
    tpu.vector_store %arg7[%c0_11, %c0_12], %17 {strides = array<i32>} : memref<1024x128xbf16, #tpu.memory_space<vmem>>, vector<1024x128xbf16>,
    %c0_13 = arith.constant 0 : index
    %c0_14 = arith.constant 0 : index
    %19 = vector.load %arg6[%c0_13, %c0_14] : memref<128x128xbf16, #tpu.memory_space<vmem>>, vector<128x128xbf16>
    %cst_15 = arith.constant dense<0.000000e+00> : vector<1024x128xf32>
    %20 = tpu.matmul %9, %19, %cst_15 {dimension_numbers = #tpu.dot_dimension_numbers<[1], [0], [0], [1], [0, 0, 1, 1], [], []>} : vector<1024x128xbf16>, vector<128x128xbf16>, vector<1024x128xf32> -> vector<1024x128xf32>
    %21 = arith.truncf %20 : vector<1024x128xf32> to vector<1024x128xbf16>
    %c0_16 = arith.constant 0 : index
    %c0_17 = arith.constant 0 : index
    %22 = vector.load %arg8[%c0_16, %c0_17] : memref<1024x128xbf16, #tpu.memory_space<vmem>>, vector<1024x128xbf16>
    tpu.vector_store %arg8[%c0_16, %c0_17], %21 {strides = array<i32>} : memref<1024x128xbf16, #tpu.memory_space<vmem>>, vector<1024x128xbf16>,
    return
  }
  func.func @transform_0(%arg0: i32) -> (i32, i32) {
    %c0_i32 = arith.constant 0 : i32
    %c0_i32_0 = arith.constant 0 : i32
    return %arg0, %c0_i32 : i32, i32
  }
  func.func @transform_1(%arg0: i32) -> (i32, i32) {
    %c0_i32 = arith.constant 0 : i32
    %c0_i32_0 = arith.constant 0 : i32
    %c0_i32_1 = arith.constant 0 : i32
    return %c0_i32, %c0_i32_0 : i32, i32
  }
  func.func @transform_2(%arg0: i32) -> (i32, i32) {
    %c0_i32 = arith.constant 0 : i32
    %c0_i32_0 = arith.constant 0 : i32
    %c0_i32_1 = arith.constant 0 : i32
    return %c0_i32, %c0_i32_0 : i32, i32
  }
  func.func @transform_3(%arg0: i32) -> (i32, i32) {
    %c0_i32 = arith.constant 0 : i32
    %c0_i32_0 = arith.constant 0 : i32
    %c0_i32_1 = arith.constant 0 : i32
    return %c0_i32, %c0_i32_0 : i32, i32
  }
  func.func @transform_4(%arg0: i32) -> (i32, i32) {
    %c0_i32 = arith.constant 0 : i32
    %c0_i32_0 = arith.constant 0 : i32
    %c0_i32_1 = arith.constant 0 : i32
    return %c0_i32, %c0_i32_0 : i32, i32
  }
  func.func @transform_5(%arg0: i32) -> (i32, i32) {
    %c0_i32 = arith.constant 0 : i32
    %c0_i32_0 = arith.constant 0 : i32
    %c0_i32_1 = arith.constant 0 : i32
    return %c0_i32, %c0_i32_0 : i32, i32
  }
  func.func @transform_6(%arg0: i32) -> (i32, i32) {
    %c0_i32 = arith.constant 0 : i32
    %c0_i32_0 = arith.constant 0 : i32
    return %arg0, %c0_i32 : i32, i32
  }
  func.func @transform_7(%arg0: i32) -> (i32, i32) {
    %c0_i32 = arith.constant 0 : i32
    %c0_i32_0 = arith.constant 0 : i32
    return %arg0, %c0_i32 : i32, i32
  }
}

module attributes {stable_mosaic.version = 11 : i64} {
  func.func @kernel(%arg0: i32, %arg1: memref<1x342x128xbf16, #tpu.memory_space<vmem>>, %arg2: memref<3x3x128x128xbf16, #tpu.memory_space<vmem>>, %arg3: memref<1x128xf32, #tpu.memory_space<vmem>>, %arg4: memref<128x128xbf16, #tpu.memory_space<vmem>>, %arg5: memref<1x256x128xbf16, #tpu.memory_space<vmem>>, %arg6: memref<1x256x128xf32, #tpu.memory_space<vmem>>) attributes {dimension_semantics = [#tpu.dimension_semantics<parallel>], iteration_bounds = array<i64: 2>, scalar_prefetch = 0 : i64, scratch_operands = 0 : i64, tpu.core_type = #tpu.core_type<tc>, window_params = [{transform_indices = @transform_0, window_bounds = array<i64: 1, 342, 128>}, {pipeline_mode = #tpu.pipeline_mode<synchronous>, transform_indices = @transform_1, window_bounds = array<i64: 3, 3, 128, 128>}, {pipeline_mode = #tpu.pipeline_mode<synchronous>, transform_indices = @transform_2, window_bounds = array<i64: 1, 128>}, {pipeline_mode = #tpu.pipeline_mode<synchronous>, transform_indices = @transform_3, window_bounds = array<i64: 128, 128>}, {transform_indices = @transform_4, window_bounds = array<i64: 1, 256, 128>}, {transform_indices = @transform_5, window_bounds = array<i64: 1, 256, 128>}]} {
    %c0 = arith.constant 0 : index
    %c0_0 = arith.constant 0 : index
    %c0_1 = arith.constant 0 : index
    %0 = vector.load %arg1[%c0, %c0_0, %c0_1] : memref<1x342x128xbf16, #tpu.memory_space<vmem>>, vector<1x288x128xbf16>
    %1 = vector.shape_cast %0 : vector<1x288x128xbf16> to vector<288x128xbf16>
    %c0_2 = arith.constant 0 : index
    %c0_3 = arith.constant 0 : index
    %c0_4 = arith.constant 0 : index
    %c0_5 = arith.constant 0 : index
    %2 = vector.load %arg2[%c0_2, %c0_3, %c0_4, %c0_5] : memref<3x3x128x128xbf16, #tpu.memory_space<vmem>>, vector<1x1x128x128xbf16>
    %3 = vector.shape_cast %2 : vector<1x1x128x128xbf16> to vector<128x128xbf16>
    %cst = arith.constant dense<0.000000e+00> : vector<288x128xf32>
    %4 = tpu.matmul %1, %3, %cst {dimension_numbers = #tpu.dot_dimension_numbers<[1], [0], [0], [1], [0, 0, 1, 1], [], []>} : vector<288x128xbf16>, vector<128x128xbf16>, vector<288x128xf32> -> vector<288x128xf32>
    %c0_6 = arith.constant 0 : index
    %c1 = arith.constant 1 : index
    %c0_7 = arith.constant 0 : index
    %5 = vector.load %arg1[%c0_6, %c1, %c0_7] : memref<1x342x128xbf16, #tpu.memory_space<vmem>>, vector<1x288x128xbf16>
    %6 = vector.shape_cast %5 : vector<1x288x128xbf16> to vector<288x128xbf16>
    %c0_8 = arith.constant 0 : index
    %c1_9 = arith.constant 1 : index
    %c0_10 = arith.constant 0 : index
    %c0_11 = arith.constant 0 : index
    %7 = vector.load %arg2[%c0_8, %c1_9, %c0_10, %c0_11] : memref<3x3x128x128xbf16, #tpu.memory_space<vmem>>, vector<1x1x128x128xbf16>
    %8 = vector.shape_cast %7 : vector<1x1x128x128xbf16> to vector<128x128xbf16>
    %cst_12 = arith.constant dense<0.000000e+00> : vector<288x128xf32>
    %9 = tpu.matmul %6, %8, %cst_12 {dimension_numbers = #tpu.dot_dimension_numbers<[1], [0], [0], [1], [0, 0, 1, 1], [], []>} : vector<288x128xbf16>, vector<128x128xbf16>, vector<288x128xf32> -> vector<288x128xf32>
    %10 = arith.addf %4, %9 : vector<288x128xf32>
    %c0_13 = arith.constant 0 : index
    %c2 = arith.constant 2 : index
    %c0_14 = arith.constant 0 : index
    %11 = vector.load %arg1[%c0_13, %c2, %c0_14] : memref<1x342x128xbf16, #tpu.memory_space<vmem>>, vector<1x288x128xbf16>
    %12 = vector.shape_cast %11 : vector<1x288x128xbf16> to vector<288x128xbf16>
    %c0_15 = arith.constant 0 : index
    %c2_16 = arith.constant 2 : index
    %c0_17 = arith.constant 0 : index
    %c0_18 = arith.constant 0 : index
    %13 = vector.load %arg2[%c0_15, %c2_16, %c0_17, %c0_18] : memref<3x3x128x128xbf16, #tpu.memory_space<vmem>>, vector<1x1x128x128xbf16>
    %14 = vector.shape_cast %13 : vector<1x1x128x128xbf16> to vector<128x128xbf16>
    %cst_19 = arith.constant dense<0.000000e+00> : vector<288x128xf32>
    %15 = tpu.matmul %12, %14, %cst_19 {dimension_numbers = #tpu.dot_dimension_numbers<[1], [0], [0], [1], [0, 0, 1, 1], [], []>} : vector<288x128xbf16>, vector<128x128xbf16>, vector<288x128xf32> -> vector<288x128xf32>
    %16 = arith.addf %10, %15 : vector<288x128xf32>
    %c0_20 = arith.constant 0 : index
    %c18 = arith.constant 18 : index
    %c0_21 = arith.constant 0 : index
    %17 = vector.load %arg1[%c0_20, %c18, %c0_21] : memref<1x342x128xbf16, #tpu.memory_space<vmem>>, vector<1x288x128xbf16>
    %18 = vector.shape_cast %17 : vector<1x288x128xbf16> to vector<288x128xbf16>
    %c1_22 = arith.constant 1 : index
    %c0_23 = arith.constant 0 : index
    %c0_24 = arith.constant 0 : index
    %c0_25 = arith.constant 0 : index
    %19 = vector.load %arg2[%c1_22, %c0_23, %c0_24, %c0_25] : memref<3x3x128x128xbf16, #tpu.memory_space<vmem>>, vector<1x1x128x128xbf16>
    %20 = vector.shape_cast %19 : vector<1x1x128x128xbf16> to vector<128x128xbf16>
    %cst_26 = arith.constant dense<0.000000e+00> : vector<288x128xf32>
    %21 = tpu.matmul %18, %20, %cst_26 {dimension_numbers = #tpu.dot_dimension_numbers<[1], [0], [0], [1], [0, 0, 1, 1], [], []>} : vector<288x128xbf16>, vector<128x128xbf16>, vector<288x128xf32> -> vector<288x128xf32>
    %22 = arith.addf %16, %21 : vector<288x128xf32>
    %c0_27 = arith.constant 0 : index
    %c19 = arith.constant 19 : index
    %c0_28 = arith.constant 0 : index
    %23 = vector.load %arg1[%c0_27, %c19, %c0_28] : memref<1x342x128xbf16, #tpu.memory_space<vmem>>, vector<1x288x128xbf16>
    %24 = vector.shape_cast %23 : vector<1x288x128xbf16> to vector<288x128xbf16>
    %c1_29 = arith.constant 1 : index
    %c1_30 = arith.constant 1 : index
    %c0_31 = arith.constant 0 : index
    %c0_32 = arith.constant 0 : index
    %25 = vector.load %arg2[%c1_29, %c1_30, %c0_31, %c0_32] : memref<3x3x128x128xbf16, #tpu.memory_space<vmem>>, vector<1x1x128x128xbf16>
    %26 = vector.shape_cast %25 : vector<1x1x128x128xbf16> to vector<128x128xbf16>
    %cst_33 = arith.constant dense<0.000000e+00> : vector<288x128xf32>
    %27 = tpu.matmul %24, %26, %cst_33 {dimension_numbers = #tpu.dot_dimension_numbers<[1], [0], [0], [1], [0, 0, 1, 1], [], []>} : vector<288x128xbf16>, vector<128x128xbf16>, vector<288x128xf32> -> vector<288x128xf32>
    %28 = arith.addf %22, %27 : vector<288x128xf32>
    %c0_34 = arith.constant 0 : index
    %c20 = arith.constant 20 : index
    %c0_35 = arith.constant 0 : index
    %29 = vector.load %arg1[%c0_34, %c20, %c0_35] : memref<1x342x128xbf16, #tpu.memory_space<vmem>>, vector<1x288x128xbf16>
    %30 = vector.shape_cast %29 : vector<1x288x128xbf16> to vector<288x128xbf16>
    %c1_36 = arith.constant 1 : index
    %c2_37 = arith.constant 2 : index
    %c0_38 = arith.constant 0 : index
    %c0_39 = arith.constant 0 : index
    %31 = vector.load %arg2[%c1_36, %c2_37, %c0_38, %c0_39] : memref<3x3x128x128xbf16, #tpu.memory_space<vmem>>, vector<1x1x128x128xbf16>
    %32 = vector.shape_cast %31 : vector<1x1x128x128xbf16> to vector<128x128xbf16>
    %cst_40 = arith.constant dense<0.000000e+00> : vector<288x128xf32>
    %33 = tpu.matmul %30, %32, %cst_40 {dimension_numbers = #tpu.dot_dimension_numbers<[1], [0], [0], [1], [0, 0, 1, 1], [], []>} : vector<288x128xbf16>, vector<128x128xbf16>, vector<288x128xf32> -> vector<288x128xf32>
    %34 = arith.addf %28, %33 : vector<288x128xf32>
    %c0_41 = arith.constant 0 : index
    %c36 = arith.constant 36 : index
    %c0_42 = arith.constant 0 : index
    %35 = vector.load %arg1[%c0_41, %c36, %c0_42] : memref<1x342x128xbf16, #tpu.memory_space<vmem>>, vector<1x288x128xbf16>
    %36 = vector.shape_cast %35 : vector<1x288x128xbf16> to vector<288x128xbf16>
    %c2_43 = arith.constant 2 : index
    %c0_44 = arith.constant 0 : index
    %c0_45 = arith.constant 0 : index
    %c0_46 = arith.constant 0 : index
    %37 = vector.load %arg2[%c2_43, %c0_44, %c0_45, %c0_46] : memref<3x3x128x128xbf16, #tpu.memory_space<vmem>>, vector<1x1x128x128xbf16>
    %38 = vector.shape_cast %37 : vector<1x1x128x128xbf16> to vector<128x128xbf16>
    %cst_47 = arith.constant dense<0.000000e+00> : vector<288x128xf32>
    %39 = tpu.matmul %36, %38, %cst_47 {dimension_numbers = #tpu.dot_dimension_numbers<[1], [0], [0], [1], [0, 0, 1, 1], [], []>} : vector<288x128xbf16>, vector<128x128xbf16>, vector<288x128xf32> -> vector<288x128xf32>
    %40 = arith.addf %34, %39 : vector<288x128xf32>
    %c0_48 = arith.constant 0 : index
    %c37 = arith.constant 37 : index
    %c0_49 = arith.constant 0 : index
    %41 = vector.load %arg1[%c0_48, %c37, %c0_49] : memref<1x342x128xbf16, #tpu.memory_space<vmem>>, vector<1x288x128xbf16>
    %42 = vector.shape_cast %41 : vector<1x288x128xbf16> to vector<288x128xbf16>
    %c2_50 = arith.constant 2 : index
    %c1_51 = arith.constant 1 : index
    %c0_52 = arith.constant 0 : index
    %c0_53 = arith.constant 0 : index
    %43 = vector.load %arg2[%c2_50, %c1_51, %c0_52, %c0_53] : memref<3x3x128x128xbf16, #tpu.memory_space<vmem>>, vector<1x1x128x128xbf16>
    %44 = vector.shape_cast %43 : vector<1x1x128x128xbf16> to vector<128x128xbf16>
    %cst_54 = arith.constant dense<0.000000e+00> : vector<288x128xf32>
    %45 = tpu.matmul %42, %44, %cst_54 {dimension_numbers = #tpu.dot_dimension_numbers<[1], [0], [0], [1], [0, 0, 1, 1], [], []>} : vector<288x128xbf16>, vector<128x128xbf16>, vector<288x128xf32> -> vector<288x128xf32>
    %46 = arith.addf %40, %45 : vector<288x128xf32>
    %c0_55 = arith.constant 0 : index
    %c38 = arith.constant 38 : index
    %c0_56 = arith.constant 0 : index
    %47 = vector.load %arg1[%c0_55, %c38, %c0_56] : memref<1x342x128xbf16, #tpu.memory_space<vmem>>, vector<1x288x128xbf16>
    %48 = vector.shape_cast %47 : vector<1x288x128xbf16> to vector<288x128xbf16>
    %c2_57 = arith.constant 2 : index
    %c2_58 = arith.constant 2 : index
    %c0_59 = arith.constant 0 : index
    %c0_60 = arith.constant 0 : index
    %49 = vector.load %arg2[%c2_57, %c2_58, %c0_59, %c0_60] : memref<3x3x128x128xbf16, #tpu.memory_space<vmem>>, vector<1x1x128x128xbf16>
    %50 = vector.shape_cast %49 : vector<1x1x128x128xbf16> to vector<128x128xbf16>
    %cst_61 = arith.constant dense<0.000000e+00> : vector<288x128xf32>
    %51 = tpu.matmul %48, %50, %cst_61 {dimension_numbers = #tpu.dot_dimension_numbers<[1], [0], [0], [1], [0, 0, 1, 1], [], []>} : vector<288x128xbf16>, vector<128x128xbf16>, vector<288x128xf32> -> vector<288x128xf32>
    %52 = arith.addf %46, %51 : vector<288x128xf32>
    %c0_62 = arith.constant 0 : index
    %c0_63 = arith.constant 0 : index
    %53 = vector.load %arg3[%c0_62, %c0_63] : memref<1x128xf32, #tpu.memory_space<vmem>>, vector<1x128xf32>
    %54 = vector.broadcast %53 : vector<1x128xf32> to vector<288x128xf32>
    %55 = arith.addf %52, %54 : vector<288x128xf32>
    %cst_64 = arith.constant 0.000000e+00 : f32
    %56 = vector.broadcast %cst_64 : f32 to vector<288x128xf32>
    %57 = arith.maximumf %55, %56 : vector<288x128xf32>
    %58 = arith.truncf %57 : vector<288x128xf32> to vector<288x128xbf16>
    %59 = vector.shape_cast %58 : vector<288x128xbf16> to vector<16x18x128xbf16>
    %60 = vector.extract_strided_slice %59 {offsets = [0, 0, 0], sizes = [16, 16, 128], strides = [1, 1, 1]} : vector<16x18x128xbf16> to vector<16x16x128xbf16>
    %61 = vector.shape_cast %60 : vector<16x16x128xbf16> to vector<256x128xbf16>
    %c0_65 = arith.constant 0 : index
    %c0_66 = arith.constant 0 : index
    %62 = vector.load %arg4[%c0_65, %c0_66] : memref<128x128xbf16, #tpu.memory_space<vmem>>, vector<128x128xbf16>
    %cst_67 = arith.constant dense<0.000000e+00> : vector<256x128xf32>
    %63 = tpu.matmul %61, %62, %cst_67 {dimension_numbers = #tpu.dot_dimension_numbers<[1], [0], [0], [1], [0, 0, 1, 1], [], []>} : vector<256x128xbf16>, vector<128x128xbf16>, vector<256x128xf32> -> vector<256x128xf32>
    %c0_68 = arith.constant 0 : index
    %c0_69 = arith.constant 0 : index
    %c0_70 = arith.constant 0 : index
    %64 = vector.load %arg5[%c0_68, %c0_69, %c0_70] : memref<1x256x128xbf16, #tpu.memory_space<vmem>>, vector<1x256x128xbf16>
    %65 = vector.shape_cast %64 : vector<1x256x128xbf16> to vector<256x128xbf16>
    %66 = arith.extf %65 : vector<256x128xbf16> to vector<256x128xf32>
    %67 = arith.addf %63, %66 : vector<256x128xf32>
    %c0_71 = arith.constant 0 : index
    %c0_72 = arith.constant 0 : index
    %c0_73 = arith.constant 0 : index
    %68 = vector.load %arg6[%c0_71, %c0_72, %c0_73] : memref<1x256x128xf32, #tpu.memory_space<vmem>>, vector<1x256x128xf32>
    %69 = vector.shape_cast %68 : vector<1x256x128xf32> to vector<256x128xf32>
    %70 = vector.shape_cast %67 : vector<256x128xf32> to vector<1x256x128xf32>
    tpu.vector_store %arg6[%c0_71, %c0_72, %c0_73], %70 {strides = array<i32>} : memref<1x256x128xf32, #tpu.memory_space<vmem>>, vector<1x256x128xf32>,
    return
  }
  func.func @transform_0(%arg0: i32) -> (i32, i32, i32) {
    %c0_i32 = arith.constant 0 : i32
    %c0_i32_0 = arith.constant 0 : i32
    %c0_i32_1 = arith.constant 0 : i32
    return %arg0, %c0_i32, %c0_i32_0 : i32, i32, i32
  }
  func.func @transform_1(%arg0: i32) -> (i32, i32, i32, i32) {
    %c0_i32 = arith.constant 0 : i32
    %c0_i32_0 = arith.constant 0 : i32
    %c0_i32_1 = arith.constant 0 : i32
    %c0_i32_2 = arith.constant 0 : i32
    %c0_i32_3 = arith.constant 0 : i32
    return %c0_i32, %c0_i32_0, %c0_i32_1, %c0_i32_2 : i32, i32, i32, i32
  }
  func.func @transform_2(%arg0: i32) -> (i32, i32) {
    %c0_i32 = arith.constant 0 : i32
    %c0_i32_0 = arith.constant 0 : i32
    %c0_i32_1 = arith.constant 0 : i32
    return %c0_i32, %c0_i32_0 : i32, i32
  }
  func.func @transform_3(%arg0: i32) -> (i32, i32) {
    %c0_i32 = arith.constant 0 : i32
    %c0_i32_0 = arith.constant 0 : i32
    %c0_i32_1 = arith.constant 0 : i32
    return %c0_i32, %c0_i32_0 : i32, i32
  }
  func.func @transform_4(%arg0: i32) -> (i32, i32, i32) {
    %c0_i32 = arith.constant 0 : i32
    %c0_i32_0 = arith.constant 0 : i32
    %c0_i32_1 = arith.constant 0 : i32
    return %arg0, %c0_i32, %c0_i32_0 : i32, i32, i32
  }
  func.func @transform_5(%arg0: i32) -> (i32, i32, i32) {
    %c0_i32 = arith.constant 0 : i32
    %c0_i32_0 = arith.constant 0 : i32
    %c0_i32_1 = arith.constant 0 : i32
    return %arg0, %c0_i32, %c0_i32_0 : i32, i32, i32
  }
}

</mosaic_0001>

<bundles_post_ra>
// kernel: _lambda_.2
= control target key start
LH: loop header
LB: loop body
LE: loop exit
PB: predicated region body
PF: predicated region fallthrough
CT: control target
= control target key end

     0   :  { %s4203_s3 = inlined_call_operand.vmem [shape: bf16[128,128], index: 3, kind: input, shape index: {}]   ;;  %s4204_s5 = inlined_call_operand.vmem [shape: bf16[128,128], index: 5, kind: input, shape index: {}]   ;;  %s4205_s1 = inlined_call_operand.vmem [shape: f32[1,128], index: 1, kind: input, shape index: {}]   ;;  %s4206_s2 = inlined_call_operand.vmem [shape: f32[1,128], index: 2, kind: input, shape index: {}]   ;;  %s4207_s0 = inlined_call_operand.vmem [shape: f32[1024,128], index: 0, kind: input, shape index: {}]   ;;  %s4208_s4 = inlined_call_operand.vmem [shape: f32[1,128], index: 4, kind: input, shape index: {}]   ;;  %s4209_s7 = inlined_call_operand.vmem [shape: bf16[1024,128], index: 7, kind: output, shape index: {1}]   ;;  %s4210_s6 = inlined_call_operand.vmem [shape: bf16[1024,128], index: 6, kind: output, shape index: {0}]  }
   0x1   :  { %v2118_v0 = vld [vmem:[%s4203_s3 + $0x38] sm:$0xff]  ;;  %v2117_v2 = vld [vmem:[%s4203_s3 + $0x30] sm:$0xff]  ;;  %v2116_v4 = vld [vmem:[%s4203_s3 + $0x28] sm:$0xff] }
   0x2   :  { %v2126_v1 = vld [vmem:[%s4204_s5 + $0x38] sm:$0xff]  ;;  %677 = vmatpush.bf16.msra.mxu0 %v2118_v0  ;;  %2893 = vmatpush.bf16.msra.mxu2 %v2118_v0  ;;  %v2125_v3 = vld [vmem:[%s4204_s5 + $0x30] sm:$0xff]  ;;  %v2124_v5 = vld [vmem:[%s4204_s5 + $0x28] sm:$0xff] }
   0x3   :  { %2901 = vmatpush.bf16.msra.mxu3 %v2126_v1  ;;  %1454 = vmatpush.bf16.msra.mxu1 %v2126_v1  ;;  %v2115_v6 = vld [vmem:[%s4203_s3 + $0x20] sm:$0xff]  ;;  %v2114_v8 = vld [vmem:[%s4203_s3 + $0x18] sm:$0xff]  ;;  %v26_v11 = vld [vmem:[%s4207_s0 + $0x8] sm:$0xff] }
   0x4   :  { %v2123_v7 = vld [vmem:[%s4204_s5 + $0x20] sm:$0xff]  ;;  %v90_v13 = vld [vmem:[%s4207_s0 + $0x208] sm:$0xff]  ;;  %v2122_v14 = vld [vmem:[%s4204_s5 + $0x18] sm:$0xff] }
   0x5   :  { %v25_v9 = vld [vmem:[%s4207_s0] sm:$0xff]  ;;  %v2113_v20 = vld [vmem:[%s4203_s3 + $0x10] sm:$0xff]  ;;  %v2112_v26 = vld [vmem:[%s4203_s3 + $0x8] sm:$0xff] }
   0x6   :  { %678 = vmatpush.bf16.msra.mxu0 %v2117_v2  ;;  %2894 = vmatpush.bf16.msra.mxu2 %v2117_v2  ;;  %v2991_v10 = vld [vmem:[%s4205_s1] ss:$0 sm:$0xff]  ;;  %v2121_v21 = vld [vmem:[%s4204_s5 + $0x10] sm:$0xff]  ;;  %v2120_v27 = vld [vmem:[%s4204_s5 + $0x8] sm:$0xff] }
   0x7   :  { %2902 = vmatpush.bf16.msra.mxu3 %v2125_v3  ;;  %1455 = vmatpush.bf16.msra.mxu1 %v2125_v3  ;;  %v89_v12 = vld [vmem:[%s4207_s0 + $0x200] sm:$0xff]  ;;  %v157_v15 = vmul.f32 %v2991_v10, %v25_v9  ;;  %v158_v16 = vmul.f32 %v2991_v10, %v26_v11  ;;  %v222_v19 = vmul.f32 %v2991_v10, %v90_v13  ;;  %v27_v36 = vld [vmem:[%s4207_s0 + $0x10] sm:$0xff]  ;;  %v28_v37 = vld [vmem:[%s4207_s0 + $0x18] sm:$0xff] }
   0x8   :  { %v3010_v17 = vld [vmem:[%s4206_s2] ss:$0 sm:$0xff]  ;;  %v221_v18 = vmul.f32 %v2991_v10, %v89_v12  ;;  %v91_v38 = vld [vmem:[%s4207_s0 + $0x210] sm:$0xff]  ;;  %v92_v39 = vld [vmem:[%s4207_s0 + $0x218] sm:$0xff]  ;;  %v159_v40 = vmul.f32 %v2991_v10, %v27_v36  ;;  %v160_v41 = vmul.f32 %v2991_v10, %v28_v37 }
   0x9   :  { %v289_v22 = vadd.f32 %v3010_v17, %v157_v15  ;;  %v290_v23 = vadd.f32 %v3010_v17, %v158_v16  ;;  %v354_v25 = vadd.f32 %v3010_v17, %v222_v19  ;;  %v2111_v32 = vld [vmem:[%s4203_s3] sm:$0xff]  ;;  %v223_v42 = vmul.f32 %v2991_v10, %v91_v38  ;;  %v30_v55 = vld [vmem:[%s4207_s0 + $0x28] sm:$0xff]  ;;  %v32_v9 = vld [vmem:[%s4207_s0 + $0x38] sm:$0xff] }
   0xa   :  { %679 = vmatpush.bf16.msra.mxu0 %v2116_v4  ;;  %2895 = vmatpush.bf16.msra.mxu2 %v2116_v4  ;;  %v353_v24 = vadd.f32 %v3010_v17, %v221_v18  ;;  %v2119_v33 = vld [vmem:[%s4204_s5] sm:$0xff]  ;;  %v224_v43 = vmul.f32 %v2991_v10, %v92_v39  ;;  %v291_v44 = vadd.f32 %v3010_v17, %v159_v40  ;;  %v94_v57 = vld [vmem:[%s4207_s0 + $0x228] sm:$0xff]  ;;  %v95_v11 = vld [vmem:[%s4207_s0 + $0x230] sm:$0xff] }
   0xb   :  { %2903 = vmatpush.bf16.msra.mxu3 %v2124_v5  ;;  %1456 = vmatpush.bf16.msra.mxu1 %v2124_v5  ;;  %v417_v28 = vmax.f32 %v289_v22, 0.0  ;;  %v418_v29 = vmax.f32 %v290_v23, 0.0  ;;  %v482_v31 = vmax.f32 %v354_v25, 0.0  ;;  %v292_v45 = vadd.f32 %v3010_v17, %v160_v41  ;;  %v29_v54 = vld [vmem:[%s4207_s0 + $0x20] sm:$0xff]  ;;  %v96_v12 = vld [vmem:[%s4207_s0 + $0x238] sm:$0xff] }
   0xc   :  { %v481_v30 = vmax.f32 %v353_v24, 0.0  ;;  %v355_v46 = vadd.f32 %v3010_v17, %v223_v42  ;;  %v356_v47 = vadd.f32 %v3010_v17, %v224_v43  ;;  %v419_v48 = vmax.f32 %v291_v44, 0.0  ;;  %v93_v56 = vld [vmem:[%s4207_s0 + $0x220] sm:$0xff] }
   0xd   :  { %v545_v34 = vpack.c.bf16 %v418_v29, %v417_v28  ;;  %v420_v49 = vmax.f32 %v292_v45, 0.0  ;;  %v161_v58 = vmul.f32 %v2991_v10, %v29_v54  ;;  %v162_v59 = vmul.f32 %v2991_v10, %v30_v55  ;;  %v33_v28 = vld [vmem:[%s4207_s0 + $0x40] sm:$0xff]  ;;  %v34_v29 = vld [vmem:[%s4207_s0 + $0x48] sm:$0xff] }
   0xe   :  { %680 = vmatpush.bf16.msra.mxu0 %v2115_v6  ;;  %2896 = vmatpush.bf16.msra.mxu2 %v2115_v6  ;;  %v577_v35 = vpack.c.bf16 %v482_v31, %v481_v30  ;;  %v483_v50 = vmax.f32 %v355_v46, 0.0  ;;  %v484_v51 = vmax.f32 %v356_v47, 0.0  ;;  %v225_v60 = vmul.f32 %v2991_v10, %v93_v56  ;;  %v97_v30 = vld [vmem:[%s4207_s0 + $0x240] sm:$0xff]  ;;  %v98_v31 = vld [vmem:[%s4207_s0 + $0x248] sm:$0xff]  ;;  %v35_v46 = vld [vmem:[%s4207_s0 + $0x50] sm:$0xff] }
   0xf   :  { %2904 = vmatpush.bf16.msra.mxu3 %v2123_v7  ;;  %1457 = vmatpush.bf16.msra.mxu1 %v2123_v7  ;;  %v546_v52 = vpack.c.bf16 %v420_v49, %v419_v48  ;;  %v226_v61 = vmul.f32 %v2991_v10, %v94_v57  ;;  %v293_v62 = vadd.f32 %v3010_v17, %v161_v58  ;;  %v36_v47 = vld [vmem:[%s4207_s0 + $0x58] sm:$0xff]  ;;  %v99_v48 = vld [vmem:[%s4207_s0 + $0x250] sm:$0xff] }
  0x10   :  { %v578_v53 = vpack.c.bf16 %v484_v51, %v483_v50  ;;  %v294_v63 = vadd.f32 %v3010_v17, %v162_v59  ;;  %v357_v0 = vadd.f32 %v3010_v17, %v225_v60  ;;  %v227_v15 = vmul.f32 %v2991_v10, %v95_v11  ;;  %v100_v49 = vld [vmem:[%s4207_s0 + $0x258] sm:$0xff] }
  0x11   :  { %v358_v1 = vadd.f32 %v3010_v17, %v226_v61  ;;  %v421_v2 = vmax.f32 %v293_v62, 0.0  ;;  %v228_v16 = vmul.f32 %v2991_v10, %v96_v12  ;;  %v167_v50 = vmul.f32 %v2991_v10, %v35_v46 }
  0x12   :  { %681 = vmatpush.bf16.msra.mxu0 %v2114_v8  ;;  %2897 = vmatpush.bf16.msra.mxu2 %v2114_v8  ;;  %v422_v3 = vmax.f32 %v294_v63, 0.0  ;;  %v485_v4 = vmax.f32 %v357_v0, 0.0  ;;  %v31_v8 = vld [vmem:[%s4207_s0 + $0x30] sm:$0xff]  ;;  %v168_v51 = vmul.f32 %v2991_v10, %v36_v47  ;;  %v37_v0 = vld [vmem:[%s4207_s0 + $0x60] sm:$0xff] }
  0x13   :  { %2905 = vmatpush.bf16.msra.mxu3 %v2122_v14  ;;  %1458 = vmatpush.bf16.msra.mxu1 %v2122_v14  ;;  %v486_v5 = vmax.f32 %v358_v1, 0.0  ;;  %v163_v13 = vmul.f32 %v2991_v10, %v31_v8  ;;  %v164_v14 = vmul.f32 %v2991_v10, %v32_v9  ;;  %v299_v54 = vadd.f32 %v3010_v17, %v167_v50  ;;  %v38_v1 = vld [vmem:[%s4207_s0 + $0x68] sm:$0xff] }
  0x14   :  { %v547_v6 = vpack.c.bf16 %v422_v3, %v421_v2  ;;  %v300_v55 = vadd.f32 %v3010_v17, %v168_v51  ;;  %v101_v2 = vld [vmem:[%s4207_s0 + $0x260] sm:$0xff]  ;;  %v102_v3 = vld [vmem:[%s4207_s0 + $0x268] sm:$0xff] }
  0x15   :  { %v579_v7 = vpack.c.bf16 %v486_v5, %v485_v4  ;;  %v295_v18 = vadd.f32 %v3010_v17, %v163_v13  ;;  %v296_v19 = vadd.f32 %v3010_v17, %v164_v14  ;;  %v427_v58 = vmax.f32 %v299_v54, 0.0 }
  0x16   :  { %682 = vmatpush.bf16.msra.mxu0 %v2113_v20  ;;  %2898 = vmatpush.bf16.msra.mxu2 %v2113_v20  ;;  %v359_v20 = vadd.f32 %v3010_v17, %v227_v15  ;;  %v428_v59 = vmax.f32 %v300_v55, 0.0  ;;  %v169_v4 = vmul.f32 %v2991_v10, %v37_v0  ;;  %v170_v5 = vmul.f32 %v2991_v10, %v38_v1  ;;  %v3213_v0 = vld [vmem:[%s4208_s4] ss:$0 sm:$0xff] }
  0x17   :  { %2906 = vmatpush.bf16.msra.mxu3 %v2121_v21  ;;  %1459 = vmatpush.bf16.msra.mxu1 %v2121_v21  ;;  %v360_v21 = vadd.f32 %v3010_v17, %v228_v16  ;;  %v423_v22 = vmax.f32 %v295_v18, 0.0  ;;  %v424_v23 = vmax.f32 %v296_v19, 0.0 }
  0x18   :  { %v487_v24 = vmax.f32 %v359_v20, 0.0  ;;  %v550_v62 = vpack.c.bf16 %v428_v59, %v427_v58  ;;  %v301_v8 = vadd.f32 %v3010_v17, %v169_v4  ;;  %v302_v9 = vadd.f32 %v3010_v17, %v170_v5  ;;  %v39_v20 = vld [vmem:[%s4207_s0 + $0x70] sm:$0xff] }
  0x19   :  { %v488_v25 = vmax.f32 %v360_v21, 0.0  ;;  %v40_v21 = vld [vmem:[%s4207_s0 + $0x78] sm:$0xff]  ;;  %v107_v59 = vld [vmem:[%s4207_s0 + $0x290] sm:$0xff] }
  0x1a   :  { %683 = vmatpush.bf16.msra.mxu0 %v2112_v26  ;;  %2899 = vmatpush.bf16.msra.mxu2 %v2112_v26  ;;  %v548_v26 = vpack.c.bf16 %v424_v23, %v423_v22  ;;  %v429_v13 = vmax.f32 %v301_v8, 0.0  ;;  %v430_v14 = vmax.f32 %v302_v9, 0.0  ;;  %v103_v22 = vld [vmem:[%s4207_s0 + $0x270] sm:$0xff]  ;;  %v104_v23 = vld [vmem:[%s4207_s0 + $0x278] sm:$0xff]  ;;  %v239_v1 = vmul.f32 %v2991_v10, %v107_v59 }
  0x1b   :  { %2907 = vmatpush.bf16.msra.mxu3 %v2120_v27  ;;  %1460 = vmatpush.bf16.msra.mxu1 %v2120_v27  ;;  %v580_v27 = vpack.c.bf16 %v488_v25, %v487_v24  ;;  %v171_v24 = vmul.f32 %v2991_v10, %v39_v20  ;;  %v172_v25 = vmul.f32 %v2991_v10, %v40_v21 }
  0x1c   :  { %v551_v18 = vpack.c.bf16 %v430_v14, %v429_v13  ;;  %v371_v8 = vadd.f32 %v3010_v17, %v239_v1 }
  0x1e   :  { %684 = vmatpush.bf16.msra.mxu0 %v2111_v32  ;;  %2900 = vmatpush.bf16.msra.mxu2 %v2111_v32  ;;  %v165_v32 = vmul.f32 %v2991_v10, %v33_v28  ;;  %v303_v28 = vadd.f32 %v3010_v17, %v171_v24  ;;  %v499_v20 = vmax.f32 %v371_v8, 0.0  ;;  %v111_v8 = vld [vmem:[%s4207_s0 + $0x2b0] sm:$0xff] }
  0x1f   :  { %2908 = vmatpush.bf16.msra.mxu3 %v2119_v33  ;;  %1461 = vmatpush.bf16.msra.mxu1 %v2119_v33  ;;  %v166_v33 = vmul.f32 %v2991_v10, %v34_v29  ;;  %v304_v29 = vadd.f32 %v3010_v17, %v172_v25 }
  0x20   :  { %v297_v36 = vadd.f32 %v3010_v17, %v165_v32  ;;  %v431_v32 = vmax.f32 %v303_v28, 0.0 }
  0x21   :  { %685 = vmatmul.bf16.vlgmr.msra.gmra.mxu0 %v545_v34  ;;  %845 = vmatmul.bf16.vlgmr.msra.gmra.mxu2 %v577_v35  ;;  %v298_v37 = vadd.f32 %v3010_v17, %v166_v33  ;;  %v432_v33 = vmax.f32 %v304_v29, 0.0  ;;  %v45_v29 = vld [vmem:[%s4207_s0 + $0xa0] sm:$0xff] }
  0x22   :  { %1622 = vmatmul.bf16.vlgmr.msra.gmra.mxu3 %v577_v35  ;;  %1462 = vmatmul.bf16.vlgmr.msra.gmra.mxu1 %v545_v34  ;;  %v229_v34 = vmul.f32 %v2991_v10, %v97_v30  ;;  %v230_v35 = vmul.f32 %v2991_v10, %v98_v31  ;;  %v425_v40 = vmax.f32 %v297_v36, 0.0 }
  0x23   :  { %v426_v41 = vmax.f32 %v298_v37, 0.0  ;;  %v552_v36 = vpack.c.bf16 %v432_v33, %v431_v32  ;;  %v109_v33 = vld [vmem:[%s4207_s0 + $0x2a0] sm:$0xff] }
  0x24   :  { %v361_v38 = vadd.f32 %v3010_v17, %v229_v34  ;;  %v362_v39 = vadd.f32 %v3010_v17, %v230_v35 }
  0x25   :  { %v549_v44 = vpack.c.bf16 %v426_v41, %v425_v40  ;;  %v105_v40 = vld [vmem:[%s4207_s0 + $0x280] sm:$0xff]  ;;  %v106_v41 = vld [vmem:[%s4207_s0 + $0x288] sm:$0xff] }
  0x26   :  { %v489_v42 = vmax.f32 %v361_v38, 0.0  ;;  %v490_v43 = vmax.f32 %v362_v39, 0.0  ;;  %v41_v38 = vld [vmem:[%s4207_s0 + $0x80] sm:$0xff]  ;;  %v42_v39 = vld [vmem:[%s4207_s0 + $0x88] sm:$0xff] }
  0x28   :  { %v581_v45 = vpack.c.bf16 %v490_v43, %v489_v42  ;;  %v173_v42 = vmul.f32 %v2991_v10, %v41_v38  ;;  %v174_v43 = vmul.f32 %v2991_v10, %v42_v39  ;;  %v177_v38 = vmul.f32 %v2991_v10, %v45_v29 }
  0x2a   :  { %v305_v46 = vadd.f32 %v3010_v17, %v173_v42  ;;  %v306_v47 = vadd.f32 %v3010_v17, %v174_v43 }
  0x2c   :  { %v433_v50 = vmax.f32 %v305_v46, 0.0  ;;  %v434_v51 = vmax.f32 %v306_v47, 0.0 }
  0x2e   :  { %v553_v54 = vpack.c.bf16 %v434_v51, %v433_v50 }
  0x31   :  { %690 = vmatmul.bf16.gmra.mxu0 %v546_v52  ;;  %850 = vmatmul.bf16.gmra.mxu2 %v578_v53 }
  0x32   :  { %1627 = vmatmul.bf16.gmra.mxu3 %v578_v53  ;;  %1467 = vmatmul.bf16.gmra.mxu1 %v546_v52  ;;  %v231_v52 = vmul.f32 %v2991_v10, %v99_v48  ;;  %v232_v53 = vmul.f32 %v2991_v10, %v100_v49 }
  0x34   :  { %v363_v56 = vadd.f32 %v3010_v17, %v231_v52  ;;  %v364_v57 = vadd.f32 %v3010_v17, %v232_v53 }
  0x36   :  { %v491_v60 = vmax.f32 %v363_v56, 0.0  ;;  %v492_v61 = vmax.f32 %v364_v57, 0.0  ;;  %v43_v56 = vld [vmem:[%s4207_s0 + $0x90] sm:$0xff]  ;;  %v44_v57 = vld [vmem:[%s4207_s0 + $0x98] sm:$0xff] }
  0x38   :  { %v582_v63 = vpack.c.bf16 %v492_v61, %v491_v60  ;;  %v108_v60 = vld [vmem:[%s4207_s0 + $0x298] sm:$0xff] }
  0x41   :  { %695 = vmatmul.bf16.gmra.mxu0 %v547_v6  ;;  %855 = vmatmul.bf16.gmra.mxu2 %v579_v7 }
  0x42   :  { %1632 = vmatmul.bf16.gmra.mxu3 %v579_v7  ;;  %1472 = vmatmul.bf16.gmra.mxu1 %v547_v6  ;;  %v233_v6 = vmul.f32 %v2991_v10, %v101_v2  ;;  %v234_v7 = vmul.f32 %v2991_v10, %v102_v3  ;;  %v240_v2 = vmul.f32 %v2991_v10, %v108_v60 }
  0x44   :  { %v365_v11 = vadd.f32 %v3010_v17, %v233_v6  ;;  %v366_v12 = vadd.f32 %v3010_v17, %v234_v7  ;;  %v372_v9 = vadd.f32 %v3010_v17, %v240_v2 }
  0x46   :  { %v493_v15 = vmax.f32 %v365_v11, 0.0  ;;  %v494_v16 = vmax.f32 %v366_v12, 0.0  ;;  %v500_v21 = vmax.f32 %v372_v9, 0.0  ;;  %v112_v9 = vld [vmem:[%s4207_s0 + $0x2b8] sm:$0xff] }
  0x48   :  { %v583_v19 = vpack.c.bf16 %v494_v16, %v493_v15  ;;  %v586_v28 = vpack.c.bf16 %v500_v21, %v499_v20 }
  0x51   :  { %700 = vmatmul.bf16.gmra.mxu0 %v548_v26  ;;  %860 = vmatmul.bf16.gmra.mxu2 %v580_v27 }
  0x52   :  { %1637 = vmatmul.bf16.gmra.mxu3 %v580_v27  ;;  %1477 = vmatmul.bf16.gmra.mxu1 %v548_v26  ;;  %v235_v26 = vmul.f32 %v2991_v10, %v103_v22  ;;  %v236_v27 = vmul.f32 %v2991_v10, %v104_v23 }
  0x54   :  { %v367_v30 = vadd.f32 %v3010_v17, %v235_v26  ;;  %v368_v31 = vadd.f32 %v3010_v17, %v236_v27 }
  0x56   :  { %v495_v34 = vmax.f32 %v367_v30, 0.0  ;;  %v496_v35 = vmax.f32 %v368_v31, 0.0  ;;  %v46_v30 = vld [vmem:[%s4207_s0 + $0xa8] sm:$0xff] }
  0x57   :  { %v178_v39 = vmul.f32 %v2991_v10, %v46_v30 }
  0x58   :  { %v584_v37 = vpack.c.bf16 %v496_v35, %v495_v34  ;;  %v110_v34 = vld [vmem:[%s4207_s0 + $0x2a8] sm:$0xff] }
  0x59   :  { %v242_v42 = vmul.f32 %v2991_v10, %v110_v34 }
  0x61   :  { %705 = vmatmul.bf16.gmra.mxu0 %v549_v44  ;;  %865 = vmatmul.bf16.gmra.mxu2 %v581_v45 }
  0x62   :  { %1642 = vmatmul.bf16.gmra.mxu3 %v581_v45  ;;  %1482 = vmatmul.bf16.gmra.mxu1 %v549_v44  ;;  %v237_v44 = vmul.f32 %v2991_v10, %v105_v40  ;;  %v238_v45 = vmul.f32 %v2991_v10, %v106_v41  ;;  %v241_v41 = vmul.f32 %v2991_v10, %v109_v33 }
  0x64   :  { %v369_v48 = vadd.f32 %v3010_v17, %v237_v44  ;;  %v370_v49 = vadd.f32 %v3010_v17, %v238_v45  ;;  %v309_v44 = vadd.f32 %v3010_v17, %v177_v38  ;;  %v310_v45 = vadd.f32 %v3010_v17, %v178_v39 }
  0x66   :  { %v497_v52 = vmax.f32 %v369_v48, 0.0  ;;  %v498_v53 = vmax.f32 %v370_v49, 0.0  ;;  %v373_v48 = vadd.f32 %v3010_v17, %v241_v41  ;;  %v374_v49 = vadd.f32 %v3010_v17, %v242_v42 }
  0x68   :  { %v585_v55 = vpack.c.bf16 %v498_v53, %v497_v52  ;;  %v502_v59 = vmax.f32 %v374_v49, 0.0  ;;  %v114_v49 = vld [vmem:[%s4207_s0 + $0x2c8] sm:$0xff] }
  0x71   :  { %710 = vmatmul.bf16.gmra.mxu0 %v550_v62  ;;  %870 = vmatmul.bf16.gmra.mxu2 %v582_v63 }
  0x72   :  { %1647 = vmatmul.bf16.gmra.mxu3 %v582_v63  ;;  %1487 = vmatmul.bf16.gmra.mxu1 %v550_v62  ;;  %v175_v62 = vmul.f32 %v2991_v10, %v43_v56  ;;  %v176_v63 = vmul.f32 %v2991_v10, %v44_v57 }
  0x74   :  { %v307_v4 = vadd.f32 %v3010_v17, %v175_v62  ;;  %v308_v5 = vadd.f32 %v3010_v17, %v176_v63 }
  0x76   :  { %v435_v15 = vmax.f32 %v307_v4, 0.0  ;;  %v436_v16 = vmax.f32 %v308_v5, 0.0  ;;  %v47_v4 = vld [vmem:[%s4207_s0 + $0xb0] sm:$0xff]  ;;  %v48_v5 = vld [vmem:[%s4207_s0 + $0xb8] sm:$0xff] }
  0x78   :  { %v554_v27 = vpack.c.bf16 %v436_v16, %v435_v15  ;;  %v180_v15 = vmul.f32 %v2991_v10, %v48_v5 }
  0x81   :  { %715 = vmatmul.bf16.gmra.mxu0 %v551_v18  ;;  %875 = vmatmul.bf16.gmra.mxu2 %v583_v19 }
  0x82   :  { %1652 = vmatmul.bf16.gmra.mxu3 %v583_v19  ;;  %1492 = vmatmul.bf16.gmra.mxu1 %v551_v18 }
  0x91   :  { %720 = vmatmul.bf16.gmra.mxu0 %v552_v36  ;;  %880 = vmatmul.bf16.gmra.mxu2 %v584_v37 }
  0x92   :  { %1657 = vmatmul.bf16.gmra.mxu3 %v584_v37  ;;  %1497 = vmatmul.bf16.gmra.mxu1 %v552_v36 }
  0x9e   :  { %v686_v58 = vpop.f32.mrf.mxu0 }
  0x9f   :  { %v1463_v61 = vpop.f32.mrf.mxu1  ;;  %v687_v6 = vadd.f32 %v3213_v0, %v686_v58  ;;  %v501_v58 = vmax.f32 %v373_v48, 0.0  ;;  %v113_v48 = vld [vmem:[%s4207_s0 + $0x2c0] sm:$0xff] }
  0xa1   :  { %725 = vmatmul.bf16.gmra.mxu0 %v553_v54  ;;  %885 = vmatmul.bf16.gmra.mxu2 %v585_v55  ;;  %v1006_v18 = vmax.f32 %v687_v6, 0.0 }
  0xa2   :  { %1662 = vmatmul.bf16.gmra.mxu3 %v585_v55  ;;  %1502 = vmatmul.bf16.gmra.mxu1 %v553_v54  ;;  %v437_v54 = vmax.f32 %v309_v44, 0.0  ;;  %v438_v55 = vmax.f32 %v310_v45, 0.0  ;;  %v49_v44 = vld [vmem:[%s4207_s0 + $0xc0] sm:$0xff]  ;;  %v50_v45 = vld [vmem:[%s4207_s0 + $0xc8] sm:$0xff] }
  0xa4   :  { %v846_v3 = vpop.f32.mrf.mxu2  ;;  %v555_v2 = vpack.c.bf16 %v438_v55, %v437_v54  ;;  %v182_v54 = vmul.f32 %v2991_v10, %v50_v45 }
  0xa5   :  { %v1623_v7 = vpop.f32.mrf.mxu3  ;;  %v847_v22 = vadd.f32 %v3213_v0, %v846_v3  ;;  %v587_v3 = vpack.c.bf16 %v502_v59, %v501_v58 }
  0xa6   :  { %v688_v11 = vpop.f32.mrf.mxu0 }
  0xa7   :  { %v689_v12 = vadd.f32 %v3213_v0, %v688_v11  ;;  %v1465_v13 = vpop.f32.mrf.mxu1  ;;  %v1070_v35 = vmax.f32 %v847_v22, 0.0  ;;  %v312_v22 = vadd.f32 %v3010_v17, %v180_v15 }
  0xa8   :  { %v2450_v14 = vpack.c.bf16 %v1465_v13, %v1463_v61 }
  0xa9   :  { %v1007_v19 = vmax.f32 %v689_v12, 0.0 }
  0xaa   :  { %2451 = vst [vmem:[%s4209_s7] sm:$0xff] %v2450_v14   ;;  %v179_v14 = vmul.f32 %v2991_v10, %v47_v4 }
  0xab   :  { %v2130_v23 = vpack.c.bf16 %v1007_v19, %v1006_v18  ;;  %v243_v18 = vmul.f32 %v2991_v10, %v111_v8  ;;  %v244_v19 = vmul.f32 %v2991_v10, %v112_v9 }
  0xac   :  { %v848_v24 = vpop.f32.mrf.mxu2  ;;  %v311_v21 = vadd.f32 %v3010_v17, %v179_v14 }
  0xad   :  { %2131 = vst [vmem:[%s4210_s6] sm:$0xff] %v2130_v23   ;;  %v849_v25 = vadd.f32 %v3213_v0, %v848_v24  ;;  %v1625_v26 = vpop.f32.mrf.mxu3 }
  0xae   :  { %v2610_v31 = vpack.c.bf16 %v1625_v26, %v1623_v7  ;;  %v691_v32 = vpop.f32.mrf.mxu0  ;;  %v376_v26 = vadd.f32 %v3010_v17, %v244_v19 }
  0xaf   :  { %v1071_v36 = vmax.f32 %v849_v25, 0.0  ;;  %v1468_v37 = vpop.f32.mrf.mxu1  ;;  %v692_v46 = vadd.f32 %v3213_v0, %v691_v32  ;;  %v375_v25 = vadd.f32 %v3010_v17, %v243_v18  ;;  %v440_v32 = vmax.f32 %v312_v22, 0.0  ;;  %v52_v22 = vld [vmem:[%s4207_s0 + $0xd8] sm:$0xff] }
  0xb0   :  { %2861 = vst [vmem:[%s4209_s7 + $0x100] sm:$0xff] %v2610_v31   ;;  %v439_v31 = vmax.f32 %v311_v21, 0.0  ;;  %v51_v21 = vld [vmem:[%s4207_s0 + $0xd0] sm:$0xff] }
  0xb1   :  { %v2290_v40 = vpack.c.bf16 %v1071_v36, %v1070_v35  ;;  %730 = vmatmul.bf16.gmra.mxu0 %v554_v27  ;;  %890 = vmatmul.bf16.gmra.mxu2 %v586_v28  ;;  %v1008_v56 = vmax.f32 %v692_v46, 0.0  ;;  %v503_v35 = vmax.f32 %v375_v25, 0.0  ;;  %v504_v36 = vmax.f32 %v376_v26, 0.0  ;;  %v115_v25 = vld [vmem:[%s4207_s0 + $0x2d0] sm:$0xff]  ;;  %v116_v26 = vld [vmem:[%s4207_s0 + $0x2d8] sm:$0xff] }
  0xb2   :  { %1667 = vmatmul.bf16.gmra.mxu3 %v586_v28  ;;  %1507 = vmatmul.bf16.gmra.mxu1 %v554_v27  ;;  %v556_v42 = vpack.c.bf16 %v440_v32, %v439_v31  ;;  %v184_v31 = vmul.f32 %v2991_v10, %v52_v22 }
  0xb3   :  { %2798 = vst [vmem:[%s4210_s6 + $0x100] sm:$0xff] %v2290_v40  }
  0xb4   :  { %v851_v43 = vpop.f32.mrf.mxu2 }
  0xb5   :  { %v1628_v47 = vpop.f32.mrf.mxu3  ;;  %v852_v60 = vadd.f32 %v3213_v0, %v851_v43  ;;  %v588_v43 = vpack.c.bf16 %v504_v36, %v503_v35 }
  0xb6   :  { %v693_v50 = vpop.f32.mrf.mxu0 }
  0xb7   :  { %v694_v51 = vadd.f32 %v3213_v0, %v693_v50  ;;  %v1470_v52 = vpop.f32.mrf.mxu1  ;;  %v1072_v11 = vmax.f32 %v852_v60, 0.0  ;;  %v314_v60 = vadd.f32 %v3010_v17, %v182_v54 }
  0xb8   :  { %v2455_v53 = vpack.c.bf16 %v1470_v52, %v1468_v37 }
  0xb9   :  { %v1009_v57 = vmax.f32 %v694_v51, 0.0 }
  0xba   :  { %2830 = vst [vmem:[%s4209_s7 + $0x8] sm:$0xff] %v2455_v53   ;;  %v181_v53 = vmul.f32 %v2991_v10, %v49_v44 }
  0xbb   :  { %v2135_v61 = vpack.c.bf16 %v1009_v57, %v1008_v56  ;;  %v245_v56 = vmul.f32 %v2991_v10, %v113_v48  ;;  %v246_v57 = vmul.f32 %v2991_v10, %v114_v49 }
  0xbc   :  { %v853_v62 = vpop.f32.mrf.mxu2  ;;  %v313_v59 = vadd.f32 %v3010_v17, %v181_v53 }
  0xbd   :  { %2767 = vst [vmem:[%s4210_s6 + $0x8] sm:$0xff] %v2135_v61   ;;  %v854_v63 = vadd.f32 %v3213_v0, %v853_v62  ;;  %v1630_v1 = vpop.f32.mrf.mxu3 }
  0xbe   :  { %v2615_v6 = vpack.c.bf16 %v1630_v1, %v1628_v47  ;;  %v696_v7 = vpop.f32.mrf.mxu0  ;;  %v378_v1 = vadd.f32 %v3010_v17, %v246_v57 }
  0xbf   :  { %v1073_v12 = vmax.f32 %v854_v63, 0.0  ;;  %v1473_v13 = vpop.f32.mrf.mxu1  ;;  %v697_v23 = vadd.f32 %v3213_v0, %v696_v7  ;;  %v377_v63 = vadd.f32 %v3010_v17, %v245_v56  ;;  %v442_v7 = vmax.f32 %v314_v60, 0.0  ;;  %v54_v60 = vld [vmem:[%s4207_s0 + $0xe8] sm:$0xff] }
  0xc0   :  { %2862 = vst [vmem:[%s4209_s7 + $0x108] sm:$0xff] %v2615_v6   ;;  %v441_v6 = vmax.f32 %v313_v59, 0.0  ;;  %v53_v59 = vld [vmem:[%s4207_s0 + $0xe0] sm:$0xff] }
  0xc1   :  { %v2295_v16 = vpack.c.bf16 %v1073_v12, %v1072_v11  ;;  %735 = vmatmul.bf16.gmra.mxu0 %v555_v2  ;;  %895 = vmatmul.bf16.gmra.mxu2 %v587_v3  ;;  %v1010_v33 = vmax.f32 %v697_v23, 0.0  ;;  %v505_v11 = vmax.f32 %v377_v63, 0.0  ;;  %v506_v12 = vmax.f32 %v378_v1, 0.0  ;;  %v117_v63 = vld [vmem:[%s4207_s0 + $0x2e0] sm:$0xff]  ;;  %v118_v1 = vld [vmem:[%s4207_s0 + $0x2e8] sm:$0xff] }
  0xc2   :  { %1672 = vmatmul.bf16.gmra.mxu3 %v587_v3  ;;  %1512 = vmatmul.bf16.gmra.mxu1 %v555_v2  ;;  %v557_v19 = vpack.c.bf16 %v442_v7, %v441_v6  ;;  %v186_v6 = vmul.f32 %v2991_v10, %v54_v60 }
  0xc3   :  { %2799 = vst [vmem:[%s4210_s6 + $0x108] sm:$0xff] %v2295_v16  }
  0xc4   :  { %v856_v20 = vpop.f32.mrf.mxu2 }
  0xc5   :  { %v1633_v24 = vpop.f32.mrf.mxu3  ;;  %v857_v37 = vadd.f32 %v3213_v0, %v856_v20  ;;  %v589_v20 = vpack.c.bf16 %v506_v12, %v505_v11 }
  0xc6   :  { %v698_v27 = vpop.f32.mrf.mxu0 }
  0xc7   :  { %v699_v28 = vadd.f32 %v3213_v0, %v698_v27  ;;  %v1475_v29 = vpop.f32.mrf.mxu1  ;;  %v1074_v50 = vmax.f32 %v857_v37, 0.0  ;;  %v316_v37 = vadd.f32 %v3010_v17, %v184_v31 }
  0xc8   :  { %v2460_v30 = vpack.c.bf16 %v1475_v29, %v1473_v13 }
  0xc9   :  { %v1011_v34 = vmax.f32 %v699_v28, 0.0 }
  0xca   :  { %2831 = vst [vmem:[%s4209_s7 + $0x10] sm:$0xff] %v2460_v30   ;;  %v183_v30 = vmul.f32 %v2991_v10, %v51_v21 }
  0xcb   :  { %v2140_v38 = vpack.c.bf16 %v1011_v34, %v1010_v33  ;;  %v247_v33 = vmul.f32 %v2991_v10, %v115_v25  ;;  %v248_v34 = vmul.f32 %v2991_v10, %v116_v26 }
  0xcc   :  { %v858_v39 = vpop.f32.mrf.mxu2  ;;  %v315_v36 = vadd.f32 %v3010_v17, %v183_v30 }
  0xcd   :  { %2768 = vst [vmem:[%s4210_s6 + $0x10] sm:$0xff] %v2140_v38   ;;  %v859_v40 = vadd.f32 %v3213_v0, %v858_v39  ;;  %v1635_v41 = vpop.f32.mrf.mxu3 }
  0xce   :  { %v2620_v46 = vpack.c.bf16 %v1635_v41, %v1633_v24  ;;  %v701_v47 = vpop.f32.mrf.mxu0  ;;  %v380_v41 = vadd.f32 %v3010_v17, %v248_v34 }
  0xcf   :  { %v1075_v51 = vmax.f32 %v859_v40, 0.0  ;;  %v1478_v52 = vpop.f32.mrf.mxu1  ;;  %v702_v61 = vadd.f32 %v3213_v0, %v701_v47  ;;  %v379_v40 = vadd.f32 %v3010_v17, %v247_v33  ;;  %v444_v47 = vmax.f32 %v316_v37, 0.0  ;;  %v56_v37 = vld [vmem:[%s4207_s0 + $0xf8] sm:$0xff] }
  0xd0   :  { %2863 = vst [vmem:[%s4209_s7 + $0x110] sm:$0xff] %v2620_v46   ;;  %v443_v46 = vmax.f32 %v315_v36, 0.0  ;;  %v55_v36 = vld [vmem:[%s4207_s0 + $0xf0] sm:$0xff] }
  0xd1   :  { %v2300_v55 = vpack.c.bf16 %v1075_v51, %v1074_v50  ;;  %740 = vmatmul.bf16.gmra.mxu0 %v556_v42  ;;  %900 = vmatmul.bf16.gmra.mxu2 %v588_v43  ;;  %v1012_v8 = vmax.f32 %v702_v61, 0.0  ;;  %v507_v50 = vmax.f32 %v379_v40, 0.0  ;;  %v508_v51 = vmax.f32 %v380_v41, 0.0  ;;  %v119_v40 = vld [vmem:[%s4207_s0 + $0x2f0] sm:$0xff]  ;;  %v120_v41 = vld [vmem:[%s4207_s0 + $0x2f8] sm:$0xff] }
  0xd2   :  { %1677 = vmatmul.bf16.gmra.mxu3 %v588_v43  ;;  %1517 = vmatmul.bf16.gmra.mxu1 %v556_v42  ;;  %v558_v57 = vpack.c.bf16 %v444_v47, %v443_v46  ;;  %v188_v46 = vmul.f32 %v2991_v10, %v56_v37 }
  0xd3   :  { %2800 = vst [vmem:[%s4210_s6 + $0x110] sm:$0xff] %v2300_v55  }
  0xd4   :  { %v861_v58 = vpop.f32.mrf.mxu2 }
  0xd5   :  { %v1638_v62 = vpop.f32.mrf.mxu3  ;;  %v862_v13 = vadd.f32 %v3213_v0, %v861_v58  ;;  %v590_v58 = vpack.c.bf16 %v508_v51, %v507_v50 }
  0xd6   :  { %v703_v2 = vpop.f32.mrf.mxu0 }
  0xd7   :  { %v704_v3 = vadd.f32 %v3213_v0, %v703_v2  ;;  %v1480_v4 = vpop.f32.mrf.mxu1  ;;  %v1076_v27 = vmax.f32 %v862_v13, 0.0  ;;  %v318_v13 = vadd.f32 %v3010_v17, %v186_v6 }
  0xd8   :  { %v2465_v5 = vpack.c.bf16 %v1480_v4, %v1478_v52 }
  0xd9   :  { %v1013_v9 = vmax.f32 %v704_v3, 0.0 }
  0xda   :  { %2832 = vst [vmem:[%s4209_s7 + $0x18] sm:$0xff] %v2465_v5   ;;  %v185_v5 = vmul.f32 %v2991_v10, %v53_v59 }
  0xdb   :  { %v2145_v14 = vpack.c.bf16 %v1013_v9, %v1012_v8  ;;  %v249_v8 = vmul.f32 %v2991_v10, %v117_v63  ;;  %v250_v9 = vmul.f32 %v2991_v10, %v118_v1 }
  0xdc   :  { %v863_v15 = vpop.f32.mrf.mxu2  ;;  %v317_v12 = vadd.f32 %v3010_v17, %v185_v5 }
  0xdd   :  { %2769 = vst [vmem:[%s4210_s6 + $0x18] sm:$0xff] %v2145_v14   ;;  %v864_v16 = vadd.f32 %v3213_v0, %v863_v15  ;;  %v1640_v18 = vpop.f32.mrf.mxu3 }
  0xde   :  { %v2625_v23 = vpack.c.bf16 %v1640_v18, %v1638_v62  ;;  %v706_v24 = vpop.f32.mrf.mxu0  ;;  %v382_v18 = vadd.f32 %v3010_v17, %v250_v9 }
  0xdf   :  { %v1077_v28 = vmax.f32 %v864_v16, 0.0  ;;  %v1483_v29 = vpop.f32.mrf.mxu1  ;;  %v707_v38 = vadd.f32 %v3213_v0, %v706_v24  ;;  %v381_v16 = vadd.f32 %v3010_v17, %v249_v8  ;;  %v446_v24 = vmax.f32 %v318_v13, 0.0  ;;  %v58_v13 = vld [vmem:[%s4207_s0 + $0x108] sm:$0xff] }
  0xe0   :  { %2864 = vst [vmem:[%s4209_s7 + $0x118] sm:$0xff] %v2625_v23   ;;  %v445_v23 = vmax.f32 %v317_v12, 0.0  ;;  %v57_v12 = vld [vmem:[%s4207_s0 + $0x100] sm:$0xff] }
  0xe1   :  { %v2305_v32 = vpack.c.bf16 %v1077_v28, %v1076_v27  ;;  %745 = vmatmul.bf16.gmra.mxu0 %v557_v19  ;;  %905 = vmatmul.bf16.gmra.mxu2 %v589_v20  ;;  %v1014_v48 = vmax.f32 %v707_v38, 0.0  ;;  %v509_v27 = vmax.f32 %v381_v16, 0.0  ;;  %v510_v28 = vmax.f32 %v382_v18, 0.0  ;;  %v121_v16 = vld [vmem:[%s4207_s0 + $0x300] sm:$0xff]  ;;  %v122_v18 = vld [vmem:[%s4207_s0 + $0x308] sm:$0xff] }
  0xe2   :  { %1682 = vmatmul.bf16.gmra.mxu3 %v589_v20  ;;  %1522 = vmatmul.bf16.gmra.mxu1 %v557_v19  ;;  %v559_v34 = vpack.c.bf16 %v446_v24, %v445_v23 }
  0xe3   :  { %2801 = vst [vmem:[%s4210_s6 + $0x118] sm:$0xff] %v2305_v32  }
  0xe4   :  { %v866_v35 = vpop.f32.mrf.mxu2 }
  0xe5   :  { %v1643_v39 = vpop.f32.mrf.mxu3  ;;  %v867_v52 = vadd.f32 %v3213_v0, %v866_v35  ;;  %v591_v35 = vpack.c.bf16 %v510_v28, %v509_v27 }
  0xe6   :  { %v708_v42 = vpop.f32.mrf.mxu0 }
  0xe7   :  { %v709_v43 = vadd.f32 %v3213_v0, %v708_v42  ;;  %v1485_v44 = vpop.f32.mrf.mxu1  ;;  %v1078_v2 = vmax.f32 %v867_v52, 0.0  ;;  %v320_v52 = vadd.f32 %v3010_v17, %v188_v46 }
  0xe8   :  { %v2470_v45 = vpack.c.bf16 %v1485_v44, %v1483_v29 }
  0xe9   :  { %v1015_v49 = vmax.f32 %v709_v43, 0.0  ;;  %v448_v63 = vmax.f32 %v320_v52, 0.0  ;;  %v60_v52 = vld [vmem:[%s4207_s0 + $0x118] sm:$0xff] }
  0xea   :  { %2833 = vst [vmem:[%s4209_s7 + $0x20] sm:$0xff] %v2470_v45   ;;  %v187_v45 = vmul.f32 %v2991_v10, %v55_v36 }
  0xeb   :  { %v2150_v53 = vpack.c.bf16 %v1015_v49, %v1014_v48  ;;  %v3431_v48 = vld [vmem:[%s4205_s1] ss:$0 sm:$0xff] }
  0xec   :  { %v868_v54 = vpop.f32.mrf.mxu2  ;;  %v251_v49 = vmul.f32 %v3431_v48, %v119_v40  ;;  %v252_v50 = vmul.f32 %v3431_v48, %v120_v41  ;;  %v319_v10 = vadd.f32 %v3010_v17, %v187_v45  ;;  %v190_v23 = vmul.f32 %v3431_v48, %v58_v13 }
  0xed   :  { %2770 = vst [vmem:[%s4210_s6 + $0x20] sm:$0xff] %v2150_v53   ;;  %v869_v55 = vadd.f32 %v3213_v0, %v868_v54  ;;  %v1645_v56 = vpop.f32.mrf.mxu3 }
  0xee   :  { %v2630_v61 = vpack.c.bf16 %v1645_v56, %v1643_v39  ;;  %v711_v62 = vpop.f32.mrf.mxu0  ;;  %v3445_v56 = vld [vmem:[%s4206_s2] ss:$0 sm:$0xff] }
  0xef   :  { %v1079_v3 = vmax.f32 %v869_v55, 0.0  ;;  %v1488_v4 = vpop.f32.mrf.mxu1  ;;  %v712_v14 = vadd.f32 %v3213_v0, %v711_v62  ;;  %v383_v55 = vadd.f32 %v3010_v17, %v251_v49  ;;  %v447_v62 = vmax.f32 %v319_v10, 0.0  ;;  %v59_v10 = vld [vmem:[%s4207_s0 + $0x110] sm:$0xff] }
  0xf0   :  { %2865 = vst [vmem:[%s4209_s7 + $0x120] sm:$0xff] %v2630_v61  }
  0xf1   :  { %v2310_v7 = vpack.c.bf16 %v1079_v3, %v1078_v2  ;;  %750 = vmatmul.bf16.gmra.mxu0 %v558_v57  ;;  %910 = vmatmul.bf16.gmra.mxu2 %v590_v58  ;;  %v1016_v25 = vmax.f32 %v712_v14, 0.0  ;;  %v511_v3 = vmax.f32 %v383_v55, 0.0  ;;  %v560_v9 = vpack.c.bf16 %v448_v63, %v447_v62  ;;  %v123_v55 = vld [vmem:[%s4207_s0 + $0x310] sm:$0xff] }
  0xf2   :  { %1687 = vmatmul.bf16.gmra.mxu3 %v590_v58  ;;  %1527 = vmatmul.bf16.gmra.mxu1 %v558_v57  ;;  %v384_v57 = vadd.f32 %v3445_v56, %v252_v50  ;;  %v192_v62 = vmul.f32 %v3431_v48, %v60_v52 }
  0xf3   :  { %2802 = vst [vmem:[%s4210_s6 + $0x120] sm:$0xff] %v2310_v7  }
  0xf4   :  { %v871_v11 = vpop.f32.mrf.mxu2 }
  0xf5   :  { %v1648_v15 = vpop.f32.mrf.mxu3  ;;  %v872_v29 = vadd.f32 %v3213_v0, %v871_v11 }
  0xf6   :  { %v713_v19 = vpop.f32.mrf.mxu0 }
  0xf7   :  { %v714_v20 = vadd.f32 %v3213_v0, %v713_v19  ;;  %v1490_v21 = vpop.f32.mrf.mxu1  ;;  %v1080_v42 = vmax.f32 %v872_v29, 0.0  ;;  %v322_v29 = vadd.f32 %v3445_v56, %v190_v23 }
  0xf8   :  { %v2475_v22 = vpack.c.bf16 %v1490_v21, %v1488_v4  ;;  %v512_v4 = vmax.f32 %v384_v57, 0.0  ;;  %v124_v57 = vld [vmem:[%s4207_s0 + $0x318] sm:$0xff] }
  0xf9   :  { %v1017_v26 = vmax.f32 %v714_v20, 0.0 }
  0xfa   :  { %2834 = vst [vmem:[%s4209_s7 + $0x28] sm:$0xff] %v2475_v22   ;;  %v592_v11 = vpack.c.bf16 %v512_v4, %v511_v3  ;;  %v189_v22 = vmul.f32 %v3431_v48, %v57_v12 }
  0xfb   :  { %v2155_v30 = vpack.c.bf16 %v1017_v26, %v1016_v25  ;;  %v253_v25 = vmul.f32 %v3431_v48, %v121_v16  ;;  %v254_v26 = vmul.f32 %v3431_v48, %v122_v18 }
  0xfc   :  { %v873_v31 = vpop.f32.mrf.mxu2  ;;  %v321_v28 = vadd.f32 %v3445_v56, %v189_v22 }
  0xfd   :  { %2771 = vst [vmem:[%s4210_s6 + $0x28] sm:$0xff] %v2155_v30   ;;  %v874_v32 = vadd.f32 %v3213_v0, %v873_v31  ;;  %v1650_v33 = vpop.f32.mrf.mxu3 }
  0xfe   :  { %v2635_v38 = vpack.c.bf16 %v1650_v33, %v1648_v15  ;;  %v716_v39 = vpop.f32.mrf.mxu0  ;;  %v386_v33 = vadd.f32 %v3445_v56, %v254_v26 }
  0xff   :  { %v1081_v43 = vmax.f32 %v874_v32, 0.0  ;;  %v1493_v44 = vpop.f32.mrf.mxu1  ;;  %v717_v53 = vadd.f32 %v3213_v0, %v716_v39  ;;  %v385_v32 = vadd.f32 %v3445_v56, %v253_v25  ;;  %v450_v39 = vmax.f32 %v322_v29, 0.0  ;;  %v62_v29 = vld [vmem:[%s4207_s0 + $0x128] sm:$0xff] }
 0x100   :  { %2866 = vst [vmem:[%s4209_s7 + $0x128] sm:$0xff] %v2635_v38   ;;  %v449_v38 = vmax.f32 %v321_v28, 0.0  ;;  %v61_v28 = vld [vmem:[%s4207_s0 + $0x120] sm:$0xff] }
 0x101   :  { %v2315_v47 = vpack.c.bf16 %v1081_v43, %v1080_v42  ;;  %755 = vmatmul.bf16.gmra.mxu0 %v559_v34  ;;  %915 = vmatmul.bf16.gmra.mxu2 %v591_v35  ;;  %v1018_v1 = vmax.f32 %v717_v53, 0.0  ;;  %v513_v42 = vmax.f32 %v385_v32, 0.0  ;;  %v514_v43 = vmax.f32 %v386_v33, 0.0  ;;  %v125_v32 = vld [vmem:[%s4207_s0 + $0x320] sm:$0xff]  ;;  %v126_v33 = vld [vmem:[%s4207_s0 + $0x328] sm:$0xff] }
 0x102   :  { %1692 = vmatmul.bf16.gmra.mxu3 %v591_v35  ;;  %1532 = vmatmul.bf16.gmra.mxu1 %v559_v34  ;;  %v561_v50 = vpack.c.bf16 %v450_v39, %v449_v38  ;;  %v194_v38 = vmul.f32 %v3431_v48, %v62_v29 }
 0x103   :  { %2803 = vst [vmem:[%s4210_s6 + $0x128] sm:$0xff] %v2315_v47  }
 0x104   :  { %v876_v51 = vpop.f32.mrf.mxu2 }
 0x105   :  { %v1653_v54 = vpop.f32.mrf.mxu3  ;;  %v877_v17 = vadd.f32 %v3213_v0, %v876_v51  ;;  %v593_v51 = vpack.c.bf16 %v514_v43, %v513_v42 }
 0x106   :  { %v718_v58 = vpop.f32.mrf.mxu0 }
 0x107   :  { %v719_v59 = vadd.f32 %v3213_v0, %v718_v58  ;;  %v1495_v60 = vpop.f32.mrf.mxu1  ;;  %v1082_v19 = vmax.f32 %v877_v17, 0.0  ;;  %v324_v17 = vadd.f32 %v3445_v56, %v192_v62 }
 0x108   :  { %v2480_v61 = vpack.c.bf16 %v1495_v60, %v1493_v44 }
 0x109   :  { %v1019_v2 = vmax.f32 %v719_v59, 0.0 }
 0x10a   :  { %2835 = vst [vmem:[%s4209_s7 + $0x30] sm:$0xff] %v2480_v61   ;;  %v191_v61 = vmul.f32 %v3431_v48, %v59_v10 }
 0x10b   :  { %v2160_v5 = vpack.c.bf16 %v1019_v2, %v1018_v1  ;;  %v255_v1 = vmul.f32 %v3431_v48, %v123_v55  ;;  %v256_v2 = vmul.f32 %v3431_v48, %v124_v57 }
 0x10c   :  { %v878_v6 = vpop.f32.mrf.mxu2  ;;  %v323_v4 = vadd.f32 %v3445_v56, %v191_v61 }
 0x10d   :  { %2772 = vst [vmem:[%s4210_s6 + $0x30] sm:$0xff] %v2160_v5   ;;  %v879_v7 = vadd.f32 %v3213_v0, %v878_v6  ;;  %v1655_v8 = vpop.f32.mrf.mxu3 }
 0x10e   :  { %v2640_v14 = vpack.c.bf16 %v1655_v8, %v1653_v54  ;;  %v721_v15 = vpop.f32.mrf.mxu0  ;;  %v388_v8 = vadd.f32 %v3445_v56, %v256_v2 }
 0x10f   :  { %v1083_v20 = vmax.f32 %v879_v7, 0.0  ;;  %v1498_v21 = vpop.f32.mrf.mxu1  ;;  %v722_v30 = vadd.f32 %v3213_v0, %v721_v15  ;;  %v387_v7 = vadd.f32 %v3445_v56, %v255_v1  ;;  %v452_v15 = vmax.f32 %v324_v17, 0.0  ;;  %v64_v17 = vld [vmem:[%s4207_s0 + $0x138] sm:$0xff] }
 0x110   :  { %2867 = vst [vmem:[%s4209_s7 + $0x130] sm:$0xff] %v2640_v14   ;;  %v451_v14 = vmax.f32 %v323_v4, 0.0  ;;  %v63_v4 = vld [vmem:[%s4207_s0 + $0x130] sm:$0xff] }
 0x111   :  { %v2320_v24 = vpack.c.bf16 %v1083_v20, %v1082_v19  ;;  %760 = vmatmul.bf16.gmra.mxu0 %v560_v9  ;;  %920 = vmatmul.bf16.gmra.mxu2 %v592_v11  ;;  %v1020_v40 = vmax.f32 %v722_v30, 0.0  ;;  %v515_v19 = vmax.f32 %v387_v7, 0.0  ;;  %v516_v20 = vmax.f32 %v388_v8, 0.0  ;;  %v127_v7 = vld [vmem:[%s4207_s0 + $0x330] sm:$0xff]  ;;  %v128_v8 = vld [vmem:[%s4207_s0 + $0x338] sm:$0xff] }
 0x112   :  { %1697 = vmatmul.bf16.gmra.mxu3 %v592_v11  ;;  %1537 = vmatmul.bf16.gmra.mxu1 %v560_v9  ;;  %v562_v26 = vpack.c.bf16 %v452_v15, %v451_v14  ;;  %v196_v14 = vmul.f32 %v3431_v48, %v64_v17 }
 0x113   :  { %2804 = vst [vmem:[%s4210_s6 + $0x130] sm:$0xff] %v2320_v24  }
 0x114   :  { %v881_v27 = vpop.f32.mrf.mxu2 }
 0x115   :  { %v1658_v31 = vpop.f32.mrf.mxu3  ;;  %v882_v44 = vadd.f32 %v3213_v0, %v881_v27  ;;  %v594_v27 = vpack.c.bf16 %v516_v20, %v515_v19 }
 0x116   :  { %v723_v34 = vpop.f32.mrf.mxu0 }
 0x117   :  { %v724_v35 = vadd.f32 %v3213_v0, %v723_v34  ;;  %v1500_v36 = vpop.f32.mrf.mxu1  ;;  %v1084_v58 = vmax.f32 %v882_v44, 0.0  ;;  %v326_v44 = vadd.f32 %v3445_v56, %v194_v38 }
 0x118   :  { %v2485_v37 = vpack.c.bf16 %v1500_v36, %v1498_v21 }
 0x119   :  { %v1021_v41 = vmax.f32 %v724_v35, 0.0 }
 0x11a   :  { %2836 = vst [vmem:[%s4209_s7 + $0x38] sm:$0xff] %v2485_v37   ;;  %v193_v37 = vmul.f32 %v3431_v48, %v61_v28 }
 0x11b   :  { %v2165_v45 = vpack.c.bf16 %v1021_v41, %v1020_v40  ;;  %v257_v40 = vmul.f32 %v3431_v48, %v125_v32  ;;  %v258_v41 = vmul.f32 %v3431_v48, %v126_v33 }
 0x11c   :  { %v883_v46 = vpop.f32.mrf.mxu2  ;;  %v325_v43 = vadd.f32 %v3445_v56, %v193_v37 }
 0x11d   :  { %2773 = vst [vmem:[%s4210_s6 + $0x38] sm:$0xff] %v2165_v45   ;;  %v884_v47 = vadd.f32 %v3213_v0, %v883_v46  ;;  %v1660_v49 = vpop.f32.mrf.mxu3 }
 0x11e   :  { %v2645_v53 = vpack.c.bf16 %v1660_v49, %v1658_v31  ;;  %v726_v54 = vpop.f32.mrf.mxu0  ;;  %v390_v49 = vadd.f32 %v3445_v56, %v258_v41 }
 0x11f   :  { %v1085_v59 = vmax.f32 %v884_v47, 0.0  ;;  %v1503_v60 = vpop.f32.mrf.mxu1  ;;  %v727_v5 = vadd.f32 %v3213_v0, %v726_v54  ;;  %v389_v47 = vadd.f32 %v3445_v56, %v257_v40  ;;  %v454_v54 = vmax.f32 %v326_v44, 0.0  ;;  %v66_v44 = vld [vmem:[%s4207_s0 + $0x148] sm:$0xff] }
 0x120   :  { %2868 = vst [vmem:[%s4209_s7 + $0x138] sm:$0xff] %v2645_v53   ;;  %v453_v53 = vmax.f32 %v325_v43, 0.0  ;;  %v65_v43 = vld [vmem:[%s4207_s0 + $0x140] sm:$0xff] }
 0x121   :  { %v2325_v63 = vpack.c.bf16 %v1085_v59, %v1084_v58  ;;  %765 = vmatmul.bf16.gmra.mxu0 %v561_v50  ;;  %925 = vmatmul.bf16.gmra.mxu2 %v593_v51  ;;  %v1022_v16 = vmax.f32 %v727_v5, 0.0  ;;  %v517_v58 = vmax.f32 %v389_v47, 0.0  ;;  %v518_v59 = vmax.f32 %v390_v49, 0.0  ;;  %v129_v47 = vld [vmem:[%s4207_s0 + $0x340] sm:$0xff] }
 0x122   :  { %1702 = vmatmul.bf16.gmra.mxu3 %v593_v51  ;;  %1542 = vmatmul.bf16.gmra.mxu1 %v561_v50  ;;  %v563_v2 = vpack.c.bf16 %v454_v54, %v453_v53  ;;  %v261_v54 = vmul.f32 %v3431_v48, %v129_v47 }
 0x123   :  { %2805 = vst [vmem:[%s4210_s6 + $0x138] sm:$0xff] %v2325_v63  }
 0x124   :  { %v886_v3 = vpop.f32.mrf.mxu2 }
 0x125   :  { %v1663_v6 = vpop.f32.mrf.mxu3  ;;  %v887_v21 = vadd.f32 %v3213_v0, %v886_v3  ;;  %v595_v3 = vpack.c.bf16 %v518_v59, %v517_v58 }
 0x126   :  { %v728_v9 = vpop.f32.mrf.mxu0 }
 0x127   :  { %v729_v11 = vadd.f32 %v3213_v0, %v728_v9  ;;  %v1505_v12 = vpop.f32.mrf.mxu1  ;;  %v1086_v34 = vmax.f32 %v887_v21, 0.0  ;;  %v328_v21 = vadd.f32 %v3445_v56, %v196_v14 }
 0x128   :  { %v2490_v13 = vpack.c.bf16 %v1505_v12, %v1503_v60 }
 0x129   :  { %v1023_v18 = vmax.f32 %v729_v11, 0.0 }
 0x12a   :  { %2837 = vst [vmem:[%s4209_s7 + $0x40] sm:$0xff] %v2490_v13   ;;  %v195_v13 = vmul.f32 %v3431_v48, %v63_v4 }
 0x12b   :  { %v2170_v22 = vpack.c.bf16 %v1023_v18, %v1022_v16  ;;  %v259_v16 = vmul.f32 %v3431_v48, %v127_v7  ;;  %v260_v18 = vmul.f32 %v3431_v48, %v128_v8 }
 0x12c   :  { %v888_v23 = vpop.f32.mrf.mxu2  ;;  %v327_v20 = vadd.f32 %v3445_v56, %v195_v13 }
 0x12d   :  { %2774 = vst [vmem:[%s4210_s6 + $0x40] sm:$0xff] %v2170_v22   ;;  %v889_v24 = vadd.f32 %v3213_v0, %v888_v23  ;;  %v1665_v25 = vpop.f32.mrf.mxu3 }
 0x12e   :  { %v2650_v30 = vpack.c.bf16 %v1665_v25, %v1663_v6  ;;  %v731_v31 = vpop.f32.mrf.mxu0  ;;  %v392_v25 = vadd.f32 %v3445_v56, %v260_v18 }
 0x12f   :  { %v1087_v35 = vmax.f32 %v889_v24, 0.0  ;;  %v1508_v36 = vpop.f32.mrf.mxu1  ;;  %v732_v45 = vadd.f32 %v3213_v0, %v731_v31  ;;  %v391_v24 = vadd.f32 %v3445_v56, %v259_v16  ;;  %v456_v31 = vmax.f32 %v328_v21, 0.0  ;;  %v68_v21 = vld [vmem:[%s4207_s0 + $0x158] sm:$0xff] }
 0x130   :  { %2869 = vst [vmem:[%s4209_s7 + $0x140] sm:$0xff] %v2650_v30   ;;  %v455_v30 = vmax.f32 %v327_v20, 0.0  ;;  %v67_v20 = vld [vmem:[%s4207_s0 + $0x150] sm:$0xff] }
 0x131   :  { %v2330_v39 = vpack.c.bf16 %v1087_v35, %v1086_v34  ;;  %770 = vmatmul.bf16.gmra.mxu0 %v562_v26  ;;  %930 = vmatmul.bf16.gmra.mxu2 %v594_v27  ;;  %v1024_v55 = vmax.f32 %v732_v45, 0.0  ;;  %v519_v34 = vmax.f32 %v391_v24, 0.0  ;;  %v520_v35 = vmax.f32 %v392_v25, 0.0  ;;  %v131_v24 = vld [vmem:[%s4207_s0 + $0x350] sm:$0xff]  ;;  %v132_v25 = vld [vmem:[%s4207_s0 + $0x358] sm:$0xff] }
 0x132   :  { %1707 = vmatmul.bf16.gmra.mxu3 %v594_v27  ;;  %1547 = vmatmul.bf16.gmra.mxu1 %v562_v26  ;;  %v564_v41 = vpack.c.bf16 %v456_v31, %v455_v30  ;;  %v200_v30 = vmul.f32 %v3431_v48, %v68_v21 }
 0x133   :  { %2806 = vst [vmem:[%s4210_s6 + $0x140] sm:$0xff] %v2330_v39  }
 0x134   :  { %v891_v42 = vpop.f32.mrf.mxu2 }
 0x135   :  { %v1668_v46 = vpop.f32.mrf.mxu3  ;;  %v892_v60 = vadd.f32 %v3213_v0, %v891_v42  ;;  %v596_v42 = vpack.c.bf16 %v520_v35, %v519_v34 }
 0x136   :  { %v733_v50 = vpop.f32.mrf.mxu0 }
 0x137   :  { %v734_v51 = vadd.f32 %v3213_v0, %v733_v50  ;;  %v1510_v10 = vpop.f32.mrf.mxu1  ;;  %v1088_v9 = vmax.f32 %v892_v60, 0.0  ;;  %v3628_v60 = vld [vmem:[%s4208_s4] ss:$0 sm:$0xff] }
 0x138   :  { %v2495_v52 = vpack.c.bf16 %v1510_v10, %v1508_v36  ;;  %v197_v10 = vmul.f32 %v3431_v48, %v65_v43 }
 0x139   :  { %v1025_v57 = vmax.f32 %v734_v51, 0.0 }
 0x13a   :  { %2838 = vst [vmem:[%s4209_s7 + $0x48] sm:$0xff] %v2495_v52   ;;  %v198_v52 = vmul.f32 %v3431_v48, %v66_v44  ;;  %v329_v58 = vadd.f32 %v3445_v56, %v197_v10 }
 0x13b   :  { %v2175_v61 = vpack.c.bf16 %v1025_v57, %v1024_v55 }
 0x13c   :  { %v893_v62 = vpop.f32.mrf.mxu2  ;;  %v330_v59 = vadd.f32 %v3445_v56, %v198_v52 }
 0x13d   :  { %2775 = vst [vmem:[%s4210_s6 + $0x48] sm:$0xff] %v2175_v61   ;;  %v894_v63 = vadd.f32 %v3213_v0, %v893_v62  ;;  %v1670_v1 = vpop.f32.mrf.mxu3 }
 0x13e   :  { %v2655_v5 = vpack.c.bf16 %v1670_v1, %v1668_v46  ;;  %v736_v6 = vpop.f32.mrf.mxu0 }
 0x13f   :  { %v1089_v11 = vmax.f32 %v894_v63, 0.0  ;;  %v1513_v12 = vpop.f32.mrf.mxu1  ;;  %v737_v22 = vadd.f32 %v3213_v0, %v736_v6  ;;  %v393_v63 = vadd.f32 %v3445_v56, %v261_v54  ;;  %v458_v6 = vmax.f32 %v330_v59, 0.0  ;;  %v70_v59 = vld [vmem:[%s4207_s0 + $0x168] sm:$0xff] }
 0x140   :  { %2870 = vst [vmem:[%s4209_s7 + $0x148] sm:$0xff] %v2655_v5   ;;  %v457_v5 = vmax.f32 %v329_v58, 0.0  ;;  %v69_v58 = vld [vmem:[%s4207_s0 + $0x160] sm:$0xff] }
 0x141   :  { %v2335_v15 = vpack.c.bf16 %v1089_v11, %v1088_v9  ;;  %775 = vmatmul.bf16.gmra.mxu0 %v563_v2  ;;  %935 = vmatmul.bf16.gmra.mxu2 %v595_v3  ;;  %v1026_v32 = vmax.f32 %v737_v22, 0.0  ;;  %v521_v9 = vmax.f32 %v393_v63, 0.0  ;;  %v133_v63 = vld [vmem:[%s4207_s0 + $0x360] sm:$0xff] }
 0x142   :  { %1712 = vmatmul.bf16.gmra.mxu3 %v595_v3  ;;  %1552 = vmatmul.bf16.gmra.mxu1 %v563_v2  ;;  %v565_v18 = vpack.c.bf16 %v458_v6, %v457_v5  ;;  %v202_v5 = vmul.f32 %v3431_v48, %v70_v59 }
 0x143   :  { %2807 = vst [vmem:[%s4210_s6 + $0x148] sm:$0xff] %v2335_v15  }
 0x144   :  { %v896_v19 = vpop.f32.mrf.mxu2 }
 0x145   :  { %v1673_v23 = vpop.f32.mrf.mxu3  ;;  %v897_v36 = vadd.f32 %v3213_v0, %v896_v19 }
 0x146   :  { %v738_v26 = vpop.f32.mrf.mxu0 }
 0x147   :  { %v739_v27 = vadd.f32 %v3213_v0, %v738_v26  ;;  %v1515_v28 = vpop.f32.mrf.mxu1  ;;  %v1090_v49 = vmax.f32 %v897_v36, 0.0  ;;  %v332_v36 = vadd.f32 %v3445_v56, %v200_v30 }
 0x148   :  { %v2500_v29 = vpack.c.bf16 %v1515_v28, %v1513_v12 }
 0x149   :  { %v1027_v33 = vmax.f32 %v739_v27, 0.0 }
 0x14a   :  { %2839 = vst [vmem:[%s4209_s7 + $0x50] sm:$0xff] %v2500_v29   ;;  %v199_v29 = vmul.f32 %v3431_v48, %v67_v20 }
 0x14b   :  { %v2180_v37 = vpack.c.bf16 %v1027_v33, %v1026_v32  ;;  %v263_v32 = vmul.f32 %v3431_v48, %v131_v24  ;;  %v264_v33 = vmul.f32 %v3431_v48, %v132_v25 }
 0x14c   :  { %v898_v38 = vpop.f32.mrf.mxu2  ;;  %v331_v35 = vadd.f32 %v3445_v56, %v199_v29 }
 0x14d   :  { %2776 = vst [vmem:[%s4210_s6 + $0x50] sm:$0xff] %v2180_v37   ;;  %v899_v39 = vadd.f32 %v3213_v0, %v898_v38  ;;  %v1675_v40 = vpop.f32.mrf.mxu3  ;;  %v130_v0 = vld [vmem:[%s4207_s0 + $0x348] sm:$0xff] }
 0x14e   :  { %v2660_v45 = vpack.c.bf16 %v1675_v40, %v1673_v23  ;;  %v741_v46 = vpop.f32.mrf.mxu0  ;;  %v262_v55 = vmul.f32 %v3431_v48, %v130_v0  ;;  %v396_v40 = vadd.f32 %v3445_v56, %v264_v33 }
 0x14f   :  { %v1091_v50 = vmax.f32 %v899_v39, 0.0  ;;  %v1518_v51 = vpop.f32.mrf.mxu1  ;;  %v742_v61 = vadd.f32 %v3628_v60, %v741_v46  ;;  %v395_v39 = vadd.f32 %v3445_v56, %v263_v32  ;;  %v460_v46 = vmax.f32 %v332_v36, 0.0  ;;  %v72_v36 = vld [vmem:[%s4207_s0 + $0x178] sm:$0xff] }
 0x150   :  { %2871 = vst [vmem:[%s4209_s7 + $0x150] sm:$0xff] %v2660_v45   ;;  %v394_v1 = vadd.f32 %v3445_v56, %v262_v55  ;;  %v459_v45 = vmax.f32 %v331_v35, 0.0  ;;  %v71_v35 = vld [vmem:[%s4207_s0 + $0x170] sm:$0xff] }
 0x151   :  { %v2340_v53 = vpack.c.bf16 %v1091_v50, %v1090_v49  ;;  %780 = vmatmul.bf16.gmra.mxu0 %v564_v41  ;;  %940 = vmatmul.bf16.gmra.mxu2 %v596_v42  ;;  %v1028_v7 = vmax.f32 %v742_v61, 0.0  ;;  %v523_v49 = vmax.f32 %v395_v39, 0.0  ;;  %v524_v50 = vmax.f32 %v396_v40, 0.0  ;;  %v135_v39 = vld [vmem:[%s4207_s0 + $0x370] sm:$0xff]  ;;  %v136_v40 = vld [vmem:[%s4207_s0 + $0x378] sm:$0xff] }
 0x152   :  { %1717 = vmatmul.bf16.gmra.mxu3 %v596_v42  ;;  %1557 = vmatmul.bf16.gmra.mxu1 %v564_v41  ;;  %v522_v11 = vmax.f32 %v394_v1, 0.0  ;;  %v566_v55 = vpack.c.bf16 %v460_v46, %v459_v45  ;;  %v134_v1 = vld [vmem:[%s4207_s0 + $0x368] sm:$0xff]  ;;  %v204_v45 = vmul.f32 %v3431_v48, %v72_v36 }
 0x153   :  { %2808 = vst [vmem:[%s4210_s6 + $0x150] sm:$0xff] %v2340_v53  }
 0x154   :  { %v901_v57 = vpop.f32.mrf.mxu2  ;;  %v597_v19 = vpack.c.bf16 %v522_v11, %v521_v9 }
 0x155   :  { %v1678_v62 = vpop.f32.mrf.mxu3  ;;  %v902_v12 = vadd.f32 %v3628_v60, %v901_v57  ;;  %v598_v57 = vpack.c.bf16 %v524_v50, %v523_v49 }
 0x156   :  { %v743_v2 = vpop.f32.mrf.mxu0 }
 0x157   :  { %v744_v3 = vadd.f32 %v3628_v60, %v743_v2  ;;  %v1520_v4 = vpop.f32.mrf.mxu1  ;;  %v1092_v26 = vmax.f32 %v902_v12, 0.0  ;;  %v334_v12 = vadd.f32 %v3445_v56, %v202_v5 }
 0x158   :  { %v2505_v17 = vpack.c.bf16 %v1520_v4, %v1518_v51 }
 0x159   :  { %v1029_v8 = vmax.f32 %v744_v3, 0.0 }
 0x15a   :  { %2840 = vst [vmem:[%s4209_s7 + $0x58] sm:$0xff] %v2505_v17   ;;  %v201_v17 = vmul.f32 %v3431_v48, %v69_v58 }
 0x15b   :  { %v2185_v13 = vpack.c.bf16 %v1029_v8, %v1028_v7  ;;  %v265_v7 = vmul.f32 %v3431_v48, %v133_v63  ;;  %v266_v8 = vmul.f32 %v3431_v48, %v134_v1 }
 0x15c   :  { %v903_v14 = vpop.f32.mrf.mxu2  ;;  %v333_v11 = vadd.f32 %v3445_v56, %v201_v17 }
 0x15d   :  { %2777 = vst [vmem:[%s4210_s6 + $0x58] sm:$0xff] %v2185_v13   ;;  %v904_v15 = vadd.f32 %v3628_v60, %v903_v14  ;;  %v1680_v16 = vpop.f32.mrf.mxu3 }
 0x15e   :  { %v2665_v22 = vpack.c.bf16 %v1680_v16, %v1678_v62  ;;  %v746_v23 = vpop.f32.mrf.mxu0  ;;  %v398_v16 = vadd.f32 %v3445_v56, %v266_v8 }
 0x15f   :  { %v1093_v27 = vmax.f32 %v904_v15, 0.0  ;;  %v1523_v28 = vpop.f32.mrf.mxu1  ;;  %v747_v37 = vadd.f32 %v3628_v60, %v746_v23  ;;  %v397_v15 = vadd.f32 %v3445_v56, %v265_v7  ;;  %v462_v23 = vmax.f32 %v334_v12, 0.0  ;;  %v74_v12 = vld [vmem:[%s4207_s0 + $0x188] sm:$0xff] }
 0x160   :  { %2872 = vst [vmem:[%s4209_s7 + $0x158] sm:$0xff] %v2665_v22   ;;  %v461_v22 = vmax.f32 %v333_v11, 0.0  ;;  %v73_v11 = vld [vmem:[%s4207_s0 + $0x180] sm:$0xff] }
 0x161   :  { %v2345_v31 = vpack.c.bf16 %v1093_v27, %v1092_v26  ;;  %785 = vmatmul.bf16.gmra.mxu0 %v565_v18  ;;  %945 = vmatmul.bf16.gmra.mxu2 %v597_v19  ;;  %v1030_v47 = vmax.f32 %v747_v37, 0.0  ;;  %v525_v26 = vmax.f32 %v397_v15, 0.0  ;;  %v526_v27 = vmax.f32 %v398_v16, 0.0  ;;  %v137_v15 = vld [vmem:[%s4207_s0 + $0x380] sm:$0xff]  ;;  %v138_v16 = vld [vmem:[%s4207_s0 + $0x388] sm:$0xff] }
 0x162   :  { %1722 = vmatmul.bf16.gmra.mxu3 %v597_v19  ;;  %1562 = vmatmul.bf16.gmra.mxu1 %v565_v18  ;;  %v567_v33 = vpack.c.bf16 %v462_v23, %v461_v22  ;;  %v206_v22 = vmul.f32 %v3431_v48, %v74_v12 }
 0x163   :  { %2809 = vst [vmem:[%s4210_s6 + $0x158] sm:$0xff] %v2345_v31  }
 0x164   :  { %v906_v34 = vpop.f32.mrf.mxu2 }
 0x165   :  { %v1683_v38 = vpop.f32.mrf.mxu3  ;;  %v907_v51 = vadd.f32 %v3628_v60, %v906_v34  ;;  %v599_v34 = vpack.c.bf16 %v526_v27, %v525_v26 }
 0x166   :  { %v748_v41 = vpop.f32.mrf.mxu0 }
 0x167   :  { %v749_v42 = vadd.f32 %v3628_v60, %v748_v41  ;;  %v1525_v43 = vpop.f32.mrf.mxu1  ;;  %v1094_v2 = vmax.f32 %v907_v51, 0.0  ;;  %v336_v51 = vadd.f32 %v3445_v56, %v204_v45 }
 0x168   :  { %v2510_v44 = vpack.c.bf16 %v1525_v43, %v1523_v28 }
 0x169   :  { %v1031_v0 = vmax.f32 %v749_v42, 0.0 }
 0x16a   :  { %2841 = vst [vmem:[%s4209_s7 + $0x60] sm:$0xff] %v2510_v44   ;;  %v203_v44 = vmul.f32 %v3431_v48, %v71_v35 }
 0x16b   :  { %v2190_v10 = vpack.c.bf16 %v1031_v0, %v1030_v47  ;;  %v267_v47 = vmul.f32 %v3431_v48, %v135_v39  ;;  %v268_v0 = vmul.f32 %v3431_v48, %v136_v40 }
 0x16c   :  { %v908_v52 = vpop.f32.mrf.mxu2  ;;  %v335_v50 = vadd.f32 %v3445_v56, %v203_v44 }
 0x16d   :  { %2778 = vst [vmem:[%s4210_s6 + $0x60] sm:$0xff] %v2190_v10   ;;  %v909_v53 = vadd.f32 %v3628_v60, %v908_v52  ;;  %v1685_v54 = vpop.f32.mrf.mxu3 }
 0x16e   :  { %v2670_v61 = vpack.c.bf16 %v1685_v54, %v1683_v38  ;;  %v751_v62 = vpop.f32.mrf.mxu0  ;;  %v400_v54 = vadd.f32 %v3445_v56, %v268_v0 }
 0x16f   :  { %v1095_v3 = vmax.f32 %v909_v53, 0.0  ;;  %v1528_v4 = vpop.f32.mrf.mxu1  ;;  %v752_v13 = vadd.f32 %v3628_v60, %v751_v62  ;;  %v399_v53 = vadd.f32 %v3445_v56, %v267_v47  ;;  %v464_v62 = vmax.f32 %v336_v51, 0.0  ;;  %v76_v51 = vld [vmem:[%s4207_s0 + $0x198] sm:$0xff] }
 0x170   :  { %2873 = vst [vmem:[%s4209_s7 + $0x160] sm:$0xff] %v2670_v61   ;;  %v463_v61 = vmax.f32 %v335_v50, 0.0  ;;  %v75_v50 = vld [vmem:[%s4207_s0 + $0x190] sm:$0xff] }
 0x171   :  { %v2350_v6 = vpack.c.bf16 %v1095_v3, %v1094_v2  ;;  %790 = vmatmul.bf16.gmra.mxu0 %v566_v55  ;;  %950 = vmatmul.bf16.gmra.mxu2 %v598_v57  ;;  %v1032_v24 = vmax.f32 %v752_v13, 0.0  ;;  %v527_v2 = vmax.f32 %v399_v53, 0.0  ;;  %v528_v3 = vmax.f32 %v400_v54, 0.0  ;;  %v139_v53 = vld [vmem:[%s4207_s0 + $0x390] sm:$0xff]  ;;  %v140_v54 = vld [vmem:[%s4207_s0 + $0x398] sm:$0xff] }
 0x172   :  { %1727 = vmatmul.bf16.gmra.mxu3 %v598_v57  ;;  %1567 = vmatmul.bf16.gmra.mxu1 %v566_v55  ;;  %v568_v8 = vpack.c.bf16 %v464_v62, %v463_v61  ;;  %v208_v61 = vmul.f32 %v3431_v48, %v76_v51 }
 0x173   :  { %2810 = vst [vmem:[%s4210_s6 + $0x160] sm:$0xff] %v2350_v6  }
 0x174   :  { %v911_v9 = vpop.f32.mrf.mxu2 }
 0x175   :  { %v1688_v14 = vpop.f32.mrf.mxu3  ;;  %v912_v28 = vadd.f32 %v3628_v60, %v911_v9  ;;  %v600_v9 = vpack.c.bf16 %v528_v3, %v527_v2 }
 0x176   :  { %v753_v18 = vpop.f32.mrf.mxu0 }
 0x177   :  { %v754_v19 = vadd.f32 %v3628_v60, %v753_v18  ;;  %v1530_v20 = vpop.f32.mrf.mxu1  ;;  %v1096_v41 = vmax.f32 %v912_v28, 0.0  ;;  %v338_v28 = vadd.f32 %v3445_v56, %v206_v22 }
 0x178   :  { %v2515_v21 = vpack.c.bf16 %v1530_v20, %v1528_v4 }
 0x179   :  { %v1033_v25 = vmax.f32 %v754_v19, 0.0 }
 0x17a   :  { %2842 = vst [vmem:[%s4209_s7 + $0x68] sm:$0xff] %v2515_v21   ;;  %v205_v21 = vmul.f32 %v3431_v48, %v73_v11 }
 0x17b   :  { %v2195_v29 = vpack.c.bf16 %v1033_v25, %v1032_v24  ;;  %v269_v24 = vmul.f32 %v3431_v48, %v137_v15  ;;  %v270_v25 = vmul.f32 %v3431_v48, %v138_v16 }
 0x17c   :  { %v913_v30 = vpop.f32.mrf.mxu2  ;;  %v337_v27 = vadd.f32 %v3445_v56, %v205_v21 }
 0x17d   :  { %2779 = vst [vmem:[%s4210_s6 + $0x68] sm:$0xff] %v2195_v29   ;;  %v914_v31 = vadd.f32 %v3628_v60, %v913_v30  ;;  %v1690_v32 = vpop.f32.mrf.mxu3 }
 0x17e   :  { %v2675_v37 = vpack.c.bf16 %v1690_v32, %v1688_v14  ;;  %v756_v38 = vpop.f32.mrf.mxu0  ;;  %v402_v32 = vadd.f32 %v3445_v56, %v270_v25 }
 0x17f   :  { %v1097_v42 = vmax.f32 %v914_v31, 0.0  ;;  %v1533_v43 = vpop.f32.mrf.mxu1  ;;  %v757_v10 = vadd.f32 %v3628_v60, %v756_v38  ;;  %v401_v31 = vadd.f32 %v3445_v56, %v269_v24  ;;  %v466_v38 = vmax.f32 %v338_v28, 0.0  ;;  %v78_v28 = vld [vmem:[%s4207_s0 + $0x1a8] sm:$0xff] }
 0x180   :  { %2874 = vst [vmem:[%s4209_s7 + $0x168] sm:$0xff] %v2675_v37   ;;  %v465_v37 = vmax.f32 %v337_v27, 0.0  ;;  %v77_v27 = vld [vmem:[%s4207_s0 + $0x1a0] sm:$0xff] }
 0x181   :  { %v2355_v46 = vpack.c.bf16 %v1097_v42, %v1096_v41  ;;  %795 = vmatmul.bf16.gmra.mxu0 %v567_v33  ;;  %955 = vmatmul.bf16.gmra.mxu2 %v599_v34  ;;  %v1034_v63 = vmax.f32 %v757_v10, 0.0  ;;  %v529_v41 = vmax.f32 %v401_v31, 0.0  ;;  %v530_v42 = vmax.f32 %v402_v32, 0.0  ;;  %v141_v31 = vld [vmem:[%s4207_s0 + $0x3a0] sm:$0xff]  ;;  %v142_v32 = vld [vmem:[%s4207_s0 + $0x3a8] sm:$0xff] }
 0x182   :  { %1732 = vmatmul.bf16.gmra.mxu3 %v599_v34  ;;  %1572 = vmatmul.bf16.gmra.mxu1 %v567_v33  ;;  %v569_v0 = vpack.c.bf16 %v466_v38, %v465_v37  ;;  %v210_v37 = vmul.f32 %v3431_v48, %v78_v28 }
 0x183   :  { %2811 = vst [vmem:[%s4210_s6 + $0x168] sm:$0xff] %v2355_v46  }
 0x184   :  { %v916_v49 = vpop.f32.mrf.mxu2 }
 0x185   :  { %v1693_v52 = vpop.f32.mrf.mxu3  ;;  %v917_v4 = vadd.f32 %v3628_v60, %v916_v49  ;;  %v601_v49 = vpack.c.bf16 %v530_v42, %v529_v41 }
 0x186   :  { %v758_v55 = vpop.f32.mrf.mxu0 }
 0x187   :  { %v759_v57 = vadd.f32 %v3628_v60, %v758_v55  ;;  %v1535_v58 = vpop.f32.mrf.mxu1  ;;  %v1098_v18 = vmax.f32 %v917_v4, 0.0  ;;  %v340_v4 = vadd.f32 %v3445_v56, %v208_v61 }
 0x188   :  { %v2520_v59 = vpack.c.bf16 %v1535_v58, %v1533_v43 }
 0x189   :  { %v1035_v1 = vmax.f32 %v759_v57, 0.0 }
 0x18a   :  { %2843 = vst [vmem:[%s4209_s7 + $0x70] sm:$0xff] %v2520_v59   ;;  %v207_v59 = vmul.f32 %v3431_v48, %v75_v50 }
 0x18b   :  { %v2200_v17 = vpack.c.bf16 %v1035_v1, %v1034_v63  ;;  %v271_v63 = vmul.f32 %v3431_v48, %v139_v53  ;;  %v272_v1 = vmul.f32 %v3431_v48, %v140_v54 }
 0x18c   :  { %v918_v5 = vpop.f32.mrf.mxu2  ;;  %v339_v3 = vadd.f32 %v3445_v56, %v207_v59 }
 0x18d   :  { %2780 = vst [vmem:[%s4210_s6 + $0x70] sm:$0xff] %v2200_v17   ;;  %v919_v6 = vadd.f32 %v3628_v60, %v918_v5  ;;  %v1695_v7 = vpop.f32.mrf.mxu3 }
 0x18e   :  { %v2680_v13 = vpack.c.bf16 %v1695_v7, %v1693_v52  ;;  %v761_v14 = vpop.f32.mrf.mxu0  ;;  %v404_v7 = vadd.f32 %v3445_v56, %v272_v1  ;;  %v79_v1 = vld [vmem:[%s4207_s0 + $0x1b0] sm:$0xff] }
 0x18f   :  { %v1099_v19 = vmax.f32 %v919_v6, 0.0  ;;  %v1538_v20 = vpop.f32.mrf.mxu1  ;;  %v762_v29 = vadd.f32 %v3628_v60, %v761_v14  ;;  %v403_v6 = vadd.f32 %v3445_v56, %v271_v63  ;;  %v468_v14 = vmax.f32 %v340_v4, 0.0 }
 0x190   :  { %2875 = vst [vmem:[%s4209_s7 + $0x170] sm:$0xff] %v2680_v13   ;;  %v467_v13 = vmax.f32 %v339_v3, 0.0 }
 0x191   :  { %v2360_v23 = vpack.c.bf16 %v1099_v19, %v1098_v18  ;;  %800 = vmatmul.bf16.gmra.mxu0 %v568_v8  ;;  %960 = vmatmul.bf16.gmra.mxu2 %v600_v9  ;;  %v1036_v39 = vmax.f32 %v762_v29, 0.0  ;;  %v531_v18 = vmax.f32 %v403_v6, 0.0  ;;  %v532_v19 = vmax.f32 %v404_v7, 0.0 }
 0x192   :  { %1737 = vmatmul.bf16.gmra.mxu3 %v600_v9  ;;  %1577 = vmatmul.bf16.gmra.mxu1 %v568_v8  ;;  %v570_v25 = vpack.c.bf16 %v468_v14, %v467_v13 }
 0x193   :  { %2812 = vst [vmem:[%s4210_s6 + $0x170] sm:$0xff] %v2360_v23  }
 0x194   :  { %v921_v26 = vpop.f32.mrf.mxu2 }
 0x195   :  { %v1698_v30 = vpop.f32.mrf.mxu3  ;;  %v922_v43 = vadd.f32 %v3628_v60, %v921_v26  ;;  %v602_v26 = vpack.c.bf16 %v532_v19, %v531_v18  ;;  %v3888_v18 = vld [vmem:[%s4206_s2] ss:$0 sm:$0xff] }
 0x196   :  { %v763_v33 = vpop.f32.mrf.mxu0 }
 0x197   :  { %v764_v34 = vadd.f32 %v3628_v60, %v763_v33  ;;  %v1540_v35 = vpop.f32.mrf.mxu1  ;;  %v1100_v55 = vmax.f32 %v922_v43, 0.0  ;;  %v342_v43 = vadd.f32 %v3445_v56, %v210_v37 }
 0x198   :  { %v2525_v36 = vpack.c.bf16 %v1540_v35, %v1538_v20 }
 0x199   :  { %v1037_v40 = vmax.f32 %v764_v34, 0.0 }
 0x19a   :  { %2844 = vst [vmem:[%s4209_s7 + $0x78] sm:$0xff] %v2525_v36   ;;  %v209_v36 = vmul.f32 %v3431_v48, %v77_v27 }
 0x19b   :  { %v2205_v44 = vpack.c.bf16 %v1037_v40, %v1036_v39  ;;  %v273_v39 = vmul.f32 %v3431_v48, %v141_v31  ;;  %v274_v40 = vmul.f32 %v3431_v48, %v142_v32 }
 0x19c   :  { %v923_v45 = vpop.f32.mrf.mxu2  ;;  %v341_v42 = vadd.f32 %v3445_v56, %v209_v36 }
 0x19d   :  { %2781 = vst [vmem:[%s4210_s6 + $0x78] sm:$0xff] %v2205_v44   ;;  %v924_v46 = vadd.f32 %v3628_v60, %v923_v45  ;;  %v1700_v47 = vpop.f32.mrf.mxu3 }
 0x19e   :  { %v2685_v10 = vpack.c.bf16 %v1700_v47, %v1698_v30  ;;  %v766_v52 = vpop.f32.mrf.mxu0  ;;  %v406_v47 = vadd.f32 %v3445_v56, %v274_v40  ;;  %v469_v51 = vmax.f32 %v341_v42, 0.0  ;;  %v81_v42 = vld [vmem:[%s4207_s0 + $0x1c0] sm:$0xff] }
 0x19f   :  { %v1101_v57 = vmax.f32 %v924_v46, 0.0  ;;  %v1543_v58 = vpop.f32.mrf.mxu1  ;;  %v767_v17 = vadd.f32 %v3628_v60, %v766_v52  ;;  %v405_v46 = vadd.f32 %v3445_v56, %v273_v39 }
 0x1a0   :  { %2876 = vst [vmem:[%s4209_s7 + $0x178] sm:$0xff] %v2685_v10   ;;  %v470_v10 = vmax.f32 %v342_v43, 0.0  ;;  %v82_v43 = vld [vmem:[%s4207_s0 + $0x1c8] sm:$0xff] }
 0x1a1   :  { %v2365_v62 = vpack.c.bf16 %v1101_v57, %v1100_v55  ;;  %805 = vmatmul.bf16.gmra.mxu0 %v569_v0  ;;  %965 = vmatmul.bf16.gmra.mxu2 %v601_v49  ;;  %v1038_v15 = vmax.f32 %v767_v17, 0.0  ;;  %v533_v54 = vmax.f32 %v405_v46, 0.0  ;;  %v534_v55 = vmax.f32 %v406_v47, 0.0  ;;  %v143_v17 = vld [vmem:[%s4207_s0 + $0x3b0] sm:$0xff]  ;;  %v145_v46 = vld [vmem:[%s4207_s0 + $0x3c0] sm:$0xff]  ;;  %v146_v47 = vld [vmem:[%s4207_s0 + $0x3c8] sm:$0xff] }
 0x1a2   :  { %1742 = vmatmul.bf16.gmra.mxu3 %v601_v49  ;;  %1582 = vmatmul.bf16.gmra.mxu1 %v569_v0 }
 0x1a3   :  { %2813 = vst [vmem:[%s4210_s6 + $0x178] sm:$0xff] %v2365_v62   ;;  %v571_v62 = vpack.c.bf16 %v470_v10, %v469_v51  ;;  %v603_v63 = vpack.c.bf16 %v534_v55, %v533_v54 }
 0x1a4   :  { %v926_v2 = vpop.f32.mrf.mxu2 }
 0x1a5   :  { %v1703_v5 = vpop.f32.mrf.mxu3  ;;  %v927_v20 = vadd.f32 %v3628_v60, %v926_v2  ;;  %v80_v2 = vld [vmem:[%s4207_s0 + $0x1b8] sm:$0xff] }
 0x1a6   :  { %v768_v8 = vpop.f32.mrf.mxu0 }
 0x1a7   :  { %v769_v9 = vadd.f32 %v3628_v60, %v768_v8  ;;  %v1545_v11 = vpop.f32.mrf.mxu1  ;;  %v1102_v33 = vmax.f32 %v927_v20, 0.0 }
 0x1a8   :  { %v2530_v12 = vpack.c.bf16 %v1545_v11, %v1543_v58 }
 0x1a9   :  { %v1039_v16 = vmax.f32 %v769_v9, 0.0  ;;  %v3876_v9 = vld [vmem:[%s4205_s1] ss:$0 sm:$0xff] }
 0x1aa   :  { %2845 = vst [vmem:[%s4209_s7 + $0x80] sm:$0xff] %v2530_v12   ;;  %v211_v11 = vmul.f32 %v3876_v9, %v79_v1  ;;  %v212_v12 = vmul.f32 %v3876_v9, %v80_v2  ;;  %v275_v14 = vmul.f32 %v3876_v9, %v143_v17  ;;  %v214_v51 = vmul.f32 %v3876_v9, %v82_v43 }
 0x1ab   :  { %v2210_v21 = vpack.c.bf16 %v1039_v16, %v1038_v15 }
 0x1ac   :  { %v928_v22 = vpop.f32.mrf.mxu2  ;;  %v343_v19 = vadd.f32 %v3888_v18, %v211_v11  ;;  %v344_v20 = vadd.f32 %v3888_v18, %v212_v12 }
 0x1ad   :  { %2782 = vst [vmem:[%s4210_s6 + $0x80] sm:$0xff] %v2210_v21   ;;  %v929_v23 = vadd.f32 %v3628_v60, %v928_v22  ;;  %v1705_v24 = vpop.f32.mrf.mxu3 }
 0x1ae   :  { %v2690_v29 = vpack.c.bf16 %v1705_v24, %v1703_v5  ;;  %v771_v30 = vpop.f32.mrf.mxu0  ;;  %v144_v5 = vld [vmem:[%s4207_s0 + $0x3b8] sm:$0xff] }
 0x1af   :  { %v1103_v34 = vmax.f32 %v929_v23, 0.0  ;;  %v1548_v35 = vpop.f32.mrf.mxu1  ;;  %v772_v44 = vadd.f32 %v3628_v60, %v771_v30  ;;  %v276_v15 = vmul.f32 %v3876_v9, %v144_v5  ;;  %v407_v23 = vadd.f32 %v3888_v18, %v275_v14 }
 0x1b0   :  { %2877 = vst [vmem:[%s4209_s7 + $0x180] sm:$0xff] %v2690_v29   ;;  %v471_v29 = vmax.f32 %v343_v19, 0.0  ;;  %v472_v30 = vmax.f32 %v344_v20, 0.0  ;;  %v83_v19 = vld [vmem:[%s4207_s0 + $0x1d0] sm:$0xff]  ;;  %v84_v20 = vld [vmem:[%s4207_s0 + $0x1d8] sm:$0xff] }
 0x1b1   :  { %v2370_v38 = vpack.c.bf16 %v1103_v34, %v1102_v33  ;;  %810 = vmatmul.bf16.gmra.mxu0 %v570_v25  ;;  %970 = vmatmul.bf16.gmra.mxu2 %v602_v26  ;;  %v1040_v52 = vmax.f32 %v772_v44, 0.0  ;;  %v408_v24 = vadd.f32 %v3888_v18, %v276_v15  ;;  %v535_v33 = vmax.f32 %v407_v23, 0.0  ;;  %v147_v23 = vld [vmem:[%s4207_s0 + $0x3d0] sm:$0xff] }
 0x1b2   :  { %1747 = vmatmul.bf16.gmra.mxu3 %v602_v26  ;;  %1587 = vmatmul.bf16.gmra.mxu1 %v570_v25  ;;  %v572_v40 = vpack.c.bf16 %v472_v30, %v471_v29  ;;  %v216_v29 = vmul.f32 %v3876_v9, %v84_v20 }
 0x1b3   :  { %2814 = vst [vmem:[%s4210_s6 + $0x180] sm:$0xff] %v2370_v38   ;;  %v536_v34 = vmax.f32 %v408_v24, 0.0  ;;  %v148_v24 = vld [vmem:[%s4207_s0 + $0x3d8] sm:$0xff] }
 0x1b4   :  { %v931_v41 = vpop.f32.mrf.mxu2 }
 0x1b5   :  { %v1708_v45 = vpop.f32.mrf.mxu3  ;;  %v932_v57 = vadd.f32 %v3628_v60, %v931_v41  ;;  %v604_v41 = vpack.c.bf16 %v536_v34, %v535_v33 }
 0x1b6   :  { %v773_v0 = vpop.f32.mrf.mxu0 }
 0x1b7   :  { %v774_v48 = vadd.f32 %v3628_v60, %v773_v0  ;;  %v1550_v49 = vpop.f32.mrf.mxu1  ;;  %v1104_v6 = vmax.f32 %v932_v57, 0.0  ;;  %v346_v57 = vadd.f32 %v3888_v18, %v214_v51 }
 0x1b8   :  { %v2535_v50 = vpack.c.bf16 %v1550_v49, %v1548_v35 }
 0x1b9   :  { %v1041_v53 = vmax.f32 %v774_v48, 0.0 }
 0x1ba   :  { %2846 = vst [vmem:[%s4209_s7 + $0x88] sm:$0xff] %v2535_v50   ;;  %v213_v50 = vmul.f32 %v3876_v9, %v81_v42 }
 0x1bb   :  { %v2215_v58 = vpack.c.bf16 %v1041_v53, %v1040_v52  ;;  %v277_v52 = vmul.f32 %v3876_v9, %v145_v46  ;;  %v278_v53 = vmul.f32 %v3876_v9, %v146_v47 }
 0x1bc   :  { %v933_v59 = vpop.f32.mrf.mxu2  ;;  %v345_v55 = vadd.f32 %v3888_v18, %v213_v50 }
 0x1bd   :  { %2783 = vst [vmem:[%s4210_s6 + $0x88] sm:$0xff] %v2215_v58   ;;  %v934_v56 = vadd.f32 %v3628_v60, %v933_v59  ;;  %v1710_v61 = vpop.f32.mrf.mxu3 }
 0x1be   :  { %v2695_v3 = vpack.c.bf16 %v1710_v61, %v1708_v45  ;;  %v776_v4 = vpop.f32.mrf.mxu0  ;;  %v410_v61 = vadd.f32 %v3888_v18, %v278_v53 }
 0x1bf   :  { %v1105_v7 = vmax.f32 %v934_v56, 0.0  ;;  %v1553_v8 = vpop.f32.mrf.mxu1  ;;  %v777_v21 = vadd.f32 %v3628_v60, %v776_v4  ;;  %v409_v56 = vadd.f32 %v3888_v18, %v277_v52  ;;  %v474_v4 = vmax.f32 %v346_v57, 0.0  ;;  %v86_v57 = vld [vmem:[%s4207_s0 + $0x1e8] sm:$0xff] }
 0x1c0   :  { %2878 = vst [vmem:[%s4209_s7 + $0x188] sm:$0xff] %v2695_v3   ;;  %v473_v3 = vmax.f32 %v345_v55, 0.0  ;;  %v85_v55 = vld [vmem:[%s4207_s0 + $0x1e0] sm:$0xff] }
 0x1c1   :  { %v2375_v13 = vpack.c.bf16 %v1105_v7, %v1104_v6  ;;  %815 = vmatmul.bf16.gmra.mxu0 %v571_v62  ;;  %975 = vmatmul.bf16.gmra.mxu2 %v603_v63  ;;  %v1042_v31 = vmax.f32 %v777_v21, 0.0  ;;  %v537_v6 = vmax.f32 %v409_v56, 0.0  ;;  %v538_v7 = vmax.f32 %v410_v61, 0.0  ;;  %v149_v56 = vld [vmem:[%s4207_s0 + $0x3e0] sm:$0xff]  ;;  %v150_v61 = vld [vmem:[%s4207_s0 + $0x3e8] sm:$0xff] }
 0x1c2   :  { %1752 = vmatmul.bf16.gmra.mxu3 %v603_v63  ;;  %1592 = vmatmul.bf16.gmra.mxu1 %v571_v62  ;;  %v573_v15 = vpack.c.bf16 %v474_v4, %v473_v3  ;;  %v218_v3 = vmul.f32 %v3876_v9, %v86_v57 }
 0x1c3   :  { %2815 = vst [vmem:[%s4210_s6 + $0x188] sm:$0xff] %v2375_v13  }
 0x1c4   :  { %v936_v16 = vpop.f32.mrf.mxu2 }
 0x1c5   :  { %v1713_v22 = vpop.f32.mrf.mxu3  ;;  %v937_v35 = vadd.f32 %v3628_v60, %v936_v16  ;;  %v605_v16 = vpack.c.bf16 %v538_v7, %v537_v6 }
 0x1c6   :  { %v778_v25 = vpop.f32.mrf.mxu0 }
 0x1c7   :  { %v779_v26 = vadd.f32 %v3628_v60, %v778_v25  ;;  %v1555_v27 = vpop.f32.mrf.mxu1  ;;  %v1106_v0 = vmax.f32 %v937_v35, 0.0  ;;  %v348_v35 = vadd.f32 %v3888_v18, %v216_v29 }
 0x1c8   :  { %v2540_v28 = vpack.c.bf16 %v1555_v27, %v1553_v8 }
 0x1c9   :  { %v1043_v32 = vmax.f32 %v779_v26, 0.0 }
 0x1ca   :  { %2847 = vst [vmem:[%s4209_s7 + $0x90] sm:$0xff] %v2540_v28   ;;  %v215_v28 = vmul.f32 %v3876_v9, %v83_v19 }
 0x1cb   :  { %v2220_v36 = vpack.c.bf16 %v1043_v32, %v1042_v31  ;;  %v279_v31 = vmul.f32 %v3876_v9, %v147_v23  ;;  %v280_v32 = vmul.f32 %v3876_v9, %v148_v24 }
 0x1cc   :  { %v938_v37 = vpop.f32.mrf.mxu2  ;;  %v347_v34 = vadd.f32 %v3888_v18, %v215_v28 }
 0x1cd   :  { %2784 = vst [vmem:[%s4210_s6 + $0x90] sm:$0xff] %v2220_v36   ;;  %v939_v38 = vadd.f32 %v3628_v60, %v938_v37  ;;  %v1715_v39 = vpop.f32.mrf.mxu3 }
 0x1ce   :  { %v2700_v44 = vpack.c.bf16 %v1715_v39, %v1713_v22  ;;  %v781_v45 = vpop.f32.mrf.mxu0  ;;  %v412_v39 = vadd.f32 %v3888_v18, %v280_v32 }
 0x1cf   :  { %v1107_v48 = vmax.f32 %v939_v38, 0.0  ;;  %v1558_v49 = vpop.f32.mrf.mxu1  ;;  %v782_v58 = vadd.f32 %v3628_v60, %v781_v45  ;;  %v411_v38 = vadd.f32 %v3888_v18, %v279_v31  ;;  %v476_v45 = vmax.f32 %v348_v35, 0.0  ;;  %v88_v35 = vld [vmem:[%s4207_s0 + $0x1f8] sm:$0xff] }
 0x1d0   :  { %2879 = vst [vmem:[%s4209_s7 + $0x190] sm:$0xff] %v2700_v44   ;;  %v475_v44 = vmax.f32 %v347_v34, 0.0  ;;  %v87_v34 = vld [vmem:[%s4207_s0 + $0x1f0] sm:$0xff] }
 0x1d1   :  { %v2380_v10 = vpack.c.bf16 %v1107_v48, %v1106_v0  ;;  %820 = vmatmul.bf16.gmra.mxu0 %v572_v40  ;;  %980 = vmatmul.bf16.gmra.mxu2 %v604_v41  ;;  %v1044_v17 = vmax.f32 %v782_v58, 0.0  ;;  %v539_v0 = vmax.f32 %v411_v38, 0.0  ;;  %v540_v48 = vmax.f32 %v412_v39, 0.0  ;;  %v151_v38 = vld [vmem:[%s4207_s0 + $0x3f0] sm:$0xff]  ;;  %v152_v39 = vld [vmem:[%s4207_s0 + $0x3f8] sm:$0xff] }
 0x1d2   :  { %1757 = vmatmul.bf16.gmra.mxu3 %v604_v41  ;;  %1597 = vmatmul.bf16.gmra.mxu1 %v572_v40  ;;  %v574_v53 = vpack.c.bf16 %v476_v45, %v475_v44  ;;  %v220_v44 = vmul.f32 %v3876_v9, %v88_v35 }
 0x1d3   :  { %2816 = vst [vmem:[%s4210_s6 + $0x190] sm:$0xff] %v2380_v10  }
 0x1d4   :  { %v941_v54 = vpop.f32.mrf.mxu2 }
 0x1d5   :  { %v1718_v59 = vpop.f32.mrf.mxu3  ;;  %v942_v8 = vadd.f32 %v3628_v60, %v941_v54  ;;  %v606_v54 = vpack.c.bf16 %v540_v48, %v539_v0 }
 0x1d6   :  { %v783_v62 = vpop.f32.mrf.mxu0 }
 0x1d7   :  { %v784_v63 = vadd.f32 %v3628_v60, %v783_v62  ;;  %v1560_v1 = vpop.f32.mrf.mxu1  ;;  %v1108_v25 = vmax.f32 %v942_v8, 0.0  ;;  %v350_v8 = vadd.f32 %v3888_v18, %v218_v3 }
 0x1d8   :  { %v2545_v2 = vpack.c.bf16 %v1560_v1, %v1558_v49 }
 0x1d9   :  { %v1045_v5 = vmax.f32 %v784_v63, 0.0 }
 0x1da   :  { %2848 = vst [vmem:[%s4209_s7 + $0x98] sm:$0xff] %v2545_v2   ;;  %v217_v2 = vmul.f32 %v3876_v9, %v85_v55 }
 0x1db   :  { %v2225_v11 = vpack.c.bf16 %v1045_v5, %v1044_v17  ;;  %v281_v17 = vmul.f32 %v3876_v9, %v149_v56  ;;  %v282_v5 = vmul.f32 %v3876_v9, %v150_v61 }
 0x1dc   :  { %v943_v12 = vpop.f32.mrf.mxu2  ;;  %v349_v7 = vadd.f32 %v3888_v18, %v217_v2 }
 0x1dd   :  { %2785 = vst [vmem:[%s4210_s6 + $0x98] sm:$0xff] %v2225_v11   ;;  %v944_v13 = vadd.f32 %v3628_v60, %v943_v12  ;;  %v1720_v14 = vpop.f32.mrf.mxu3 }
 0x1de   :  { %v2705_v21 = vpack.c.bf16 %v1720_v14, %v1718_v59  ;;  %v786_v22 = vpop.f32.mrf.mxu0  ;;  %v414_v14 = vadd.f32 %v3888_v18, %v282_v5 }
 0x1df   :  { %v1109_v26 = vmax.f32 %v944_v13, 0.0  ;;  %v1563_v27 = vpop.f32.mrf.mxu1  ;;  %v787_v36 = vadd.f32 %v3628_v60, %v786_v22  ;;  %v413_v13 = vadd.f32 %v3888_v18, %v281_v17  ;;  %v478_v22 = vmax.f32 %v350_v8, 0.0 }
 0x1e0   :  { %2880 = vst [vmem:[%s4209_s7 + $0x198] sm:$0xff] %v2705_v21   ;;  %v477_v21 = vmax.f32 %v349_v7, 0.0 }
 0x1e1   :  { %v2385_v30 = vpack.c.bf16 %v1109_v26, %v1108_v25  ;;  %825 = vmatmul.bf16.gmra.mxu0 %v573_v15  ;;  %985 = vmatmul.bf16.gmra.mxu2 %v605_v16  ;;  %v1046_v46 = vmax.f32 %v787_v36, 0.0  ;;  %v541_v25 = vmax.f32 %v413_v13, 0.0  ;;  %v542_v26 = vmax.f32 %v414_v14, 0.0 }
 0x1e2   :  { %1762 = vmatmul.bf16.gmra.mxu3 %v605_v16  ;;  %1602 = vmatmul.bf16.gmra.mxu1 %v573_v15  ;;  %v575_v32 = vpack.c.bf16 %v478_v22, %v477_v21 }
 0x1e3   :  { %2817 = vst [vmem:[%s4210_s6 + $0x198] sm:$0xff] %v2385_v30  }
 0x1e4   :  { %v946_v33 = vpop.f32.mrf.mxu2 }
 0x1e5   :  { %v1723_v37 = vpop.f32.mrf.mxu3  ;;  %v947_v49 = vadd.f32 %v3628_v60, %v946_v33  ;;  %v607_v33 = vpack.c.bf16 %v542_v26, %v541_v25 }
 0x1e6   :  { %v788_v40 = vpop.f32.mrf.mxu0 }
 0x1e7   :  { %v789_v41 = vadd.f32 %v3628_v60, %v788_v40  ;;  %v1565_v42 = vpop.f32.mrf.mxu1  ;;  %v1110_v62 = vmax.f32 %v947_v49, 0.0  ;;  %v352_v49 = vadd.f32 %v3888_v18, %v220_v44 }
 0x1e8   :  { %v2550_v43 = vpack.c.bf16 %v1565_v42, %v1563_v27 }
 0x1e9   :  { %v1047_v47 = vmax.f32 %v789_v41, 0.0 }
 0x1ea   :  { %2849 = vst [vmem:[%s4209_s7 + $0xa0] sm:$0xff] %v2550_v43   ;;  %v219_v43 = vmul.f32 %v3876_v9, %v87_v34 }
 0x1eb   :  { %v2230_v50 = vpack.c.bf16 %v1047_v47, %v1046_v46  ;;  %v283_v46 = vmul.f32 %v3876_v9, %v151_v38  ;;  %v284_v47 = vmul.f32 %v3876_v9, %v152_v39 }
 0x1ec   :  { %v948_v51 = vpop.f32.mrf.mxu2  ;;  %v351_v48 = vadd.f32 %v3888_v18, %v219_v43 }
 0x1ed   :  { %2786 = vst [vmem:[%s4210_s6 + $0xa0] sm:$0xff] %v2230_v50   ;;  %v949_v10 = vadd.f32 %v3628_v60, %v948_v51  ;;  %v1725_v52 = vpop.f32.mrf.mxu3 }
 0x1ee   :  { %v2710_v58 = vpack.c.bf16 %v1725_v52, %v1723_v37  ;;  %v791_v59 = vpop.f32.mrf.mxu0  ;;  %v416_v52 = vadd.f32 %v3888_v18, %v284_v47  ;;  %v479_v57 = vmax.f32 %v351_v48, 0.0 }
 0x1ef   :  { %v1111_v63 = vmax.f32 %v949_v10, 0.0  ;;  %v1568_v1 = vpop.f32.mrf.mxu1  ;;  %v792_v11 = vadd.f32 %v3628_v60, %v791_v59  ;;  %v415_v10 = vadd.f32 %v3888_v18, %v283_v46 }
 0x1f0   :  { %2881 = vst [vmem:[%s4209_s7 + $0x1a0] sm:$0xff] %v2710_v58   ;;  %v480_v58 = vmax.f32 %v352_v49, 0.0 }
 0x1f1   :  { %v2390_v4 = vpack.c.bf16 %v1111_v63, %v1110_v62  ;;  %830 = vmatmul.bf16.gmra.mxu0 %v574_v53  ;;  %990 = vmatmul.bf16.gmra.mxu2 %v606_v54  ;;  %v1048_v23 = vmax.f32 %v792_v11, 0.0  ;;  %v543_v61 = vmax.f32 %v415_v10, 0.0  ;;  %v544_v62 = vmax.f32 %v416_v52, 0.0  ;;  %v4046_v63 = vld [vmem:[%s4208_s4] ss:$0 sm:$0xff] }
 0x1f2   :  { %1767 = vmatmul.bf16.gmra.mxu3 %v606_v54  ;;  %1607 = vmatmul.bf16.gmra.mxu1 %v574_v53 }
 0x1f3   :  { %2818 = vst [vmem:[%s4210_s6 + $0x1a0] sm:$0xff] %v2390_v4   ;;  %v576_v4 = vpack.c.bf16 %v480_v58, %v479_v57  ;;  %v608_v17 = vpack.c.bf16 %v544_v62, %v543_v61 }
 0x1f4   :  { %v951_v6 = vpop.f32.mrf.mxu2 }
 0x1f5   :  { %v1728_v12 = vpop.f32.mrf.mxu3  ;;  %v952_v27 = vadd.f32 %v3628_v60, %v951_v6 }
 0x1f6   :  { %v793_v15 = vpop.f32.mrf.mxu0 }
 0x1f7   :  { %v794_v16 = vadd.f32 %v3628_v60, %v793_v15  ;;  %v1570_v19 = vpop.f32.mrf.mxu1  ;;  %v1112_v40 = vmax.f32 %v952_v27, 0.0 }
 0x1f8   :  { %v2555_v20 = vpack.c.bf16 %v1570_v19, %v1568_v1 }
 0x1f9   :  { %v1049_v24 = vmax.f32 %v794_v16, 0.0 }
 0x1fa   :  { %2850 = vst [vmem:[%s4209_s7 + $0xa8] sm:$0xff] %v2555_v20  }
 0x1fb   :  { %v2235_v28 = vpack.c.bf16 %v1049_v24, %v1048_v23 }
 0x1fc   :  { %v953_v29 = vpop.f32.mrf.mxu2 }
 0x1fd   :  { %2787 = vst [vmem:[%s4210_s6 + $0xa8] sm:$0xff] %v2235_v28   ;;  %v954_v30 = vadd.f32 %v3628_v60, %v953_v29  ;;  %v1730_v31 = vpop.f32.mrf.mxu3 }
 0x1fe   :  { %v2715_v36 = vpack.c.bf16 %v1730_v31, %v1728_v12  ;;  %v796_v37 = vpop.f32.mrf.mxu0 }
 0x1ff   :  { %v1113_v41 = vmax.f32 %v954_v30, 0.0  ;;  %v1573_v42 = vpop.f32.mrf.mxu1  ;;  %v797_v50 = vadd.f32 %v3628_v60, %v796_v37 }
 0x200   :  { %2882 = vst [vmem:[%s4209_s7 + $0x1a8] sm:$0xff] %v2715_v36  }
 0x201   :  { %v2395_v45 = vpack.c.bf16 %v1113_v41, %v1112_v40  ;;  %835 = vmatmul.bf16.gmra.mxu0 %v575_v32  ;;  %995 = vmatmul.bf16.gmra.mxu2 %v607_v33  ;;  %v1050_v59 = vmax.f32 %v797_v50, 0.0 }
 0x202   :  { %1772 = vmatmul.bf16.gmra.mxu3 %v607_v33  ;;  %1612 = vmatmul.bf16.gmra.mxu1 %v575_v32 }
 0x203   :  { %2819 = vst [vmem:[%s4210_s6 + $0x1a8] sm:$0xff] %v2395_v45  }
 0x204   :  { %v956_v0 = vpop.f32.mrf.mxu2 }
 0x205   :  { %v1733_v51 = vpop.f32.mrf.mxu3  ;;  %v957_v18 = vadd.f32 %v4046_v63, %v956_v0 }
 0x206   :  { %v798_v53 = vpop.f32.mrf.mxu0 }
 0x207   :  { %v799_v9 = vadd.f32 %v3628_v60, %v798_v53  ;;  %v1575_v54 = vpop.f32.mrf.mxu1  ;;  %v1114_v7 = vmax.f32 %v957_v18, 0.0 }
 0x208   :  { %v2560_v55 = vpack.c.bf16 %v1575_v54, %v1573_v42 }
 0x209   :  { %v1051_v56 = vmax.f32 %v799_v9, 0.0 }
 0x20a   :  { %2851 = vst [vmem:[%s4209_s7 + $0xb0] sm:$0xff] %v2560_v55  }
 0x20b   :  { %v2240_v60 = vpack.c.bf16 %v1051_v56, %v1050_v59 }
 0x20c   :  { %v958_v1 = vpop.f32.mrf.mxu2 }
 0x20d   :  { %2788 = vst [vmem:[%s4210_s6 + $0xb0] sm:$0xff] %v2240_v60   ;;  %v959_v2 = vadd.f32 %v4046_v63, %v958_v1  ;;  %v1735_v3 = vpop.f32.mrf.mxu3 }
 0x20e   :  { %v2720_v5 = vpack.c.bf16 %v1735_v3, %v1733_v51  ;;  %v801_v6 = vpop.f32.mrf.mxu0 }
 0x20f   :  { %v1115_v8 = vmax.f32 %v959_v2, 0.0  ;;  %v1578_v11 = vpop.f32.mrf.mxu1  ;;  %v802_v14 = vadd.f32 %v4046_v63, %v801_v6 }
 0x210   :  { %2883 = vst [vmem:[%s4209_s7 + $0x1b0] sm:$0xff] %v2720_v5  }
 0x211   :  { %v2400_v12 = vpack.c.bf16 %v1115_v8, %v1114_v7  ;;  %840 = vmatmul.bf16.gmra.mxu0 %v576_v4  ;;  %1000 = vmatmul.bf16.gmra.mxu2 %v608_v17  ;;  %v1052_v22 = vmax.f32 %v802_v14, 0.0 }
 0x212   :  { %1777 = vmatmul.bf16.gmra.mxu3 %v608_v17  ;;  %1617 = vmatmul.bf16.gmra.mxu1 %v576_v4 }
 0x213   :  { %2820 = vst [vmem:[%s4210_s6 + $0x1b0] sm:$0xff] %v2400_v12  }
 0x214   :  { %v961_v13 = vpop.f32.mrf.mxu2 }
 0x215   :  { %v1738_v15 = vpop.f32.mrf.mxu3  ;;  %v962_v24 = vadd.f32 %v4046_v63, %v961_v13 }
 0x216   :  { %v803_v16 = vpop.f32.mrf.mxu0 }
 0x217   :  { %v804_v19 = vadd.f32 %v4046_v63, %v803_v16  ;;  %v1580_v20 = vpop.f32.mrf.mxu1  ;;  %v1116_v31 = vmax.f32 %v962_v24, 0.0 }
 0x218   :  { %v2565_v21 = vpack.c.bf16 %v1580_v20, %v1578_v11 }
 0x219   :  { %v1053_v23 = vmax.f32 %v804_v19, 0.0 }
 0x21a   :  { %2852 = vst [vmem:[%s4209_s7 + $0xb8] sm:$0xff] %v2565_v21  }
 0x21b   :  { %v2245_v25 = vpack.c.bf16 %v1053_v23, %v1052_v22 }
 0x21c   :  { %v963_v26 = vpop.f32.mrf.mxu2 }
 0x21d   :  { %2789 = vst [vmem:[%s4210_s6 + $0xb8] sm:$0xff] %v2245_v25   ;;  %v964_v27 = vadd.f32 %v4046_v63, %v963_v26  ;;  %v1740_v28 = vpop.f32.mrf.mxu3 }
 0x21e   :  { %v2725_v29 = vpack.c.bf16 %v1740_v28, %v1738_v15  ;;  %v806_v30 = vpop.f32.mrf.mxu0 }
 0x21f   :  { %v1117_v32 = vmax.f32 %v964_v27, 0.0  ;;  %v1583_v33 = vpop.f32.mrf.mxu1  ;;  %v807_v36 = vadd.f32 %v4046_v63, %v806_v30 }
 0x220   :  { %2884 = vst [vmem:[%s4209_s7 + $0x1b8] sm:$0xff] %v2725_v29  }
 0x221   :  { %v2405_v34 = vpack.c.bf16 %v1117_v32, %v1116_v31  ;;  %v1054_v42 = vmax.f32 %v807_v36, 0.0 }
 0x223   :  { %2821 = vst [vmem:[%s4210_s6 + $0x1b8] sm:$0xff] %v2405_v34  }
 0x224   :  { %v966_v35 = vpop.f32.mrf.mxu2 }
 0x225   :  { %v1743_v37 = vpop.f32.mrf.mxu3  ;;  %v967_v44 = vadd.f32 %v4046_v63, %v966_v35 }
 0x226   :  { %v808_v38 = vpop.f32.mrf.mxu0 }
 0x227   :  { %v809_v39 = vadd.f32 %v4046_v63, %v808_v38  ;;  %v1585_v40 = vpop.f32.mrf.mxu1  ;;  %v1118_v50 = vmax.f32 %v967_v44, 0.0 }
 0x228   :  { %v2570_v41 = vpack.c.bf16 %v1585_v40, %v1583_v33 }
 0x229   :  { %v1055_v43 = vmax.f32 %v809_v39, 0.0 }
 0x22a   :  { %2853 = vst [vmem:[%s4209_s7 + $0xc0] sm:$0xff] %v2570_v41  }
 0x22b   :  { %v2250_v45 = vpack.c.bf16 %v1055_v43, %v1054_v42 }
 0x22c   :  { %v968_v46 = vpop.f32.mrf.mxu2 }
 0x22d   :  { %2790 = vst [vmem:[%s4210_s6 + $0xc0] sm:$0xff] %v2250_v45   ;;  %v969_v47 = vadd.f32 %v4046_v63, %v968_v46  ;;  %v1745_v0 = vpop.f32.mrf.mxu3 }
 0x22e   :  { %v2730_v48 = vpack.c.bf16 %v1745_v0, %v1743_v37  ;;  %v811_v49 = vpop.f32.mrf.mxu0 }
 0x22f   :  { %v1119_v51 = vmax.f32 %v969_v47, 0.0  ;;  %v1588_v10 = vpop.f32.mrf.mxu1  ;;  %v812_v9 = vadd.f32 %v4046_v63, %v811_v49 }
 0x230   :  { %2885 = vst [vmem:[%s4209_s7 + $0x1c0] sm:$0xff] %v2730_v48  }
 0x231   :  { %v2410_v52 = vpack.c.bf16 %v1119_v51, %v1118_v50  ;;  %v1056_v56 = vmax.f32 %v812_v9, 0.0 }
 0x233   :  { %2822 = vst [vmem:[%s4210_s6 + $0x1c0] sm:$0xff] %v2410_v52  }
 0x234   :  { %v971_v53 = vpop.f32.mrf.mxu2 }
 0x235   :  { %v1748_v54 = vpop.f32.mrf.mxu3  ;;  %v972_v62 = vadd.f32 %v4046_v63, %v971_v53 }
 0x236   :  { %v813_v55 = vpop.f32.mrf.mxu0 }
 0x237   :  { %v814_v57 = vadd.f32 %v4046_v63, %v813_v55  ;;  %v1590_v58 = vpop.f32.mrf.mxu1  ;;  %v1120_v17 = vmax.f32 %v972_v62, 0.0 }
 0x238   :  { %v2575_v59 = vpack.c.bf16 %v1590_v58, %v1588_v10 }
 0x239   :  { %v1057_v61 = vmax.f32 %v814_v57, 0.0 }
 0x23a   :  { %2854 = vst [vmem:[%s4209_s7 + $0xc8] sm:$0xff] %v2575_v59  }
 0x23b   :  { %v2255_v18 = vpack.c.bf16 %v1057_v61, %v1056_v56 }
 0x23c   :  { %v973_v60 = vpop.f32.mrf.mxu2 }
 0x23d   :  { %2791 = vst [vmem:[%s4210_s6 + $0xc8] sm:$0xff] %v2255_v18   ;;  %v974_v1 = vadd.f32 %v4046_v63, %v973_v60  ;;  %v1750_v2 = vpop.f32.mrf.mxu3 }
 0x23e   :  { %v2735_v3 = vpack.c.bf16 %v1750_v2, %v1748_v54  ;;  %v816_v4 = vpop.f32.mrf.mxu0 }
 0x23f   :  { %v1121_v5 = vmax.f32 %v974_v1, 0.0  ;;  %v1593_v6 = vpop.f32.mrf.mxu1  ;;  %v817_v11 = vadd.f32 %v4046_v63, %v816_v4 }
 0x240   :  { %2886 = vst [vmem:[%s4209_s7 + $0x1c8] sm:$0xff] %v2735_v3  }
 0x241   :  { %v2415_v7 = vpack.c.bf16 %v1121_v5, %v1120_v17  ;;  %v1058_v19 = vmax.f32 %v817_v11, 0.0 }
 0x243   :  { %2823 = vst [vmem:[%s4210_s6 + $0x1c8] sm:$0xff] %v2415_v7  }
 0x244   :  { %v976_v8 = vpop.f32.mrf.mxu2 }
 0x245   :  { %v1753_v12 = vpop.f32.mrf.mxu3  ;;  %v977_v21 = vadd.f32 %v4046_v63, %v976_v8 }
 0x246   :  { %v818_v13 = vpop.f32.mrf.mxu0 }
 0x247   :  { %v819_v14 = vadd.f32 %v4046_v63, %v818_v13  ;;  %v1595_v15 = vpop.f32.mrf.mxu1  ;;  %v1122_v28 = vmax.f32 %v977_v21, 0.0 }
 0x248   :  { %v2580_v16 = vpack.c.bf16 %v1595_v15, %v1593_v6 }
 0x249   :  { %v1059_v20 = vmax.f32 %v819_v14, 0.0 }
 0x24a   :  { %2855 = vst [vmem:[%s4209_s7 + $0xd0] sm:$0xff] %v2580_v16  }
 0x24b   :  { %v2260_v22 = vpack.c.bf16 %v1059_v20, %v1058_v19 }
 0x24c   :  { %v978_v23 = vpop.f32.mrf.mxu2 }
 0x24d   :  { %2792 = vst [vmem:[%s4210_s6 + $0xd0] sm:$0xff] %v2260_v22   ;;  %v979_v24 = vadd.f32 %v4046_v63, %v978_v23  ;;  %v1755_v25 = vpop.f32.mrf.mxu3 }
 0x24e   :  { %v2740_v26 = vpack.c.bf16 %v1755_v25, %v1753_v12  ;;  %v821_v27 = vpop.f32.mrf.mxu0 }
 0x24f   :  { %v1123_v29 = vmax.f32 %v979_v24, 0.0  ;;  %v1598_v30 = vpop.f32.mrf.mxu1  ;;  %v822_v33 = vadd.f32 %v4046_v63, %v821_v27 }
 0x250   :  { %2887 = vst [vmem:[%s4209_s7 + $0x1d0] sm:$0xff] %v2740_v26  }
 0x251   :  { %v2420_v31 = vpack.c.bf16 %v1123_v29, %v1122_v28  ;;  %v1060_v39 = vmax.f32 %v822_v33, 0.0 }
 0x253   :  { %2824 = vst [vmem:[%s4210_s6 + $0x1d0] sm:$0xff] %v2420_v31  }
 0x254   :  { %v981_v32 = vpop.f32.mrf.mxu2 }
 0x255   :  { %v1758_v34 = vpop.f32.mrf.mxu3  ;;  %v982_v41 = vadd.f32 %v4046_v63, %v981_v32 }
 0x256   :  { %v823_v35 = vpop.f32.mrf.mxu0 }
 0x257   :  { %v824_v36 = vadd.f32 %v4046_v63, %v823_v35  ;;  %v1600_v37 = vpop.f32.mrf.mxu1  ;;  %v1124_v0 = vmax.f32 %v982_v41, 0.0 }
 0x258   :  { %v2585_v38 = vpack.c.bf16 %v1600_v37, %v1598_v30 }
 0x259   :  { %v1061_v40 = vmax.f32 %v824_v36, 0.0 }
 0x25a   :  { %2856 = vst [vmem:[%s4209_s7 + $0xd8] sm:$0xff] %v2585_v38  }
 0x25b   :  { %v2265_v42 = vpack.c.bf16 %v1061_v40, %v1060_v39 }
 0x25c   :  { %v983_v43 = vpop.f32.mrf.mxu2 }
 0x25d   :  { %2793 = vst [vmem:[%s4210_s6 + $0xd8] sm:$0xff] %v2265_v42   ;;  %v984_v44 = vadd.f32 %v4046_v63, %v983_v43  ;;  %v1760_v45 = vpop.f32.mrf.mxu3 }
 0x25e   :  { %v2745_v46 = vpack.c.bf16 %v1760_v45, %v1758_v34  ;;  %v826_v47 = vpop.f32.mrf.mxu0 }
 0x25f   :  { %v1125_v48 = vmax.f32 %v984_v44, 0.0  ;;  %v1603_v49 = vpop.f32.mrf.mxu1  ;;  %v827_v10 = vadd.f32 %v4046_v63, %v826_v47 }
 0x260   :  { %2888 = vst [vmem:[%s4209_s7 + $0x1d8] sm:$0xff] %v2745_v46  }
 0x261   :  { %v2425_v50 = vpack.c.bf16 %v1125_v48, %v1124_v0  ;;  %v1062_v57 = vmax.f32 %v827_v10, 0.0 }
 0x263   :  { %2825 = vst [vmem:[%s4210_s6 + $0x1d8] sm:$0xff] %v2425_v50  }
 0x264   :  { %v986_v51 = vpop.f32.mrf.mxu2 }
 0x265   :  { %v1763_v52 = vpop.f32.mrf.mxu3  ;;  %v987_v59 = vadd.f32 %v4046_v63, %v986_v51 }
 0x266   :  { %v828_v53 = vpop.f32.mrf.mxu0 }
 0x267   :  { %v829_v9 = vadd.f32 %v4046_v63, %v828_v53  ;;  %v1605_v54 = vpop.f32.mrf.mxu1  ;;  %v1126_v2 = vmax.f32 %v987_v59, 0.0 }
 0x268   :  { %v2590_v55 = vpack.c.bf16 %v1605_v54, %v1603_v49 }
 0x269   :  { %v1063_v58 = vmax.f32 %v829_v9, 0.0 }
 0x26a   :  { %2857 = vst [vmem:[%s4209_s7 + $0xe0] sm:$0xff] %v2590_v55  }
 0x26b   :  { %v2270_v56 = vpack.c.bf16 %v1063_v58, %v1062_v57 }
 0x26c   :  { %v988_v61 = vpop.f32.mrf.mxu2 }
 0x26d   :  { %2794 = vst [vmem:[%s4210_s6 + $0xe0] sm:$0xff] %v2270_v56   ;;  %v989_v62 = vadd.f32 %v4046_v63, %v988_v61  ;;  %v1765_v18 = vpop.f32.mrf.mxu3 }
 0x26e   :  { %v2750_v60 = vpack.c.bf16 %v1765_v18, %v1763_v52  ;;  %v831_v1 = vpop.f32.mrf.mxu0 }
 0x26f   :  { %v1127_v3 = vmax.f32 %v989_v62, 0.0  ;;  %v1608_v4 = vpop.f32.mrf.mxu1  ;;  %v832_v6 = vadd.f32 %v4046_v63, %v831_v1 }
 0x270   :  { %2889 = vst [vmem:[%s4209_s7 + $0x1e0] sm:$0xff] %v2750_v60  }
 0x271   :  { %v2430_v17 = vpack.c.bf16 %v1127_v3, %v1126_v2  ;;  %v1064_v14 = vmax.f32 %v832_v6, 0.0 }
 0x273   :  { %2826 = vst [vmem:[%s4210_s6 + $0x1e0] sm:$0xff] %v2430_v17  }
 0x274   :  { %v991_v5 = vpop.f32.mrf.mxu2 }
 0x275   :  { %v1768_v7 = vpop.f32.mrf.mxu3  ;;  %v992_v16 = vadd.f32 %v4046_v63, %v991_v5 }
 0x276   :  { %v833_v8 = vpop.f32.mrf.mxu0 }
 0x277   :  { %v834_v11 = vadd.f32 %v4046_v63, %v833_v8  ;;  %v1610_v12 = vpop.f32.mrf.mxu1  ;;  %v1128_v25 = vmax.f32 %v992_v16, 0.0 }
 0x278   :  { %v2595_v13 = vpack.c.bf16 %v1610_v12, %v1608_v4 }
 0x279   :  { %v1065_v15 = vmax.f32 %v834_v11, 0.0 }
 0x27a   :  { %2858 = vst [vmem:[%s4209_s7 + $0xe8] sm:$0xff] %v2595_v13  }
 0x27b   :  { %v2275_v19 = vpack.c.bf16 %v1065_v15, %v1064_v14 }
 0x27c   :  { %v993_v20 = vpop.f32.mrf.mxu2 }
 0x27d   :  { %2795 = vst [vmem:[%s4210_s6 + $0xe8] sm:$0xff] %v2275_v19   ;;  %v994_v21 = vadd.f32 %v4046_v63, %v993_v20  ;;  %v1770_v22 = vpop.f32.mrf.mxu3 }
 0x27e   :  { %v2755_v23 = vpack.c.bf16 %v1770_v22, %v1768_v7  ;;  %v836_v24 = vpop.f32.mrf.mxu0 }
 0x27f   :  { %v1129_v26 = vmax.f32 %v994_v21, 0.0  ;;  %v1613_v27 = vpop.f32.mrf.mxu1  ;;  %v837_v30 = vadd.f32 %v4046_v63, %v836_v24 }
 0x280   :  { %2890 = vst [vmem:[%s4209_s7 + $0x1e8] sm:$0xff] %v2755_v23  }
 0x281   :  { %v2435_v28 = vpack.c.bf16 %v1129_v26, %v1128_v25  ;;  %v1066_v36 = vmax.f32 %v837_v30, 0.0 }
 0x283   :  { %2827 = vst [vmem:[%s4210_s6 + $0x1e8] sm:$0xff] %v2435_v28  }
 0x284   :  { %v996_v29 = vpop.f32.mrf.mxu2 }
 0x285   :  { %v1773_v31 = vpop.f32.mrf.mxu3  ;;  %v997_v38 = vadd.f32 %v4046_v63, %v996_v29 }
 0x286   :  { %v838_v32 = vpop.f32.mrf.mxu0 }
 0x287   :  { %v839_v33 = vadd.f32 %v4046_v63, %v838_v32  ;;  %v1615_v34 = vpop.f32.mrf.mxu1  ;;  %v1130_v45 = vmax.f32 %v997_v38, 0.0 }
 0x288   :  { %v2600_v35 = vpack.c.bf16 %v1615_v34, %v1613_v27 }
 0x289   :  { %v1067_v37 = vmax.f32 %v839_v33, 0.0 }
 0x28a   :  { %2859 = vst [vmem:[%s4209_s7 + $0xf0] sm:$0xff] %v2600_v35  }
 0x28b   :  { %v2280_v39 = vpack.c.bf16 %v1067_v37, %v1066_v36 }
 0x28c   :  { %v998_v40 = vpop.f32.mrf.mxu2 }
 0x28d   :  { %2796 = vst [vmem:[%s4210_s6 + $0xf0] sm:$0xff] %v2280_v39   ;;  %v999_v41 = vadd.f32 %v4046_v63, %v998_v40  ;;  %v1775_v42 = vpop.f32.mrf.mxu3 }
 0x28e   :  { %v2760_v43 = vpack.c.bf16 %v1775_v42, %v1773_v31  ;;  %v841_v44 = vpop.f32.mrf.mxu0 }
 0x28f   :  { %v1131_v46 = vmax.f32 %v999_v41, 0.0  ;;  %v1618_v47 = vpop.f32.mrf.mxu1  ;;  %v842_v49 = vadd.f32 %v4046_v63, %v841_v44 }
 0x290   :  { %2891 = vst [vmem:[%s4209_s7 + $0x1f0] sm:$0xff] %v2760_v43  }
 0x291   :  { %v2440_v0 = vpack.c.bf16 %v1131_v46, %v1130_v45  ;;  %v1068_v9 = vmax.f32 %v842_v49, 0.0 }
 0x293   :  { %2828 = vst [vmem:[%s4210_s6 + $0x1f0] sm:$0xff] %v2440_v0  }
 0x294   :  { %v1001_v48 = vpop.f32.mrf.mxu2 }
 0x295   :  { %v1778_v50 = vpop.f32.mrf.mxu3  ;;  %v1002_v55 = vadd.f32 %v4046_v63, %v1001_v48 }
 0x296   :  { %v843_v51 = vpop.f32.mrf.mxu0 }
 0x297   :  { %v844_v10 = vadd.f32 %v4046_v63, %v843_v51  ;;  %v1620_v52 = vpop.f32.mrf.mxu1  ;;  %v1132_v62 = vmax.f32 %v1002_v55, 0.0 }
 0x298   :  { %v2605_v53 = vpack.c.bf16 %v1620_v52, %v1618_v47 }
 0x299   :  { %v1069_v54 = vmax.f32 %v844_v10, 0.0 }
 0x29a   :  { %2860 = vst [vmem:[%s4209_s7 + $0xf8] sm:$0xff] %v2605_v53  }
 0x29b   :  { %v2285_v57 = vpack.c.bf16 %v1069_v54, %v1068_v9 }
 0x29c   :  { %v1003_v58 = vpop.f32.mrf.mxu2 }
 0x29d   :  { %2797 = vst [vmem:[%s4210_s6 + $0xf8] sm:$0xff] %v2285_v57   ;;  %v1004_v59 = vadd.f32 %v4046_v63, %v1003_v58  ;;  %v1780_v56 = vpop.f32.mrf.mxu3 }
 0x29e   :  { %v2765_v61 = vpack.c.bf16 %v1780_v56, %v1778_v50 }
 0x29f   :  { %v1133_v18 = vmax.f32 %v1004_v59, 0.0 }
 0x2a0   :  { %2892 = vst [vmem:[%s4209_s7 + $0x1f8] sm:$0xff] %v2765_v61  }
 0x2a1   :  { %v2445_v60 = vpack.c.bf16 %v1133_v18, %v1132_v62 }
 0x2a3   :  { %2829 = vst [vmem:[%s4210_s6 + $0x1f8] sm:$0xff] %v2445_v60  }

// kernel: _lambda_.3
= control target key start
LH: loop header
LB: loop body
LE: loop exit
PB: predicated region body
PF: predicated region fallthrough
CT: control target
= control target key end

     0   :  { %s5339_s18 = smov 0   ;;  %s6874_s0 = inlined_call_operand.vmem [shape: bf16[2,342,128], index: 0, kind: input, shape index: {}]   ;;  %s6875_s1 = inlined_call_operand.vmem [shape: bf16[3,3,128,128], index: 1, kind: input, shape index: {}]   ;;  %s6876_s2 = inlined_call_operand.vmem [shape: f32[1,128], index: 2, kind: input, shape index: {}]   ;;  %s6877_s3 = inlined_call_operand.vmem [shape: bf16[128,128], index: 3, kind: input, shape index: {}]   ;;  %s6878_s4 = inlined_call_operand.vmem [shape: bf16[2,256,128], index: 4, kind: input, shape index: {}]   ;;  %s6879_s5 = inlined_call_operand.vmem [shape: f32[2,256,128], index: 5, kind: output, shape index: {}]  }
   0x1 LB: > { %s4382_s19 = sadd.s32 4294967295, %s5307_s18   ;;  %p4386_p0 = scmp.ge.s32.totalorder %s5307_s18, 1  ;;  %s5307_s18 = sphi %s5339_s18, %s15_s18  }
   0x2   : > { %p197_p1 = scmp.lt.s32.totalorder %s5307_s18, 3 }
   0x4   : > { %p198_p2 = pnand %p4386_p0, %p197_p1 }
   0x6   : > { %201 = sbr.rel (%p198_p2) target bundleno = 1050 (0x41a), region = 40 }
   0xb   : > { %v5080_v0 = vld [vmem:[%s6875_s1 + $0x78] sm:$0xff]  ;;  %p230_p3 = scmp.lt.s32.totalorder %s4382_s19, 1  ;;  %v5079_v2 = vld [vmem:[%s6875_s1 + $0x70] sm:$0xff]  ;;  %v5078_v4 = vld [vmem:[%s6875_s1 + $0x68] sm:$0xff]  ;;  %vm408_vm0 = vsmask.f32 7424 }
   0xc   : > { %v5072_v1 = vld [vmem:[%s6875_s1 + $0x38] sm:$0xff]  ;;  %5265 = vmatpush.bf16.msra.mxu2 %v5080_v0  ;;  %v5071_v3 = vld [vmem:[%s6875_s1 + $0x30] sm:$0xff]  ;;  %623 = vmatpush.bf16.msra.mxu0 %v5080_v0  ;;  %v5070_v5 = vld [vmem:[%s6875_s1 + $0x28] sm:$0xff]  ;;  %vm908_vm1 = vcmask 1046528   ;;  %vm1553_vm2 = vsmask.f32 6400 }
   0xd   : > { %788 = vmatpush.bf16.msra.mxu1 %v5072_v1  ;;  %5273 = vmatpush.bf16.msra.mxu3 %v5072_v1  ;;  %s6945_s19 = smov (!%p230_p3, %s4382_s19), 1  ;;  %v5077_v6 = vld [vmem:[%s6875_s1 + $0x60] sm:$0xff]  ;;  %v5076_v8 = vld [vmem:[%s6875_s1 + $0x58] sm:$0xff]  ;;  %v5075_v12 = vld [vmem:[%s6875_s1 + $0x50] sm:$0xff]  ;;  %vm1946_vm3 = vcmask 1045504   ;;  %vm2984_vm5 = vcmask 1044480  }
   0xe   : > { %s5281_s7 = smul.u32 172, %s6945_s19  ;;  %v5069_v7 = vld [vmem:[%s6875_s1 + $0x20] sm:$0xff]  ;;  %v5068_v9 = vld [vmem:[%s6875_s1 + $0x18] sm:$0xff]  ;;  %v5067_v13 = vld [vmem:[%s6875_s1 + $0x10] sm:$0xff]  ;;  %vm2591_vm4 = vsmask.f32 5376 }
   0xf   : > { %v5074_v18 = vld [vmem:[%s6875_s1 + $0x48] sm:$0xff]  ;;  %v5073_v26 = vld [vmem:[%s6875_s1 + $0x40] sm:$0xff]  ;;  %v5088_v30 = vld [vmem:[%s6875_s1 + $0xb8] sm:$0xff]  ;;  %vm3407_vm6 = vcmask 1040384   ;;  %vm3411_vm7 = vcmask 1041409   ;;  %vm3415_vm8 = vcmask 1042434  }
  0x10   : > { %5266 = vmatpush.bf16.msra.mxu2 %v5079_v2  ;;  %624 = vmatpush.bf16.msra.mxu0 %v5079_v2  ;;  %s5377_s14 = scalar_lea.vmem %s6874_s0, %s5281_s7  ;;  %v5066_v19 = vld [vmem:[%s6875_s1 + $0x8] sm:$0xff]  ;;  %v5065_v27 = vld [vmem:[%s6875_s1] sm:$0xff]  ;;  %v5121_v33 = vld [vmem:[%s6875_s1 + $0x138] sm:$0xff]  ;;  %vm3419_vm9 = vcmask 1043459   ;;  %s5047_s11 = sshll.u32 %s6945_s19, 8 }
  0x11   : > { %789 = vmatpush.bf16.msra.mxu1 %v5071_v3  ;;  %5274 = vmatpush.bf16.msra.mxu3 %v5071_v3  ;;  %v5386_v10 = vld [vmem:[%s5377_s14 + $0x48] sm:$0xff]  ;;  %v5180_v11 = vld [vmem:[%s5377_s14] sm:$0xff]   ;;  %v5396_v14 = vld [vmem:[%s5377_s14 + $0x50] sm:$0xff]  ;;  %s6714_s15 = scalar_lea.vmem %s6879_s5, %s5047_s11 }
  0x12   : > { %v481_v15 = vshll.u32 %v5386_v10, 16  ;;  %v412_v16 = vshll.u32 %v5180_v11, 16  ;;  %v5400_v17 = vld [vmem:[%s5377_s14 + $0x8] sm:$0xff]  ;;  %v485_v21 = vshrl.u32 %v5386_v10, 16  ;;  %v489_v22 = vshll.u32 %v5396_v14, 16  ;;  %v5087_v36 = vld [vmem:[%s6875_s1 + $0xb0] sm:$0xff] }
  0x13   : > { %v410_v23 = vshrl.u32 %v5180_v11, 16  ;;  %v417_v25 = vshll.u32 %v5400_v17, 16  ;;  %v5120_v37 = vld [vmem:[%s6875_s1 + $0x130] sm:$0xff]  ;;  %v5058_v38 = vld [vmem:[%s5377_s14 + $0x58] sm:$0xff]  ;;  %v5086_v41 = vld [vmem:[%s6875_s1 + $0xa8] sm:$0xff]  ;;  %v493_v43 = vshrl.u32 %v5396_v14, 16 }
  0x14   : > { %5267 = vmatpush.bf16.msra.mxu2 %v5078_v4  ;;  %625 = vmatpush.bf16.msra.mxu0 %v5078_v4  ;;  %v5408_v20 = vrot.slane %v481_v15, 1  ;;  %v414_v24 = vrot.slane %v412_v16, 1  ;;  %v491_v29 = vrot.slane %v489_v22, 1  ;;  %v5113_v39 = vld [vmem:[%s6875_s1 + $0xf8] sm:$0xff]  ;;  %v5439_v40 = vld [vmem:[%s5377_s14 + $0x10] sm:$0xff]  ;;  %v5119_v42 = vld [vmem:[%s6875_s1 + $0x128] sm:$0xff] }
  0x15   : > { %790 = vmatpush.bf16.msra.mxu1 %v5070_v5  ;;  %5275 = vmatpush.bf16.msra.mxu3 %v5070_v5  ;;  %v419_v32 = vrot.slane %v417_v25, 1  ;;  %v497_v44 = vshll.u32 %v5058_v38, 16  ;;  %v421_v45 = vshrl.u32 %v5400_v17, 16  ;;  %v425_v46 = vshll.u32 %v5439_v40, 16  ;;  %v5059_v53 = vld [vmem:[%s5377_s14 + $0x60] sm:$0xff]  ;;  %v5112_v54 = vld [vmem:[%s6875_s1 + $0xf0] sm:$0xff] }
  0x16   : > { %v487_v28 = vor.u32 %v485_v21, %v5408_v20  ;;  %v415_v31 = vor.u32 %v414_v24, %v410_v23  ;;  %v495_v47 = vor.u32 %v493_v43, %v491_v29  ;;  %v5085_v55 = vld [vmem:[%s6875_s1 + $0xa0] sm:$0xff]  ;;  %v5461_v56 = vld [vmem:[%s5377_s14 + $0x18] sm:$0xff]  ;;  %v5111_v57 = vld [vmem:[%s6875_s1 + $0xe8] sm:$0xff]  ;;  %v501_v58 = vshrl.u32 %v5058_v38, 16 }
  0x17   : > { %v499_v48 = vrot.slane %v497_v44, 1  ;;  %v423_v49 = vor.u32 %v421_v45, %v419_v32  ;;  %v427_v50 = vrot.slane %v425_v46, 1  ;;  %v505_v59 = vshll.u32 %v5059_v53, 16  ;;  %v5060_v4 = vld [vmem:[%s5377_s14 + $0x68] sm:$0xff]  ;;  %v5118_v5 = vld [vmem:[%s6875_s1 + $0x120] sm:$0xff]  ;;  %v5061_v23 = vld [vmem:[%s5377_s14 + $0x70] sm:$0xff] }
  0x18   : > { %5268 = vmatpush.bf16.msra.mxu2 %v5077_v6  ;;  %626 = vmatpush.bf16.msra.mxu0 %v5077_v6  ;;  %v492_v34 = vsel %vm408_vm0, %v487_v28, %v491_v29  ;;  %v420_v35 = vsel %vm408_vm0, %v415_v31, %v419_v32  ;;  %v429_v60 = vshrl.u32 %v5439_v40, 16  ;;  %v433_v61 = vshll.u32 %v5461_v56, 16  ;;  %v5084_v6 = vld [vmem:[%s6875_s1 + $0x98] sm:$0xff]  ;;  %v5083_v25 = vld [vmem:[%s6875_s1 + $0x90] sm:$0xff] }
  0x19   : > { %791 = vmatpush.bf16.msra.mxu1 %v5069_v7  ;;  %5276 = vmatpush.bf16.msra.mxu3 %v5069_v7  ;;  %v500_v51 = vsel %vm408_vm0, %v495_v47, %v499_v48  ;;  %v428_v52 = vsel %vm408_vm0, %v423_v49, %v427_v50  ;;  %v503_v62 = vor.u32 %v501_v58, %v499_v48  ;;  %v507_v63 = vrot.slane %v505_v59, 1  ;;  %v5110_v7 = vld [vmem:[%s6875_s1 + $0xe0] sm:$0xff]  ;;  %v5117_v24 = vld [vmem:[%s6875_s1 + $0x118] sm:$0xff]  ;;  %v5518_v43 = vld [vmem:[%s5377_s14 + $0x30] sm:$0xff] }
  0x1a   : > { %v431_v0 = vor.u32 %v429_v60, %v427_v50  ;;  %v435_v1 = vrot.slane %v433_v61, 1  ;;  %v517_v28 = vshrl.u32 %v5060_v4, 16  ;;  %v521_v29 = vshll.u32 %v5061_v23, 16  ;;  %v5533_v58 = vld [vmem:[%s5377_s14 + $0x38] sm:$0xff] }
  0x1b   : > { %v508_v2 = vsel %vm408_vm0, %v503_v62, %v507_v63  ;;  %v525_v44 = vshrl.u32 %v5061_v23, 16  ;;  %v457_v47 = vshll.u32 %v5518_v43, 16  ;;  %v461_v61 = vshrl.u32 %v5518_v43, 16 }
  0x1c   : > { %5269 = vmatpush.bf16.msra.mxu2 %v5076_v8  ;;  %627 = vmatpush.bf16.msra.mxu0 %v5076_v8  ;;  %v436_v3 = vsel %vm408_vm0, %v431_v0, %v435_v1  ;;  %v5482_v8 = vld [vmem:[%s5377_s14 + $0x20] sm:$0xff]  ;;  %v465_v62 = vshll.u32 %v5533_v58, 16 }
  0x1d   : > { %792 = vmatpush.bf16.msra.mxu1 %v5068_v9  ;;  %5277 = vmatpush.bf16.msra.mxu3 %v5068_v9  ;;  %v509_v9 = vshrl.u32 %v5059_v53, 16 }
  0x1f   : > { %v511_v15 = vor.u32 %v509_v9, %v507_v63  ;;  %v1147_v9 = vld [vmem:[%s5377_s14 + $0x8] sm:$0xe] }
  0x20   : > { %5270 = vmatpush.bf16.msra.mxu2 %v5075_v12  ;;  %628 = vmatpush.bf16.msra.mxu0 %v5075_v12  ;;  %v437_v12 = vshrl.u32 %v5461_v56, 16 }
  0x21   : > { %793 = vmatpush.bf16.msra.mxu1 %v5067_v13  ;;  %5278 = vmatpush.bf16.msra.mxu3 %v5067_v13  ;;  %v441_v13 = vshll.u32 %v5482_v8, 16 }
  0x24   : > { %5271 = vmatpush.bf16.msra.mxu2 %v5074_v18  ;;  %629 = vmatpush.bf16.msra.mxu0 %v5074_v18  ;;  %v439_v18 = vor.u32 %v437_v12, %v435_v1  ;;  %v5106_v12 = vld [vmem:[%s6875_s1 + $0xc0] sm:$0xff] }
  0x25   : > { %794 = vmatpush.bf16.msra.mxu1 %v5066_v19  ;;  %5279 = vmatpush.bf16.msra.mxu3 %v5066_v19  ;;  %v443_v19 = vrot.slane %v441_v13, 1  ;;  %v1238_v13 = vunpack.c.l.b16 %v1147_v9 }
  0x27   : > { %v444_v22 = vsel %vm408_vm0, %v439_v18, %v443_v19 }
  0x28   : > { %5272 = vmatpush.bf16.msra.mxu2 %v5073_v26  ;;  %630 = vmatpush.bf16.msra.mxu0 %v5073_v26  ;;  %v5109_v26 = vld [vmem:[%s6875_s1 + $0xd8] sm:$0xff] }
  0x29   : > { %795 = vmatpush.bf16.msra.mxu1 %v5065_v27  ;;  %5280 = vmatpush.bf16.msra.mxu3 %v5065_v27  ;;  %v5500_v27 = vld [vmem:[%s5377_s14 + $0x28] sm:$0xff] }
  0x2a   : > { %v449_v31 = vshll.u32 %v5500_v27, 16  ;;  %v453_v46 = vshrl.u32 %v5500_v27, 16 }
  0x2b   : > { %676 = vmatmul.bf16.vlgmr.msra.gmra.mxu2 %v492_v34  ;;  %631 = vmatmul.bf16.vlgmr.msra.gmra.mxu0 %v420_v35 }
  0x2c   : > { %1012 = vmatpush.bf16.msrb.mxu2 %v5088_v30  ;;  %1790 = vmatpush.bf16.msrb.mxu0 %v5121_v33  ;;  %v445_v30 = vshrl.u32 %v5482_v8, 16  ;;  %v523_v33 = vrot.slane %v521_v29, 1  ;;  %v451_v35 = vrot.slane %v449_v31, 1 }
  0x2d   : > { %796 = vmatmul.bf16.vlgmr.msra.gmra.mxu1 %v5180_v11  ;;  %851 = vmatmul.bf16.vlgmr.msra.gmra.mxu3 %v5058_v38  ;;  %v513_v11 = vshll.u32 %v5060_v4, 16  ;;  %v5062_v38 = vld [vmem:[%s5377_s14 + $0x78] sm:$0xff] }
  0x2e   : > { %1397 = vmatpush.bf16.msrb.mxu3 %v5113_v39  ;;  %v447_v34 = vor.u32 %v445_v30, %v443_v19  ;;  %v5116_v39 = vld [vmem:[%s6875_s1 + $0x110] sm:$0xff]  ;;  %v529_v45 = vshll.u32 %v5062_v38, 16  ;;  %v527_v48 = vor.u32 %v525_v44, %v523_v33  ;;  %v455_v50 = vor.u32 %v453_v46, %v451_v35 }
  0x2f   : > { %v515_v16 = vrot.slane %v513_v11, 1  ;;  %v533_v59 = vshrl.u32 %v5062_v38, 16  ;;  %v5549_v11 = vld [vmem:[%s5377_s14 + $0xc] sm:$0xf]  ;;  %v469_v19 = vshrl.u32 %v5533_v58, 16 }
  0x30   : > { %1013 = vmatpush.bf16.msrb.mxu2 %v5087_v36  ;;  %1791 = vmatpush.bf16.msrb.mxu0 %v5120_v37  ;;  %v452_v37 = vsel %vm408_vm0, %v447_v34, %v451_v35  ;;  %v531_v49 = vrot.slane %v529_v45, 1  ;;  %v297_v30 = vld [vmem:[%s5377_s14 + $0x90] sm:$0x1] }
  0x31   : > { %v516_v21 = vsel %vm408_vm0, %v511_v15, %v515_v16  ;;  %v519_v32 = vor.u32 %v517_v28, %v515_v16  ;;  %v1239_v15 = vunpack.c.l.b16 %v5549_v11  ;;  %v388_v34 = vunpack.c.l.b16 %v297_v30 }
  0x32   : > { %1398 = vmatpush.bf16.msrb.mxu3 %v5112_v54  ;;  %v5063_v54 = vld [vmem:[%s5377_s14 + $0x80] sm:$0xff]  ;;  %v535_v63 = vor.u32 %v533_v59, %v531_v49 }
  0x33   : > { %v524_v36 = vsel %vm408_vm0, %v519_v32, %v523_v33  ;;  %v537_v60 = vshll.u32 %v5063_v54, 16  ;;  %v541_v16 = vshrl.u32 %v5063_v54, 16 }
  0x34   : > { %1014 = vmatpush.bf16.msrb.mxu2 %v5086_v41  ;;  %1792 = vmatpush.bf16.msrb.mxu0 %v5119_v42  ;;  %v5108_v41 = vld [vmem:[%s6875_s1 + $0xd0] sm:$0xff]  ;;  %v5082_v42 = vld [vmem:[%s6875_s1 + $0x88] sm:$0xff] }
  0x35   : > { %v539_v0 = vrot.slane %v537_v60, 1 }
  0x36   : > { %1399 = vmatpush.bf16.msrb.mxu3 %v5111_v57  ;;  %v5115_v57 = vld [vmem:[%s6875_s1 + $0x108] sm:$0xff] }
  0x38   : > { %1015 = vmatpush.bf16.msrb.mxu2 %v5085_v55  ;;  %1793 = vmatpush.bf16.msrb.mxu0 %v5118_v5  ;;  %v5107_v55 = vld [vmem:[%s6875_s1 + $0xc8] sm:$0xff] }
  0x3a   : > { %1400 = vmatpush.bf16.msrb.mxu3 %v5110_v7  ;;  %v5545_v7 = vld [vmem:[%s5377_s14 + $0x40] sm:$0xff] }
  0x3b   : > { %681 = vmatmul.bf16.gmra.mxu2 %v500_v51  ;;  %636 = vmatmul.bf16.gmra.mxu0 %v428_v52  ;;  %v459_v51 = vrot.slane %v457_v47, 1  ;;  %v532_v52 = vsel %vm408_vm0, %v527_v48, %v531_v49  ;;  %v477_v46 = vshrl.u32 %v5545_v7, 16  ;;  %v5127_v47 = vld [vmem:[%s6875_s1 + $0x168] sm:$0xff]  ;;  %v5594_v48 = vld [vmem:[%s5377_s14 + $0x18] sm:$0xff] }
  0x3c   : > { %1016 = vmatpush.bf16.msrb.mxu2 %v5084_v6  ;;  %1794 = vmatpush.bf16.msrb.mxu0 %v5117_v24  ;;  %v5064_v6 = vld [vmem:[%s5377_s14 + $0x88] sm:$0xff]  ;;  %v5565_v24 = vpack.c.b16 %v1239_v15, %v1238_v13  ;;  %v5170_v49 = vld [vmem:[%s6875_s1 + $0x238] sm:$0xff] }
  0x3d   : > { %801 = vmatmul.bf16.gmra.mxu1 %v5400_v17  ;;  %856 = vmatmul.bf16.gmra.mxu3 %v5059_v53  ;;  %v460_v53 = vsel %vm408_vm0, %v455_v50, %v459_v51  ;;  %v463_v1 = vor.u32 %v461_v61, %v459_v51  ;;  %v545_v18 = vshll.u32 %v5064_v6, 16  ;;  %v549_v44 = vshrl.u32 %v5064_v6, 16 }
  0x3e   : > { %1401 = vmatpush.bf16.msrb.mxu3 %v5109_v26  ;;  %v1294_v31 = vrot.slane %v5565_v24, 1 }
  0x3f   : > { %v547_v26 = vrot.slane %v545_v18, 1 }
  0x40   : > { %1017 = vmatpush.bf16.msrb.mxu2 %v5083_v25  ;;  %1795 = vmatpush.bf16.msrb.mxu0 %v5116_v39  ;;  %v543_v25 = vor.u32 %v541_v16, %v539_v0  ;;  %v5580_v39 = vpack.c.b16 %v388_v34, %v388_v34  ;;  %v5122_v34 = vld [vmem:[%s6875_s1 + $0x140] sm:$0xff] }
  0x41   : > { %v551_v50 = vor.u32 %v549_v44, %v547_v26  ;;  %v1572_v44 = vshrl.u32 %v5594_v48, 16 }
  0x42   : > { %1402 = vmatpush.bf16.msrb.mxu3 %v5108_v41  ;;  %v548_v33 = vsel %vm408_vm0, %v543_v25, %v547_v26  ;;  %v5162_v41 = vld [vmem:[%s6875_s1 + $0x1f8] sm:$0xff]  ;;  %v553_v45 = vshll.u32 %v5580_v39, 16  ;;  %v5123_v25 = vld [vmem:[%s6875_s1 + $0x148] sm:$0xff]  ;;  %v5632_v26 = vld [vmem:[%s5377_s14 + $0x20] sm:$0xff] }
  0x44   : > { %1018 = vmatpush.bf16.msrb.mxu2 %v5082_v42  ;;  %1796 = vmatpush.bf16.msrb.mxu0 %v5115_v57  ;;  %v5128_v42 = vld [vmem:[%s6875_s1 + $0x170] sm:$0xff]  ;;  %v555_v51 = vrot.slane %v553_v45, 1  ;;  %v1575_v45 = vshll.u32 %v5594_v48, 16 }
  0x46   : > { %1403 = vmatpush.bf16.msrb.mxu3 %v5107_v55  ;;  %v556_v57 = vsel %vm408_vm0, %v551_v50, %v555_v51 }
  0x4a   : > { %1404 = vmatpush.bf16.msrb.mxu3 %v5106_v12 }
  0x4b   : > { %686 = vmatmul.bf16.gmra.mxu2 %v508_v2  ;;  %641 = vmatmul.bf16.gmra.mxu0 %v436_v3  ;;  %v467_v2 = vrot.slane %v465_v62, 1  ;;  %v540_v3 = vsel %vm408_vm0, %v535_v63, %v539_v0  ;;  %v5125_v63 = vld [vmem:[%s6875_s1 + $0x158] sm:$0xff]  ;;  %v5247_v0 = vld [vmem:[%s5377_s14] sm:$0xf0] }
  0x4d   : > { %806 = vmatmul.bf16.gmra.mxu1 %v5439_v40  ;;  %861 = vmatmul.bf16.gmra.mxu3 %v5060_v4  ;;  %v5081_v4 = vld [vmem:[%s6875_s1 + $0x80] sm:$0xff]  ;;  %v468_v5 = vsel %vm408_vm0, %v463_v1, %v467_v2  ;;  %v471_v28 = vor.u32 %v469_v19, %v467_v2  ;;  %v1555_v2 = vshrl.u32 %v5565_v24, 16 }
  0x4e   : > { %1019 = vmatpush.bf16.msrb.mxu2 %v5081_v4  ;;  %2828 = vmatpush.bf16.msra.mxu3 %v5162_v41  ;;  %v5248_v1 = vld [vmem:[%s5377_s14] sm:$0xe] }
  0x4f   : > { %v5249_v12 = vor.u32 %v5248_v1, %v5247_v0  ;;  %v1557_v18 = vrot.slane %v1555_v2, 1  ;;  %v5169_v2 = vld [vmem:[%s6875_s1 + $0x230] sm:$0xff] }
  0x5b   : > { %691 = vmatmul.bf16.gmra.mxu2 %v516_v21  ;;  %646 = vmatmul.bf16.gmra.mxu0 %v444_v22  ;;  %v473_v21 = vshll.u32 %v5545_v7, 16  ;;  %v5114_v22 = vld [vmem:[%s6875_s1 + $0x100] sm:$0xff] }
  0x5c   : > { %1797 = vmatpush.bf16.msrb.mxu0 %v5114_v22 }
  0x5d   : > { %811 = vmatmul.bf16.gmra.mxu1 %v5461_v56  ;;  %866 = vmatmul.bf16.gmra.mxu3 %v5061_v23  ;;  %v5561_v23 = vld [vmem:[%s5377_s14 + $0x10] sm:$0xff]  ;;  %v475_v29 = vrot.slane %v473_v21, 1 }
  0x5e   : > { %v1295_v32 = vrot.slane %v5561_v23, 1  ;;  %v1566_v4 = vshll.u32 %v5561_v23, 16 }
  0x5f   : > { %v476_v35 = vsel %vm408_vm0, %v471_v28, %v475_v29  ;;  %v909_v28 = vrot.slane %v5249_v12, 1  ;;  %v1581_v12 = vshrl.u32 %v5632_v26, 16 }
  0x60   : > { %3088 = vmatpush.bf16.msra.mxu0 %v5170_v49  ;;  %v1568_v22 = vrot.slane %v1566_v4, 2  ;;  %v1925_v4 = vld [vmem:[%s5377_s14 + $0x8] sm:$0xc] }
  0x64   : > { %3089 = vmatpush.bf16.msra.mxu0 %v5169_v2  ;;  %v5716_v2 = vld [vmem:[%s5377_s14 + $0x38] sm:$0xff] }
  0x6b   : > { %696 = vmatmul.bf16.gmra.mxu2 %v524_v36  ;;  %651 = vmatmul.bf16.gmra.mxu0 %v452_v37  ;;  %v1296_v36 = vsel %vm908_vm1, %v1294_v31, %v1295_v32  ;;  %v5129_v37 = vld [vmem:[%s6875_s1 + $0x178] sm:$0xff] }
  0x6c   : > { %2050 = vmatpush.bf16.msrb.mxu1 %v5129_v37 }
  0x6d   : > { %816 = vmatmul.bf16.gmra.mxu1 %v5482_v8  ;;  %871 = vmatmul.bf16.gmra.mxu3 %v5062_v38  ;;  %v5154_v38 = vld [vmem:[%s6875_s1 + $0x1b8] sm:$0xff] }
  0x6e   : > { %2435 = vmatpush.bf16.msra.mxu2 %v5154_v38 }
  0x70   : > { %2051 = vmatpush.bf16.msrb.mxu1 %v5128_v42 }
  0x74   : > { %2052 = vmatpush.bf16.msrb.mxu1 %v5127_v47  ;;  %v5153_v47 = vld [vmem:[%s6875_s1 + $0x1b0] sm:$0xff] }
  0x75   : > { %2436 = vmatpush.bf16.msra.mxu2 %v5153_v47 }
  0x7b   : > { %701 = vmatmul.bf16.gmra.mxu2 %v532_v52  ;;  %656 = vmatmul.bf16.gmra.mxu0 %v460_v53  ;;  %v479_v52 = vor.u32 %v477_v46, %v475_v29  ;;  %v1297_v53 = vrot.slane %v5594_v48, 1  ;;  %v910_v29 = vrot.slane %v5400_v17, 1 }
  0x7d   : > { %821 = vmatmul.bf16.gmra.mxu1 %v5500_v27  ;;  %876 = vmatmul.bf16.gmra.mxu3 %v5063_v54  ;;  %v5126_v54 = vld [vmem:[%s6875_s1 + $0x160] sm:$0xff]  ;;  %v484_v60 = vsel %vm408_vm0, %v479_v52, %v5408_v20  ;;  %v1298_v62 = vsel %vm908_vm1, %v1295_v32, %v1297_v53  ;;  %v1563_v20 = vshrl.u32 %v5561_v23, 16  ;;  %v1574_v52 = vrot.slane %v1572_v44, 1 }
  0x7e   : > { %2053 = vmatpush.bf16.msrb.mxu1 %v5126_v54 }
  0x7f   : > { %v1565_v21 = vrot.slane %v1563_v20, 1 }
  0x81   : > { %v1569_v31 = vor.u32 %v1568_v22, %v1565_v21 }
  0x82   : > { %2054 = vmatpush.bf16.msrb.mxu1 %v5125_v63 }
  0x8b   : > { %706 = vmatmul.bf16.gmra.mxu2 %v540_v3  ;;  %661 = vmatmul.bf16.gmra.mxu0 %v468_v5  ;;  %v1558_v3 = vshll.u32 %v5565_v24, 16 }
  0x8d   : > { %826 = vmatmul.bf16.gmra.mxu1 %v5518_v43  ;;  %881 = vmatmul.bf16.gmra.mxu3 %v5064_v6  ;;  %v5124_v6 = vld [vmem:[%s6875_s1 + $0x150] sm:$0xff]  ;;  %v1560_v19 = vrot.slane %v1558_v3, 2 }
  0x8e   : > { %2055 = vmatpush.bf16.msrb.mxu1 %v5124_v6 }
  0x8f   : > { %v1561_v30 = vor.u32 %v1560_v19, %v1557_v18 }
  0x91   : > { %v1570_v17 = vsel %vm1553_vm2, %v1561_v30, %v1569_v31 }
  0x92   : > { %2056 = vmatpush.bf16.msrb.mxu1 %v5123_v25 }
  0x96   : > { %2057 = vmatpush.bf16.msrb.mxu1 %v5122_v34 }
  0x9b   : > { %711 = vmatmul.bf16.gmra.mxu2 %v548_v33  ;;  %666 = vmatmul.bf16.gmra.mxu0 %v476_v35  ;;  %v1299_v33 = vrot.slane %v5632_v26, 1 }
  0x9d   : > { %831 = vmatmul.bf16.gmra.mxu1 %v5533_v58  ;;  %1405 = vmatmul.bf16.vlgmr.msrb.gmra.mxu3 %v1296_v36  ;;  %v911_v36 = vsel %vm908_vm1, %v909_v28, %v910_v29  ;;  %v1300_v42 = vsel %vm908_vm1, %v1297_v53, %v1299_v33  ;;  %v1577_v53 = vrot.slane %v1575_v45, 2  ;;  %v1583_v28 = vrot.slane %v1581_v12, 1 }
  0xa8   : > { %v632_v59 = vpop.f32.mrf.mxu0 }
  0xaa   : > { %v797_v55 = vpop.f32.mrf.mxu1 }
  0xab   : > { %v5606_v61 = vadd.f32 %v797_v55, %v632_v59  ;;  %716 = vmatmul.bf16.gmra.mxu2 %v556_v57  ;;  %671 = vmatmul.bf16.gmra.mxu0 %v484_v60  ;;  %v5662_v55 = vld [vmem:[%s5377_s14 + $0x28] sm:$0xff]  ;;  %v912_v57 = vrot.slane %v5439_v40, 1  ;;  %v1578_v59 = vor.u32 %v1577_v53, %v1574_v52 }
  0xad   : > { %836 = vmatmul.bf16.gmra.mxu1 %v5545_v7  ;;  %1410 = vmatmul.bf16.gmra.mxu3 %v1298_v62  ;;  %v1301_v62 = vrot.slane %v5662_v55, 1  ;;  %v913_v0 = vsel %vm908_vm1, %v910_v29, %v912_v57  ;;  %v1579_v20 = vsel %vm1553_vm2, %v1569_v31, %v1578_v59  ;;  %v5692_v31 = vld [vmem:[%s5377_s14 + $0x30] sm:$0xff] }
  0xae   : > { %v5619_v5 = vpop.f32.mrf.mxu2  ;;  %v1303_v11 = vrot.slane %v5692_v31, 1 }
  0xaf   : > { %v1302_v40 = vsel %vm908_vm1, %v1299_v33, %v1301_v62  ;;  %v914_v33 = vrot.slane %v5461_v56, 1 }
  0xb0   : > { %v5624_v13 = vpop.f32.mrf.mxu3  ;;  %v634_v16 = vpop.f32.mrf.mxu0 }
  0xb2   : > { %v799_v9 = vpop.f32.mrf.mxu1 }
  0xb3   : > { %v5626_v24 = vadd.f32 %v799_v9, %v634_v16  ;;  %v1944_v9 = vunpack.c.l.b16 %v1925_v4  ;;  %v1584_v16 = vshll.u32 %v5632_v26, 16 }
  0xb5   : > { %v1945_v22 = vpack.c.b16 %v1239_v15, %v1944_v9  ;;  %v1586_v29 = vrot.slane %v1584_v16, 2  ;;  %v1305_v9 = vrot.slane %v5716_v2, 1 }
  0xb6   : > { %v5635_v32 = vpop.f32.mrf.mxu2 }
  0xb7   : > { %v1947_v34 = vrot.slane %v1945_v22, 2 }
  0xb8   : > { %v854_v37 = vpop.f32.mrf.mxu3  ;;  %v637_v38 = vpop.f32.mrf.mxu0 }
  0xba   : > { %v802_v35 = vpop.f32.mrf.mxu1 }
  0xbb   : > { %v5643_v41 = vadd.f32 %v802_v35, %v637_v38  ;;  %1020 = vmatmul.bf16.vlgmr.msrb.gmra.mxu2 %v911_v36  ;;  %1798 = vmatmul.bf16.vlgmr.msrb.gmra.mxu0 %v1570_v17  ;;  %v1948_v35 = vrot.slane %v5561_v23, 2  ;;  %v915_v17 = vsel %vm908_vm1, %v912_v57, %v914_v33  ;;  %v1304_v23 = vsel %vm908_vm1, %v1301_v62, %v1303_v11  ;;  %v5152_v62 = vld [vmem:[%s6875_s1 + $0x1a8] sm:$0xff] }
  0xbc   : > { %2437 = vmatpush.bf16.msra.mxu2 %v5152_v62 }
  0xbd   : > { %841 = vmatmul.bf16.gmra.mxu1 %v5386_v10  ;;  %1415 = vmatmul.bf16.gmra.mxu3 %v1300_v42  ;;  %v5161_v10 = vld [vmem:[%s6875_s1 + $0x1f0] sm:$0xff]  ;;  %v1949_v42 = vsel %vm1946_vm3, %v1947_v34, %v1948_v35 }
  0xbe   : > { %v5649_v46 = vpop.f32.mrf.mxu2  ;;  %2829 = vmatpush.bf16.msra.mxu3 %v5161_v10 }
  0xc0   : > { %v5654_v50 = vpop.f32.mrf.mxu3  ;;  %v639_v51 = vpop.f32.mrf.mxu0 }
  0xc2   : > { %v804_v49 = vpop.f32.mrf.mxu1 }
  0xc3   : > { %v5659_v54 = vadd.f32 %v804_v49, %v639_v51  ;;  %v1593_v49 = vshll.u32 %v5662_v55, 16 }
  0xc6   : > { %v5665_v60 = vpop.f32.mrf.mxu2 }
  0xc8   : > { %v5669_v1 = vpop.f32.mrf.mxu3  ;;  %v642_v3 = vpop.f32.mrf.mxu0 }
  0xca   : > { %v807_v63 = vpop.f32.mrf.mxu1 }
  0xcb   : > { %v5676_v6 = vadd.f32 %v807_v63, %v642_v3  ;;  %1025 = vmatmul.bf16.gmra.mxu2 %v913_v0  ;;  %1803 = vmatmul.bf16.gmra.mxu0 %v1579_v20  ;;  %v1595_v63 = vrot.slane %v1593_v49, 2  ;;  %v5160_v3 = vld [vmem:[%s6875_s1 + $0x1e8] sm:$0xff]  ;;  %v1950_v20 = vrot.slane %v5594_v48, 2  ;;  %v1306_v48 = vsel %vm908_vm1, %v1303_v11, %v1305_v9 }
  0xcc   : > { %2830 = vmatpush.bf16.msra.mxu3 %v5160_v3 }
  0xcd   : > { %846 = vmatmul.bf16.gmra.mxu1 %v5396_v14  ;;  %1420 = vmatmul.bf16.gmra.mxu3 %v1302_v40 }
  0xce   : > { %v687_v18 = vpop.f32.mrf.mxu2 }
  0xcf   : > { %v5683_v19 = vadd.f32 %v5624_v13, %v687_v18  ;;  %v1587_v13 = vor.u32 %v1586_v29, %v1583_v28  ;;  %v1599_v29 = vshrl.u32 %v5692_v31, 16 }
  0xd0   : > { %v5687_v25 = vpop.f32.mrf.mxu3  ;;  %v644_v14 = vpop.f32.mrf.mxu0 }
  0xd1   : > { %v1588_v47 = vsel %vm1553_vm2, %v1578_v59, %v1587_v13 }
  0xd2   : > { %v809_v21 = vpop.f32.mrf.mxu1 }
  0xd3   : > { %v5689_v30 = vadd.f32 %v809_v21, %v644_v14  ;;  %v1951_v21 = vsel %vm1946_vm3, %v1948_v35, %v1950_v20 }
  0xd6   : > { %v689_v36 = vpop.f32.mrf.mxu2 }
  0xd7   : > { %v5697_v15 = vadd.f32 %v854_v37, %v689_v36  ;;  %v1590_v37 = vshrl.u32 %v5662_v55, 16 }
  0xd8   : > { %v864_v44 = vpop.f32.mrf.mxu3  ;;  %v647_v45 = vpop.f32.mrf.mxu0 }
  0xd9   : > { %v1592_v59 = vrot.slane %v1590_v37, 1 }
  0xda   : > { %v812_v38 = vpop.f32.mrf.mxu1 }
  0xdb   : > { %v5702_v56 = vadd.f32 %v812_v38, %v647_v45  ;;  %1030 = vmatmul.bf16.gmra.mxu2 %v915_v17  ;;  %1808 = vmatmul.bf16.gmra.mxu0 %v1588_v47  ;;  %v1596_v4 = vor.u32 %v1595_v63, %v1592_v59  ;;  %v1601_v38 = vrot.slane %v1599_v29, 1  ;;  %v5744_v45 = vld [vmem:[%s5377_s14 + $0x40] sm:$0xff]  ;;  %v918_v47 = vrot.slane %v5500_v27, 1 }
  0xdd   : > { %2058 = vmatmul.bf16.vlgmr.msrb.gmra.mxu1 %v1949_v42  ;;  %1425 = vmatmul.bf16.gmra.mxu3 %v1304_v23  ;;  %v1952_v23 = vrot.slane %v5632_v26, 2  ;;  %v1608_v26 = vshrl.u32 %v5716_v2, 16 }
  0xde   : > { %v692_v10 = vpop.f32.mrf.mxu2 }
  0xdf   : > { %v5708_v51 = vadd.f32 %v5654_v50, %v692_v10  ;;  %v916_v50 = vrot.slane %v5482_v8, 1  ;;  %v1597_v8 = vsel %vm1553_vm2, %v1587_v13, %v1596_v4  ;;  %v1307_v10 = vrot.slane %v5744_v45, 1 }
  0xe0   : > { %v867_v53 = vpop.f32.mrf.mxu3  ;;  %v649_v57 = vpop.f32.mrf.mxu0  ;;  %v1953_v59 = vsel %vm1946_vm3, %v1950_v20, %v1952_v23 }
  0xe1   : > { %v917_v18 = vsel %vm908_vm1, %v914_v33, %v916_v50  ;;  %v1602_v33 = vshll.u32 %v5692_v31, 16  ;;  %v1308_v27 = vsel %vm908_vm1, %v1305_v9, %v1307_v10  ;;  %v920_v9 = vrot.slane %v5518_v43, 1  ;;  %v5159_v43 = vld [vmem:[%s6875_s1 + $0x1e0] sm:$0xff] }
  0xe2   : > { %v814_v52 = vpop.f32.mrf.mxu1  ;;  %2831 = vmatpush.bf16.msra.mxu3 %v5159_v43 }
  0xe3   : > { %v5710_v0 = vadd.f32 %v814_v52, %v649_v57  ;;  %v1604_v17 = vrot.slane %v1602_v33, 2  ;;  %v919_v57 = vsel %vm908_vm1, %v916_v50, %v918_v47 }
  0xe5   : > { %v1605_v37 = vor.u32 %v1604_v17, %v1601_v38  ;;  %v921_v38 = vsel %vm908_vm1, %v918_v47, %v920_v9  ;;  %v1617_v47 = vshrl.u32 %v5744_v45, 16 }
  0xe6   : > { %v694_v40 = vpop.f32.mrf.mxu2 }
  0xe7   : > { %v5725_v12 = vadd.f32 %v5669_v1, %v694_v40  ;;  %v5168_v1 = vld [vmem:[%s6875_s1 + $0x228] sm:$0xff]  ;;  %v1606_v3 = vsel %vm1553_vm2, %v1596_v4, %v1605_v37  ;;  %v1610_v4 = vrot.slane %v1608_v26, 1  ;;  %v1619_v26 = vrot.slane %v1617_v47, 1 }
  0xe8   : > { %v869_v22 = vpop.f32.mrf.mxu3  ;;  %v652_v14 = vpop.f32.mrf.mxu0  ;;  %3090 = vmatpush.bf16.msra.mxu0 %v5168_v1  ;;  %v1954_v1 = vrot.slane %v5662_v55, 2 }
  0xea   : > { %v817_v16 = vpop.f32.mrf.mxu1  ;;  %v1955_v17 = vsel %vm1946_vm3, %v1952_v23, %v1954_v1  ;;  %v1620_v23 = vshll.u32 %v5744_v45, 16 }
  0xeb   : > { %v5730_v28 = vadd.f32 %v817_v16, %v652_v14  ;;  %1035 = vmatmul.bf16.gmra.mxu2 %v917_v18  ;;  %1813 = vmatmul.bf16.gmra.mxu0 %v1597_v8 }
  0xed   : > { %2063 = vmatmul.bf16.gmra.mxu1 %v1951_v21  ;;  %1430 = vmatmul.bf16.gmra.mxu3 %v1306_v48  ;;  %v5764_v48 = vld [vmem:[%s5377_s14 + $0x48] sm:$0xff] }
  0xee   : > { %v697_v34 = vpop.f32.mrf.mxu2 }
  0xef   : > { %v5739_v35 = vadd.f32 %v5687_v25, %v697_v34  ;;  %v1309_v34 = vrot.slane %v5764_v48, 1 }
  0xf0   : > { %v872_v36 = vpop.f32.mrf.mxu3  ;;  %v654_v11 = vpop.f32.mrf.mxu0 }
  0xf2   : > { %v819_v13 = vpop.f32.mrf.mxu1 }
  0xf3   : > { %v5741_v42 = vadd.f32 %v819_v13, %v654_v11 }
  0xf6   : > { %v699_v49 = vpop.f32.mrf.mxu2 }
  0xf7   : > { %v5749_v52 = vadd.f32 %v864_v44, %v699_v49  ;;  %v1611_v44 = vshll.u32 %v5716_v2, 16 }
  0xf8   : > { %v874_v63 = vpop.f32.mrf.mxu3  ;;  %v657_v62 = vpop.f32.mrf.mxu0 }
  0xf9   : > { %v1613_v14 = vrot.slane %v1611_v44, 2  ;;  %v1622_v44 = vrot.slane %v1620_v23, 2 }
  0xfa   : > { %v822_v25 = vpop.f32.mrf.mxu1 }
  0xfb   : > { %v5754_v40 = vadd.f32 %v822_v25, %v657_v62  ;;  %1040 = vmatmul.bf16.gmra.mxu2 %v919_v57  ;;  %1818 = vmatmul.bf16.gmra.mxu0 %v1606_v3  ;;  %v1614_v29 = vor.u32 %v1613_v14, %v1610_v4  ;;  %v1310_v57 = vsel %vm908_vm1, %v1307_v10, %v1309_v34  ;;  %v1956_v4 = vrot.slane %v5692_v31, 2 }
  0xfc   : > { %v1626_v31 = vshrl.u32 %v5764_v48, 16 }
  0xfd   : > { %2068 = vmatmul.bf16.gmra.mxu1 %v1953_v59  ;;  %1435 = vmatmul.bf16.gmra.mxu3 %v1308_v27  ;;  %v1615_v25 = vsel %vm1553_vm2, %v1605_v37, %v1614_v29  ;;  %v5167_v27 = vld [vmem:[%s6875_s1 + $0x220] sm:$0xff] }
  0xfe   : > { %v702_v50 = vpop.f32.mrf.mxu2  ;;  %3091 = vmatpush.bf16.msra.mxu0 %v5167_v27 }
  0xff   : > { %v5759_v16 = vadd.f32 %v867_v53, %v702_v50  ;;  %v5151_v53 = vld [vmem:[%s6875_s1 + $0x1a0] sm:$0xff] }
 0x100   : > { %v877_v18 = vpop.f32.mrf.mxu3  ;;  %v659_v21 = vpop.f32.mrf.mxu0  ;;  %2438 = vmatpush.bf16.msra.mxu2 %v5151_v53 }
 0x101   : > { %6883 = vst [vmem:[#allocation2_spill] sm:$0xff] %v5759_v16 }
 0x102   : > { %v824_v20 = vpop.f32.mrf.mxu1 }
 0x103   : > { %v5761_v8 = vadd.f32 %v824_v20, %v659_v21  ;;  %v5793_v20 = vld [vmem:[%s5377_s14 + $0x50] sm:$0xff]  ;;  %v922_v21 = vrot.slane %v5533_v58, 1 }
 0x106   : > { %v704_v33 = vpop.f32.mrf.mxu2 }
 0x107   : > { %v5769_v13 = vadd.f32 %v869_v22, %v704_v33  ;;  %v1311_v33 = vrot.slane %v5793_v20, 1 }
 0x108   : > { %v879_v49 = vpop.f32.mrf.mxu3  ;;  %v662_v55 = vpop.f32.mrf.mxu0 }
 0x109   : > { %6884 = vst [vmem:[#allocation3_spill] sm:$0xff] %v5769_v13  ;;  %v1312_v58 = vsel %vm908_vm1, %v1309_v34, %v1311_v33  ;;  %v5815_v34 = vld [vmem:[%s5377_s14 + $0x58] sm:$0xff] }
 0x10a   : > { %v827_v11 = vpop.f32.mrf.mxu1 }
 0x10b   : > { %v5780_v22 = vadd.f32 %v827_v11, %v662_v55  ;;  %1045 = vmatmul.bf16.gmra.mxu2 %v921_v38  ;;  %1823 = vmatmul.bf16.gmra.mxu0 %v1615_v25  ;;  %v923_v38 = vsel %vm908_vm1, %v920_v9, %v922_v21 }
 0x10d   : > { %2073 = vmatmul.bf16.gmra.mxu1 %v1955_v17  ;;  %1440 = vmatmul.bf16.gmra.mxu3 %v1310_v57  ;;  %v1957_v17 = vsel %vm1946_vm3, %v1954_v1, %v1956_v4 }
 0x10e   : > { %v707_v59 = vpop.f32.mrf.mxu2 }
 0x10f   : > { %v5785_v62 = vadd.f32 %v872_v36, %v707_v59  ;;  %v1623_v36 = vor.u32 %v1622_v44, %v1619_v26  ;;  %v1628_v59 = vrot.slane %v1626_v31, 1  ;;  %v1958_v26 = vrot.slane %v5716_v2, 2  ;;  %v5150_v2 = vld [vmem:[%s6875_s1 + $0x198] sm:$0xff] }
 0x110   : > { %v882_v37 = vpop.f32.mrf.mxu3  ;;  %v664_v10 = vpop.f32.mrf.mxu0  ;;  %2439 = vmatpush.bf16.msra.mxu2 %v5150_v2 }
 0x111   : > { %6885 = vst [vmem:[#allocation4_spill] sm:$0xff] %v5785_v62  ;;  %v1624_v25 = vsel %vm1553_vm2, %v1614_v29, %v1623_v36 }
 0x112   : > { %v829_v3 = vpop.f32.mrf.mxu1 }
 0x113   : > { %v5790_v50 = vadd.f32 %v829_v3, %v664_v10  ;;  %v924_v10 = vrot.slane %v5545_v7, 1 }
 0x116   : > { %v709_v14 = vpop.f32.mrf.mxu2 }
 0x117   : > { %v5798_v53 = vadd.f32 %v874_v63, %v709_v14  ;;  %v1629_v63 = vshll.u32 %v5764_v48, 16 }
 0x118   : > { %v884_v43 = vpop.f32.mrf.mxu3  ;;  %v667_v55 = vpop.f32.mrf.mxu0 }
 0x119   : > { %6886 = vst [vmem:[#allocation5_spill] sm:$0xff] %v5798_v53  ;;  %v1631_v3 = vrot.slane %v1629_v63, 2 }
 0x11a   : > { %v832_v11 = vpop.f32.mrf.mxu1 }
 0x11b   : > { %v5803_v57 = vadd.f32 %v832_v11, %v667_v55  ;;  %1050 = vmatmul.bf16.gmra.mxu2 %v923_v38  ;;  %1828 = vmatmul.bf16.gmra.mxu0 %v1624_v25  ;;  %v1632_v44 = vor.u32 %v1631_v3, %v1628_v59  ;;  %v1313_v11 = vrot.slane %v5815_v34, 1  ;;  %v1959_v55 = vsel %vm1946_vm3, %v1956_v4, %v1958_v26 }
 0x11c   : > { %v1638_v4 = vshll.u32 %v5793_v20, 16 }
 0x11d   : > { %2078 = vmatmul.bf16.gmra.mxu1 %v1957_v17  ;;  %1445 = vmatmul.bf16.gmra.mxu3 %v1312_v58  ;;  %v925_v17 = vsel %vm908_vm1, %v922_v21, %v924_v10  ;;  %v1633_v31 = vsel %vm1553_vm2, %v1623_v36, %v1632_v44  ;;  %v1314_v7 = vsel %vm908_vm1, %v1311_v33, %v1313_v11  ;;  %v1635_v21 = vshrl.u32 %v5793_v20, 16 }
 0x11e   : > { %v712_v9 = vpop.f32.mrf.mxu2  ;;  %v1640_v3 = vrot.slane %v1638_v4, 2 }
 0x11f   : > { %v5808_v47 = vadd.f32 %v877_v18, %v712_v9  ;;  %v1637_v59 = vrot.slane %v1635_v21, 1 }
 0x120   : > { %v5810_v23 = vpop.f32.mrf.mxu3  ;;  %v669_v29 = vpop.f32.mrf.mxu0 }
 0x121   : > { %6887 = vst [vmem:[#allocation6_spill] sm:$0xff] %v5808_v47 }
 0x122   : > { %v834_v1 = vpop.f32.mrf.mxu1 }
 0x123   : > { %v5812_v27 = vadd.f32 %v834_v1, %v669_v29 }
 0x126   : > { %v714_v14 = vpop.f32.mrf.mxu2 }
 0x127   : > { %v5820_v18 = vadd.f32 %v879_v49, %v714_v14  ;;  %v5158_v49 = vld [vmem:[%s6875_s1 + $0x1d8] sm:$0xff] }
 0x128   : > { %v5824_v25 = vpop.f32.mrf.mxu3  ;;  %v672_v58 = vpop.f32.mrf.mxu0  ;;  %2832 = vmatpush.bf16.msra.mxu3 %v5158_v49  ;;  %v5166_v14 = vld [vmem:[%s6875_s1 + $0x218] sm:$0xff] }
 0x129   : > { %6888 = vst [vmem:[#allocation7_spill] sm:$0xff] %v5820_v18  ;;  %3092 = vmatpush.bf16.msra.mxu0 %v5166_v14  ;;  %v1962_v18 = vrot.slane %v5764_v48, 2 }
 0x12a   : > { %v837_v38 = vpop.f32.mrf.mxu1 }
 0x12b   : > { %v5827_v63 = vadd.f32 %v837_v38, %v672_v58  ;;  %1055 = vmatmul.bf16.gmra.mxu2 %v925_v17  ;;  %1833 = vmatmul.bf16.gmra.mxu0 %v1633_v31  ;;  %v5848_v17 = vld [vmem:[%s5377_s14 + $0x60] sm:$0xff]  ;;  %v1641_v31 = vor.u32 %v1640_v3, %v1637_v59  ;;  %v1647_v59 = vshll.u32 %v5815_v34, 16 }
 0x12c   : > { %v1315_v2 = vrot.slane %v5848_v17, 1 }
 0x12d   : > { %2083 = vmatmul.bf16.gmra.mxu1 %v1959_v55  ;;  %1450 = vmatmul.bf16.gmra.mxu3 %v1314_v7  ;;  %v5291_v55 = vld [vmem:[%s5377_s14 + $0x48] sm:$0xff]  ;;  %v1642_v14 = vsel %vm1553_vm2, %v1632_v44, %v1641_v31 }
 0x12e   : > { %v717_v36 = vpop.f32.mrf.mxu2  ;;  %v926_v58 = vrot.slane %v5291_v55, 1 }
 0x12f   : > { %v5838_v33 = vadd.f32 %v882_v37, %v717_v36  ;;  %v1960_v37 = vrot.slane %v5744_v45, 2  ;;  %v1316_v45 = vsel %vm908_vm1, %v1313_v11, %v1315_v2 }
 0x130   : > { %v5840_v1 = vpop.f32.mrf.mxu3  ;;  %v674_v29 = vpop.f32.mrf.mxu0  ;;  %v927_v4 = vsel %vm908_vm1, %v924_v10, %v926_v58 }
 0x131   : > { %6889 = vst [vmem:[#allocation8_spill] sm:$0xff] %v5838_v33  ;;  %v1961_v36 = vsel %vm1946_vm3, %v1958_v26, %v1960_v37 }
 0x132   : > { %v839_v9 = vpop.f32.mrf.mxu1 }
 0x133   : > { %v5845_v38 = vadd.f32 %v839_v9, %v674_v29 }
 0x136   : > { %v719_v7 = vpop.f32.mrf.mxu2 }
 0x137   : > { %v5853_v49 = vadd.f32 %v884_v43, %v719_v7  ;;  %v1644_v43 = vshrl.u32 %v5815_v34, 16 }
 0x138   : > { %v5859_v9 = vpop.f32.mrf.mxu3  ;;  %v1799_v29 = vpop.f32.mrf.mxu0 }
 0x139   : > { %6890 = vst [vmem:[#allocation9_spill] sm:$0xff] %v5853_v49  ;;  %v1646_v11 = vrot.slane %v1644_v43, 1  ;;  %v5872_v49 = vld [vmem:[%s5377_s14 + $0x68] sm:$0xff]  ;;  %v1963_v43 = vsel %vm1946_vm3, %v1960_v37, %v1962_v18 }
 0x13a   : > { %v5855_v21 = vpop.f32.mrf.mxu1 }
 0x13b   : > { %1060 = vmatmul.bf16.gmra.mxu2 %v927_v4  ;;  %1838 = vmatmul.bf16.gmra.mxu0 %v1642_v14  ;;  %v1649_v4 = vrot.slane %v1647_v59, 2  ;;  %v5292_v14 = vld [vmem:[%s5377_s14 + $0x50] sm:$0xff] }
 0x13c   : > { %v928_v33 = vrot.slane %v5292_v14, 1 }
 0x13d   : > { %2088 = vmatmul.bf16.gmra.mxu1 %v1961_v36  ;;  %1455 = vmatmul.bf16.gmra.mxu3 %v1316_v45  ;;  %v1650_v45 = vor.u32 %v1649_v4, %v1646_v11 }
 0x13e   : > { %v1021_v10 = vpop.f32.mrf.mxu2 }
 0x13f   : > { %v1111_v26 = vadd.f32 %v1021_v10, %v5606_v61  ;;  %v1317_v61 = vrot.slane %v5872_v49, 1 }
 0x140   : > { %v5868_v55 = vpop.f32.mrf.mxu3  ;;  %v1801_v7 = vpop.f32.mrf.mxu0 }
 0x141   : > { %v1496_v44 = vadd.f32 %v5810_v23, %v1111_v26  ;;  %v929_v23 = vsel %vm908_vm1, %v926_v58, %v928_v33  ;;  %v1318_v48 = vsel %vm908_vm1, %v1315_v2, %v1317_v61 }
 0x142   : > { %v5866_v3 = vpop.f32.mrf.mxu1 }
 0x143   : > { %v1889_v36 = vadd.f32 %v1799_v29, %v1496_v44  ;;  %v1651_v44 = vsel %vm1553_vm2, %v1641_v31, %v1650_v45 }
 0x146   : > { %v1023_v47 = vpop.f32.mrf.mxu2 }
 0x147   : > { %v1112_v10 = vadd.f32 %v1023_v47, %v5626_v24  ;;  %v1653_v24 = vshrl.u32 %v5848_v17, 16  ;;  %v1656_v47 = vshll.u32 %v5848_v17, 16 }
 0x148   : > { %v5882_v59 = vpop.f32.mrf.mxu3  ;;  %v1804_v26 = vpop.f32.mrf.mxu0 }
 0x149   : > { %v1497_v29 = vadd.f32 %v5824_v25, %v1112_v10  ;;  %v1655_v14 = vrot.slane %v1653_v24, 1  ;;  %v1658_v10 = vrot.slane %v1656_v47, 2 }
 0x14a   : > { %v5878_v53 = vpop.f32.mrf.mxu1 }
 0x14b   : > { %1065 = vmatmul.bf16.gmra.mxu2 %v929_v23  ;;  %v1890_v11 = vadd.f32 %v1801_v7, %v1497_v29  ;;  %1843 = vmatmul.bf16.gmra.mxu0 %v1651_v44  ;;  %v5149_v7 = vld [vmem:[%s6875_s1 + $0x190] sm:$0xff]  ;;  %v5293_v29 = vld [vmem:[%s5377_s14 + $0x58] sm:$0xff] }
 0x14c   : > { %v5157_v23 = vld [vmem:[%s6875_s1 + $0x1d0] sm:$0xff]  ;;  %2440 = vmatpush.bf16.msra.mxu2 %v5149_v7  ;;  %v930_v44 = vrot.slane %v5293_v29, 1 }
 0x14d   : > { %2093 = vmatmul.bf16.gmra.mxu1 %v1963_v43  ;;  %1460 = vmatmul.bf16.gmra.mxu3 %v1318_v48  ;;  %v5902_v43 = vld [vmem:[%s5377_s14 + $0x70] sm:$0xff]  ;;  %v1659_v48 = vor.u32 %v1658_v10, %v1655_v14 }
 0x14e   : > { %v1026_v58 = vpop.f32.mrf.mxu2  ;;  %2833 = vmatpush.bf16.msra.mxu3 %v5157_v23  ;;  %v1319_v47 = vrot.slane %v5902_v43, 1  ;;  %v931_v62 = vsel %vm908_vm1, %v928_v33, %v930_v44  ;;  %v5165_v14 = vld [vmem:[%s6875_s1 + $0x210] sm:$0xff] }
 0x14f   : > { %v1113_v37 = vadd.f32 %v1026_v58, %v5643_v41  ;;  %3093 = vmatpush.bf16.msra.mxu0 %v5165_v14 }
 0x150   : > { %v5892_v4 = vpop.f32.mrf.mxu3  ;;  %v1806_v2 = vpop.f32.mrf.mxu0 }
 0x151   : > { %v1498_v31 = vadd.f32 %v5840_v1, %v1113_v37  ;;  %v1964_v1 = vrot.slane %v5793_v20, 2  ;;  %v1660_v20 = vsel %vm1553_vm2, %v1650_v45, %v1659_v48 }
 0x152   : > { %v5890_v25 = vpop.f32.mrf.mxu1 }
 0x153   : > { %v1891_v41 = vadd.f32 %v1804_v26, %v1498_v31  ;;  %v1965_v13 = vsel %vm1946_vm3, %v1962_v18, %v1964_v1  ;;  %v1662_v18 = vshrl.u32 %v5872_v49, 16 }
 0x156   : > { %v1028_v24 = vpop.f32.mrf.mxu2 }
 0x157   : > { %v1114_v58 = vadd.f32 %v1028_v24, %v5659_v54  ;;  %v1320_v54 = vsel %vm908_vm1, %v1317_v61, %v1319_v47  ;;  %v5178_v24 = vld [vmem:[%s6877_s3 + $0x38] sm:$0xff] }
 0x158   : > { %v5910_v16 = vpop.f32.mrf.mxu3  ;;  %v1809_v7 = vpop.f32.mrf.mxu0  ;;  %4194 = vmatpush.bf16.msra.mxu1 %v5178_v24 }
 0x159   : > { %v1499_v26 = vadd.f32 %v5859_v9, %v1114_v58  ;;  %v1665_v9 = vshll.u32 %v5872_v49, 16  ;;  %v5932_v58 = vld [vmem:[%s5377_s14 + $0x78] sm:$0xff] }
 0x15a   : > { %v2059_v37 = vpop.f32.mrf.mxu1 }
 0x15b   : > { %v5913_v31 = vadd.f32 %v2059_v37, %v1889_v36  ;;  %1070 = vmatmul.bf16.gmra.mxu2 %v931_v62  ;;  %v1892_v33 = vadd.f32 %v1806_v2, %v1499_v26  ;;  %1848 = vmatmul.bf16.gmra.mxu0 %v1660_v20  ;;  %v1664_v2 = vrot.slane %v1662_v18, 1  ;;  %v1667_v29 = vrot.slane %v1665_v9, 2  ;;  %v5294_v26 = vld [vmem:[%s5377_s14 + $0x60] sm:$0xff] }
 0x15c   : > { %v1966_v20 = vrot.slane %v5815_v34, 2 }
 0x15d   : > { %2098 = vmatmul.bf16.gmra.mxu1 %v1965_v13  ;;  %1465 = vmatmul.bf16.gmra.mxu3 %v1320_v54  ;;  %v1668_v14 = vor.u32 %v1667_v29, %v1664_v2 }
 0x15e   : > { %v1031_v36 = vpop.f32.mrf.mxu2 }
 0x15f   : > { %v1115_v45 = vadd.f32 %v1031_v36, %v5676_v6  ;;  %v932_v6 = vrot.slane %v5294_v26, 1  ;;  %v1967_v36 = vsel %vm1946_vm3, %v1964_v1, %v1966_v20  ;;  %v1669_v34 = vsel %vm1553_vm2, %v1659_v48, %v1668_v14 }
 0x160   : > { %v5923_v23 = vpop.f32.mrf.mxu3  ;;  %v1811_v13 = vpop.f32.mrf.mxu0 }
 0x161   : > { %v1500_v61 = vadd.f32 %v5868_v55, %v1115_v45  ;;  %v1321_v55 = vrot.slane %v5932_v58, 1  ;;  %v933_v9 = vsel %vm908_vm1, %v930_v44, %v932_v6  ;;  %v1674_v44 = vshll.u32 %v5902_v43, 16 }
 0x162   : > { %v2061_v10 = vpop.f32.mrf.mxu1 }
 0x163   : > { %v5926_v62 = vadd.f32 %v2061_v10, %v1890_v11  ;;  %v1893_v37 = vadd.f32 %v1809_v7, %v1500_v61  ;;  %v1322_v2 = vsel %vm908_vm1, %v1319_v47, %v1321_v55 }
 0x166   : > { %v1033_v54 = vpop.f32.mrf.mxu2 }
 0x167   : > { %v1116_v11 = vadd.f32 %v1033_v54, %v5689_v30  ;;  %v1671_v30 = vshrl.u32 %v5902_v43, 16  ;;  %v1676_v54 = vrot.slane %v1674_v44, 2 }
 0x168   : > { %v5940_v45 = vpop.f32.mrf.mxu3  ;;  %v1814_v61 = vpop.f32.mrf.mxu0 }
 0x169   : > { %v1501_v7 = vadd.f32 %v5882_v59, %v1116_v11  ;;  %v5148_v11 = vld [vmem:[%s6875_s1 + $0x188] sm:$0xff] }
 0x16a   : > { %v2064_v18 = vpop.f32.mrf.mxu1  ;;  %2441 = vmatpush.bf16.msra.mxu2 %v5148_v11 }
 0x16b   : > { %v5943_v10 = vadd.f32 %v2064_v18, %v1891_v41  ;;  %1075 = vmatmul.bf16.gmra.mxu2 %v933_v9  ;;  %v1894_v29 = vadd.f32 %v1811_v13, %v1501_v7  ;;  %1853 = vmatmul.bf16.gmra.mxu0 %v1669_v34  ;;  %v1673_v13 = vrot.slane %v1671_v30, 1  ;;  %v5156_v18 = vld [vmem:[%s6875_s1 + $0x1c8] sm:$0xff]  ;;  %v5962_v9 = vld [vmem:[%s5377_s14 + $0x80] sm:$0xff] }
 0x16c   : > { %2834 = vmatpush.bf16.msra.mxu3 %v5156_v18 }
 0x16d   : > { %2103 = vmatmul.bf16.gmra.mxu1 %v1967_v36  ;;  %1470 = vmatmul.bf16.gmra.mxu3 %v1322_v2  ;;  %v5295_v36 = vld [vmem:[%s5377_s14 + $0x68] sm:$0xff]  ;;  %v1677_v7 = vor.u32 %v1676_v54, %v1673_v13  ;;  %v1323_v2 = vrot.slane %v5962_v9, 1 }
 0x16e   : > { %v1036_v1 = vpop.f32.mrf.mxu2 }
 0x16f   : > { %v1117_v59 = vadd.f32 %v1036_v1, %v5702_v56  ;;  %v1324_v13 = vsel %vm908_vm1, %v1321_v55, %v1323_v2 }
 0x170   : > { %v5950_v24 = vpop.f32.mrf.mxu3  ;;  %v1816_v26 = vpop.f32.mrf.mxu0 }
 0x171   : > { %v1502_v48 = vadd.f32 %v5892_v4, %v1117_v59  ;;  %v934_v4 = vrot.slane %v5295_v36, 1 }
 0x172   : > { %v2066_v41 = vpop.f32.mrf.mxu1 }
 0x173   : > { %v5953_v47 = vadd.f32 %v2066_v41, %v1892_v33  ;;  %v1895_v56 = vadd.f32 %v1814_v61, %v1502_v48  ;;  %v1968_v33 = vrot.slane %v5848_v17, 2  ;;  %v935_v1 = vsel %vm908_vm1, %v932_v6, %v934_v4 }
 0x174   : > { %v1678_v17 = vsel %vm1553_vm2, %v1668_v14, %v1677_v7  ;;  %v1680_v6 = vshrl.u32 %v5932_v58, 16 }
 0x175   : > { %6891 = vst [vmem:[#allocation10_spill] sm:$0xff] %v5953_v47  ;;  %v1969_v59 = vsel %vm1946_vm3, %v1966_v20, %v1968_v33 }
 0x176   : > { %v1038_v34 = vpop.f32.mrf.mxu2 }
 0x177   : > { %v1118_v30 = vadd.f32 %v1038_v34, %v5710_v0  ;;  %v5164_v0 = vld [vmem:[%s6875_s1 + $0x208] sm:$0xff]  ;;  %v1682_v34 = vrot.slane %v1680_v6, 1 }
 0x178   : > { %v5970_v41 = vpop.f32.mrf.mxu3  ;;  %v1819_v11 = vpop.f32.mrf.mxu0  ;;  %3094 = vmatpush.bf16.msra.mxu0 %v5164_v0 }
 0x179   : > { %v1503_v61 = vadd.f32 %v5910_v16, %v1118_v30  ;;  %v1683_v16 = vshll.u32 %v5932_v58, 16 }
 0x17a   : > { %v2069_v44 = vpop.f32.mrf.mxu1 }
 0x17b   : > { %v5973_v48 = vadd.f32 %v2069_v44, %v1893_v37  ;;  %1080 = vmatmul.bf16.gmra.mxu2 %v935_v1  ;;  %v1896_v54 = vadd.f32 %v1816_v26, %v1503_v61  ;;  %1858 = vmatmul.bf16.gmra.mxu0 %v1678_v17  ;;  %v1685_v30 = vrot.slane %v1683_v16, 2  ;;  %v5177_v44 = vld [vmem:[%s6877_s3 + $0x30] sm:$0xff]  ;;  %v5992_v1 = vld [vmem:[%s5377_s14 + $0x88] sm:$0xff]  ;;  %v1970_v17 = vrot.slane %v5872_v49, 2 }
 0x17c   : > { %4195 = vmatpush.bf16.msra.mxu1 %v5177_v44  ;;  %v5296_v61 = vld [vmem:[%s5377_s14 + $0x70] sm:$0xff] }
 0x17d   : > { %6892 = vst [vmem:[#allocation11_spill] sm:$0xff] %v5973_v48  ;;  %2108 = vmatmul.bf16.gmra.mxu1 %v1969_v59  ;;  %1475 = vmatmul.bf16.gmra.mxu3 %v1324_v13  ;;  %v1686_v13 = vor.u32 %v1685_v30, %v1682_v34 }
 0x17e   : > { %v1041_v37 = vpop.f32.mrf.mxu2 }
 0x17f   : > { %v1119_v20 = vadd.f32 %v1041_v37, %v5730_v28  ;;  %v936_v28 = vrot.slane %v5296_v61, 1  ;;  %v1971_v37 = vsel %vm1946_vm3, %v1968_v33, %v1970_v17  ;;  %v1687_v49 = vsel %vm1553_vm2, %v1677_v7, %v1686_v13 }
 0x180   : > { %v5983_v55 = vpop.f32.mrf.mxu3  ;;  %v1821_v36 = vpop.f32.mrf.mxu0  ;;  %v1692_v33 = vshll.u32 %v5962_v9, 16 }
 0x181   : > { %v1504_v26 = vadd.f32 %v5923_v23, %v1119_v20  ;;  %v1325_v23 = vrot.slane %v5992_v1, 1  ;;  %v937_v16 = vsel %vm908_vm1, %v934_v4, %v936_v28  ;;  %v1689_v4 = vshrl.u32 %v5962_v9, 16 }
 0x182   : > { %v2071_v14 = vpop.f32.mrf.mxu1 }
 0x183   : > { %v5986_v18 = vadd.f32 %v2071_v14, %v1894_v29  ;;  %v1897_v59 = vadd.f32 %v1819_v11, %v1504_v26  ;;  %v1326_v34 = vsel %vm908_vm1, %v1323_v2, %v1325_v23 }
 0x185   : > { %6893 = vst [vmem:[#allocation12_spill] sm:$0xff] %v5986_v18 }
 0x186   : > { %v1043_v0 = vpop.f32.mrf.mxu2 }
 0x187   : > { %v1120_v29 = vadd.f32 %v1043_v0, %v5741_v42  ;;  %v1691_v0 = vrot.slane %v1689_v4, 1 }
 0x188   : > { %v6000_v20 = vpop.f32.mrf.mxu3  ;;  %v1824_v26 = vpop.f32.mrf.mxu0 }
 0x189   : > { %v1505_v11 = vadd.f32 %v5940_v45, %v1120_v29  ;;  %v6016_v29 = vld [vmem:[%s5377_s14 + $0x90] sm:$0xff] }
 0x18a   : > { %v2074_v6 = vpop.f32.mrf.mxu1 }
 0x18b   : > { %v6003_v14 = vadd.f32 %v2074_v6, %v1895_v56  ;;  %1085 = vmatmul.bf16.gmra.mxu2 %v937_v16  ;;  %v1898_v42 = vadd.f32 %v1821_v36, %v1505_v11  ;;  %1863 = vmatmul.bf16.gmra.mxu0 %v1687_v49  ;;  %v1694_v36 = vrot.slane %v1692_v33, 2  ;;  %v5297_v16 = vld [vmem:[%s5377_s14 + $0x78] sm:$0xff]  ;;  %v1972_v11 = vrot.slane %v5902_v43, 2 }
 0x18d   : > { %6894 = vst [vmem:[#allocation13_spill] sm:$0xff] %v6003_v14  ;;  %2113 = vmatmul.bf16.gmra.mxu1 %v1971_v37  ;;  %1480 = vmatmul.bf16.gmra.mxu3 %v1326_v34  ;;  %v938_v37 = vrot.slane %v5297_v16, 1  ;;  %v1695_v49 = vor.u32 %v1694_v36, %v1691_v0 }
 0x18e   : > { %v1046_v30 = vpop.f32.mrf.mxu2 }
 0x18f   : > { %v1121_v45 = vadd.f32 %v1046_v30, %v5754_v40  ;;  %v1327_v40 = vrot.slane %v6016_v29, 1  ;;  %v1696_v43 = vsel %vm1553_vm2, %v1686_v13, %v1695_v49  ;;  %v1183_v13 = vld [vmem:[%s5377_s14 + $0x98] sm:$0x1] }
 0x190   : > { %v6010_v44 = vpop.f32.mrf.mxu3  ;;  %v1826_v61 = vpop.f32.mrf.mxu0 }
 0x191   : > { %v1506_v7 = vadd.f32 %v5950_v24, %v1121_v45  ;;  %v939_v24 = vsel %vm908_vm1, %v936_v28, %v938_v37  ;;  %v5155_v28 = vld [vmem:[%s6875_s1 + $0x1c0] sm:$0xff] }
 0x192   : > { %v2076_v56 = vpop.f32.mrf.mxu1  ;;  %2835 = vmatpush.bf16.msra.mxu3 %v5155_v28 }
 0x193   : > { %v6013_v2 = vadd.f32 %v2076_v56, %v1896_v54  ;;  %v1899_v6 = vadd.f32 %v1824_v26, %v1506_v7  ;;  %v1973_v54 = vsel %vm1946_vm3, %v1970_v17, %v1972_v11  ;;  %v5147_v56 = vld [vmem:[%s6875_s1 + $0x180] sm:$0xff]  ;;  %v1274_v7 = vunpack.c.l.b16 %v1183_v13 }
 0x194   : > { %2442 = vmatpush.bf16.msra.mxu2 %v5147_v56  ;;  %v6052_v56 = vld [vmem:[%s5377_s14 + $0x80] sm:$0xff] }
 0x195   : > { %6895 = vst [vmem:[#allocation14_spill] sm:$0xff] %v6013_v2 }
 0x196   : > { %v1048_v34 = vpop.f32.mrf.mxu2 }
 0x197   : > { %v1122_v30 = vadd.f32 %v1048_v34, %v5761_v8  ;;  %v1328_v8 = vsel %vm908_vm1, %v1325_v23, %v1327_v40 }
 0x198   : > { %v6024_v4 = vpop.f32.mrf.mxu3  ;;  %v1829_v45 = vpop.f32.mrf.mxu0 }
 0x199   : > { %v1507_v26 = vadd.f32 %v5970_v41, %v1122_v30  ;;  %v1698_v41 = vshrl.u32 %v5992_v1, 16 }
 0x19a   : > { %v2079_v14 = vpop.f32.mrf.mxu1 }
 0x19b   : > { %v6027_v33 = vadd.f32 %v2079_v14, %v1897_v59  ;;  %1090 = vmatmul.bf16.gmra.mxu2 %v939_v24  ;;  %v1900_v17 = vadd.f32 %v1826_v61, %v1507_v26  ;;  %1868 = vmatmul.bf16.gmra.mxu0 %v1696_v43  ;;  %v1701_v59 = vshll.u32 %v5992_v1, 16  ;;  %v1700_v30 = vrot.slane %v1698_v41, 1 }
 0x19c   : > { %v1293_v26 = vpack.c.b16 %v1274_v7, %v1274_v7 }
 0x19d   : > { %6896 = vst [vmem:[#allocation15_spill] sm:$0xff] %v6027_v33  ;;  %2118 = vmatmul.bf16.gmra.mxu1 %v1973_v54  ;;  %1485 = vmatmul.bf16.gmra.mxu3 %v1328_v8  ;;  %v1703_v24 = vrot.slane %v1701_v59, 2  ;;  %v5163_v54 = vld [vmem:[%s6875_s1 + $0x200] sm:$0xff]  ;;  %v1976_v33 = vrot.slane %v5962_v9, 2 }
 0x19e   : > { %v1051_v14 = vpop.f32.mrf.mxu2  ;;  %3095 = vmatpush.bf16.msra.mxu0 %v5163_v54  ;;  %v1329_v28 = vrot.slane %v1293_v26, 1  ;;  %v1710_v54 = vshll.u32 %v6016_v29, 16 }
 0x19f   : > { %v1123_v23 = vadd.f32 %v1051_v14, %v5780_v22  ;;  %v940_v22 = vrot.slane %v6052_v56, 1 }
 0x1a0   : > { %v6041_v36 = vpop.f32.mrf.mxu3  ;;  %v1831_v34 = vpop.f32.mrf.mxu0 }
 0x1a1   : > { %v1508_v16 = vadd.f32 %v5983_v55, %v1123_v23  ;;  %v1974_v55 = vrot.slane %v5932_v58, 2  ;;  %v941_v13 = vsel %vm908_vm1, %v938_v37, %v940_v22  ;;  %v1330_v37 = vsel %vm908_vm1, %v1327_v40, %v1329_v28 }
 0x1a2   : > { %v2081_v0 = vpop.f32.mrf.mxu1 }
 0x1a3   : > { %v6044_v61 = vadd.f32 %v2081_v0, %v1898_v42  ;;  %v6049_v43 = vadd.f32 %v1829_v45, %v1508_v16  ;;  %v6056_v42 = vor.u32 %v1703_v24, %v1700_v30  ;;  %v1975_v45 = vsel %vm1946_vm3, %v1972_v11, %v1974_v55  ;;  %v2185_v16 = vld [vmem:[%s5377_s14 + $0x10] sm:$0xc]  ;;  %v6073_v30 = vld [vmem:[%s5377_s14 + $0x14] sm:$0xf] }
 0x1a4   : > { %v2276_v11 = vunpack.c.l.b16 %v2185_v16  ;;  %v1712_v16 = vrot.slane %v1710_v54, 2 }
 0x1a5   : > { %6897 = vst [vmem:[#allocation16_spill] sm:$0xff] %v6044_v61  ;;  %v1705_v58 = vsel %vm1553_vm2, %v1695_v49, %v6056_v42  ;;  %v1707_v49 = vshrl.u32 %v6016_v29, 16 }
 0x1a6   : > { %v1053_v8 = vpop.f32.mrf.mxu2 }
 0x1a7   : > { %v1124_v41 = vadd.f32 %v1053_v8, %v5790_v50  ;;  %v5176_v50 = vld [vmem:[%s6877_s3 + $0x28] sm:$0xff] }
 0x1a8   : > { %v6061_v14 = vpop.f32.mrf.mxu3  ;;  %v1834_v0 = vpop.f32.mrf.mxu0  ;;  %4196 = vmatpush.bf16.msra.mxu1 %v5176_v50  ;;  %v1709_v50 = vrot.slane %v1707_v49, 1 }
 0x1a9   : > { %v1509_v7 = vadd.f32 %v6000_v20, %v1124_v41  ;;  %v6880_v20 = vunpack.c.l.b16 %v6073_v30 }
 0x1aa   : > { %v2084_v59 = vpop.f32.mrf.mxu1  ;;  %v1713_v2 = vor.u32 %v1712_v16, %v1709_v50 }
 0x1ab   : > { %v6064_v23 = vadd.f32 %v2084_v59, %v1899_v6  ;;  %1095 = vmatmul.bf16.gmra.mxu2 %v941_v13  ;;  %v6076_v24 = vadd.f32 %v1831_v34, %v1509_v7  ;;  %1873 = vmatmul.bf16.gmra.mxu0 %v1705_v58  ;;  %v6080_v6 = vld [vmem:[%s5377_s14 + $0x18] sm:$0xff]  ;;  %v6086_v40 = vpack.c.b16 %v6880_v20, %v2276_v11 }
 0x1ac   : > { %v2601_v34 = vshrl.u32 %v6080_v6, 16  ;;  %v2604_v56 = vshll.u32 %v6080_v6, 16 }
 0x1ad   : > { %6898 = vst [vmem:[#allocation17_spill] sm:$0xff] %v6064_v23  ;;  %2123 = vmatmul.bf16.gmra.mxu1 %v1975_v45  ;;  %1490 = vmatmul.bf16.gmra.mxu3 %v1330_v37  ;;  %v2593_v28 = vshrl.u32 %v6086_v40, 16  ;;  %v2596_v41 = vshll.u32 %v6086_v40, 16  ;;  %v1532_v37 = vld [vmem:[%s5377_s14 + $0x98] sm:$0x3]  ;;  %v5299_v23 = vld [vmem:[%s5377_s14 + $0x88] sm:$0xff] }
 0x1ae   : > { %6899 = vst [vmem:[#allocation18_spill] sm:$0xff] %v6076_v24  ;;  %v1056_v26 = vpop.f32.mrf.mxu2  ;;  %v2603_v24 = vrot.slane %v2601_v34, 2  ;;  %v942_v61 = vrot.slane %v5299_v23, 1  ;;  %v1551_v18 = vunpack.c.l.b16 %v1532_v37  ;;  %v1977_v34 = vsel %vm1946_vm3, %v1974_v55, %v1976_v33 }
 0x1af   : > { %v1125_v8 = vadd.f32 %v1056_v26, %v5803_v57  ;;  %v2595_v11 = vrot.slane %v2593_v28, 2  ;;  %v2598_v20 = vrot.slane %v2596_v41, 3  ;;  %v2606_v57 = vrot.slane %v2604_v56, 3 }
 0x1b0   : > { %v6093_v13 = vpop.f32.mrf.mxu3  ;;  %v1836_v58 = vpop.f32.mrf.mxu0  ;;  %v943_v54 = vsel %vm908_vm1, %v940_v22, %v942_v61  ;;  %v6118_v22 = vld [vmem:[%s5377_s14 + $0x20] sm:$0xff] }
 0x1b1   : > { %v1510_v45 = vadd.f32 %v6010_v44, %v1125_v8  ;;  %v2599_v47 = vor.u32 %v2598_v20, %v2595_v11  ;;  %v2607_v44 = vor.u32 %v2606_v57, %v2603_v24  ;;  %v1714_v24 = vsel %vm1553_vm2, %v6056_v42, %v1713_v2 }
 0x1b2   : > { %v2086_v59 = vpop.f32.mrf.mxu1  ;;  %v6112_v20 = vpack.c.b16 %v1551_v18, %v1551_v18  ;;  %v2610_v8 = vshrl.u32 %v6118_v22, 16  ;;  %v2613_v18 = vshll.u32 %v6118_v22, 16  ;;  %v944_v11 = vrot.slane %v5580_v39, 1 }
 0x1b3   : > { %v6096_v7 = vadd.f32 %v2086_v59, %v1900_v17  ;;  %v1903_v26 = vadd.f32 %v1834_v0, %v1510_v45  ;;  %v1978_v57 = vrot.slane %v5992_v1, 2 }
 0x1b4   : > { %v2612_v50 = vrot.slane %v2610_v8, 2  ;;  %v2615_v16 = vrot.slane %v2613_v18, 3 }
 0x1b6   : > { %v1058_v48 = vpop.f32.mrf.mxu2 }
 0x1b7   : > { %v1126_v17 = vadd.f32 %v1058_v48, %v5812_v27  ;;  %v2608_v27 = vsel %vm2591_vm4, %v2599_v47, %v2607_v44 }
 0x1b8   : > { %v6104_v56 = vpop.f32.mrf.mxu3  ;;  %v1839_v0 = vpop.f32.mrf.mxu0 }
 0x1b9   : > { %v1511_v23 = vadd.f32 %v6024_v4, %v1126_v17  ;;  %v1716_v4 = vshrl.u32 %v6112_v20, 16 }
 0x1ba   : > { %v2089_v49 = vpop.f32.mrf.mxu1 }
 0x1bb   : > { %v6108_v9 = vadd.f32 %v2089_v49, %v6049_v43  ;;  %1100 = vmatmul.bf16.gmra.mxu2 %v943_v54  ;;  %v6115_v48 = vadd.f32 %v1836_v58, %v1511_v23  ;;  %1878 = vmatmul.bf16.gmra.mxu0 %v1714_v24  ;;  %v1719_v43 = vshll.u32 %v6112_v20, 16  ;;  %v1718_v45 = vrot.slane %v1716_v4, 1  ;;  %v2963_v4 = vld [vmem:[%s5377_s14 + $0x10] sm:$0x8] }
 0x1bc   : > { %v1979_v23 = vsel %vm1946_vm3, %v1976_v33, %v1978_v57  ;;  %v5175_v33 = vld [vmem:[%s6877_s3 + $0x20] sm:$0xff] }
 0x1bd   : > { %2128 = vmatmul.bf16.gmra.mxu1 %v1977_v34  ;;  %2836 = vmatmul.bf16.vlgmr.msra.gmra.mxu3 %v2608_v27  ;;  %v1721_v58 = vrot.slane %v1719_v43, 2 }
 0x1be   : > { %v1061_v55 = vpop.f32.mrf.mxu2  ;;  %4197 = vmatpush.bf16.msra.mxu1 %v5175_v33 }
 0x1bf   : > { %v1127_v42 = vadd.f32 %v1061_v55, %v5827_v63  ;;  %v1722_v17 = vor.u32 %v1721_v58, %v1718_v45  ;;  %v2616_v63 = vor.u32 %v2615_v16, %v2612_v50  ;;  %v6900_v45 = vunpack.c.l.b16 %v6073_v30 }
 0x1c0   : > { %v6127_v28 = vpop.f32.mrf.mxu3  ;;  %v1841_v59 = vpop.f32.mrf.mxu0  ;;  %v1980_v16 = vrot.slane %v6016_v29, 2 }
 0x1c1   : > { %v1512_v41 = vadd.f32 %v6041_v36, %v1127_v42  ;;  %v945_v36 = vsel %vm908_vm1, %v942_v61, %v944_v11  ;;  %v1723_v1 = vsel %vm1553_vm2, %v1713_v2, %v1722_v17  ;;  %v2617_v43 = vsel %vm2591_vm4, %v2607_v44, %v2616_v63  ;;  %v6149_v61 = vld [vmem:[%s5377_s14 + $0x28] sm:$0xff] }
 0x1c2   : > { %v6125_v47 = vpop.f32.mrf.mxu1  ;;  %v2619_v44 = vshrl.u32 %v6149_v61, 16  ;;  %v2622_v55 = vshll.u32 %v6149_v61, 16  ;;  %v2332_v11 = vrot.slane %v6086_v40, 2  ;;  %v2333_v17 = vrot.slane %v6080_v6, 2 }
 0x1c3   : > { %v1905_v37 = vadd.f32 %v1839_v0, %v1512_v41 }
 0x1c4   : > { %v2334_v29 = vsel %vm1946_vm3, %v2332_v11, %v2333_v17 }
 0x1c6   : > { %v1063_v49 = vpop.f32.mrf.mxu2 }
 0x1c7   : > { %v1128_v54 = vadd.f32 %v1063_v49, %v5845_v38  ;;  %v845_v49 = vadd.f32 %v5866_v3, %v5635_v32 }
 0x1c8   : > { %v6135_v24 = vpop.f32.mrf.mxu3  ;;  %v1844_v39 = vpop.f32.mrf.mxu0 }
 0x1c9   : > { %v1513_v27 = vadd.f32 %v6061_v14, %v1128_v54  ;;  %v843_v14 = vadd.f32 %v5855_v21, %v5619_v5  ;;  %v2621_v5 = vrot.slane %v2619_v44, 2  ;;  %v2624_v21 = vrot.slane %v2622_v55, 3 }
 0x1ca   : > { %v2094_v34 = vpop.f32.mrf.mxu1 }
 0x1cb   : > { %v6138_v0 = vadd.f32 %v2094_v34, %v1903_v26  ;;  %1105 = vmatmul.bf16.gmra.mxu2 %v945_v36  ;;  %v6143_v38 = vadd.f32 %v1841_v59, %v1513_v27  ;;  %1883 = vmatmul.bf16.gmra.mxu0 %v1723_v1  ;;  %v2982_v26 = vunpack.c.l.b16 %v2963_v4  ;;  %v2986_v34 = vrot.slane %v6080_v6, 3 }
 0x1cc   : > { %v2625_v30 = vor.u32 %v2624_v21, %v2621_v5  ;;  %v1981_v27 = vsel %vm1946_vm3, %v1978_v57, %v1980_v16  ;;  %v848_v57 = vadd.f32 %v5878_v53, %v5649_v46  ;;  %v2335_v46 = vrot.slane %v6118_v22, 2 }
 0x1cd   : > { %2133 = vmatmul.bf16.gmra.mxu1 %v1979_v23  ;;  %2841 = vmatmul.bf16.gmra.mxu3 %v2617_v43  ;;  %v2983_v58 = vpack.c.b16 %v6900_v45, %v2982_v26  ;;  %v6180_v43 = vld [vmem:[%s5377_s14 + $0x30] sm:$0xff]  ;;  %v850_v53 = vadd.f32 %v5890_v25, %v5665_v60  ;;  %v2988_v45 = vrot.slane %v6118_v22, 3  ;;  %v6206_v22 = vld [vmem:[%s5377_s14 + $0x38] sm:$0xff] }
 0x1ce   : > { %v1066_v2 = vpop.f32.mrf.mxu2  ;;  %v2626_v6 = vsel %vm2591_vm4, %v2616_v63, %v2625_v30 }
 0x1cf   : > { %v1129_v8 = vadd.f32 %v1066_v2, %v843_v14  ;;  %v2985_v54 = vrot.slane %v2983_v58, 3 }
 0x1d0   : > { %v6157_v42 = vpop.f32.mrf.mxu3  ;;  %v1846_v59 = vpop.f32.mrf.mxu0 }
 0x1d1   : > { %v1514_v41 = vadd.f32 %v6093_v13, %v1129_v8  ;;  %v2987_v3 = vsel %vm2984_vm5, %v2985_v54, %v2986_v34 }
 0x1d2   : > { %v6155_v18 = vpop.f32.mrf.mxu1 }
 0x1d3   : > { %v1907_v50 = vadd.f32 %v1844_v39, %v1514_v41 }
 0x1d6   : > { %v1068_v13 = vpop.f32.mrf.mxu2 }
 0x1d7   : > { %v1130_v36 = vadd.f32 %v1068_v13, %v845_v49  ;;  %v2336_v49 = vsel %vm1946_vm3, %v2333_v17, %v2335_v46  ;;  %v2637_v17 = vshrl.u32 %v6206_v22, 16 }
 0x1d8   : > { %v6170_v39 = vpop.f32.mrf.mxu3  ;;  %v1849_v32 = vpop.f32.mrf.mxu0 }
 0x1d9   : > { %v1515_v40 = vadd.f32 %v6104_v56, %v1130_v36  ;;  %v2628_v56 = vshrl.u32 %v6180_v43, 16 }
 0x1da   : > { %v2099_v23 = vpop.f32.mrf.mxu1 }
 0x1db   : > { %v6173_v1 = vadd.f32 %v2099_v23, %v1905_v37  ;;  %2443 = vmatmul.bf16.vlgmr.msra.gmra.mxu2 %v2334_v29  ;;  %v6177_v4 = vadd.f32 %v1846_v59, %v1515_v40  ;;  %3096 = vmatmul.bf16.vlgmr.msra.gmra.mxu0 %v2987_v3  ;;  %v2631_v37 = vshll.u32 %v6180_v43, 16  ;;  %v2630_v55 = vrot.slane %v2628_v56, 2  ;;  %v5174_v40 = vld [vmem:[%s6877_s3 + $0x18] sm:$0xff] }
 0x1dc   : > { %v1982_v59 = vrot.slane %v6112_v20, 2  ;;  %v2989_v23 = vsel %vm2984_vm5, %v2986_v34, %v2988_v45  ;;  %4198 = vmatpush.bf16.msra.mxu1 %v5174_v40 }
 0x1dd   : > { %2138 = vmatmul.bf16.gmra.mxu1 %v1981_v27  ;;  %2846 = vmatmul.bf16.gmra.mxu3 %v2626_v6  ;;  %v2633_v8 = vrot.slane %v2631_v37, 3 }
 0x1de   : > { %v1071_v33 = vpop.f32.mrf.mxu2 }
 0x1df   : > { %v1131_v14 = vadd.f32 %v1071_v33, %v848_v57  ;;  %v2634_v5 = vor.u32 %v2633_v8, %v2630_v55  ;;  %v2337_v57 = vrot.slane %v6149_v61, 2  ;;  %v2990_v33 = vrot.slane %v6149_v61, 3  ;;  %v6229_v61 = vld [vmem:[%s5377_s14 + $0x40] sm:$0xff] }
 0x1e0   : > { %v6188_v63 = vpop.f32.mrf.mxu3  ;;  %v1851_v44 = vpop.f32.mrf.mxu0 }
 0x1e1   : > { %v1516_v2 = vadd.f32 %v6127_v28, %v1131_v14  ;;  %v1983_v28 = vsel %vm1946_vm3, %v1980_v16, %v1982_v59  ;;  %v2635_v60 = vsel %vm2591_vm4, %v2625_v30, %v2634_v5  ;;  %v2991_v59 = vsel %vm2984_vm5, %v2988_v45, %v2990_v33 }
 0x1e2   : > { %v6186_v26 = vpop.f32.mrf.mxu1 }
 0x1e3   : > { %v1909_v41 = vadd.f32 %v1849_v32, %v1516_v2  ;;  %v2639_v32 = vrot.slane %v2637_v17, 2 }
 0x1e6   : > { %v1073_v58 = vpop.f32.mrf.mxu2 }
 0x1e7   : > { %v1132_v21 = vadd.f32 %v1073_v58, %v850_v53 }
 0x1e8   : > { %v1468_v54 = vpop.f32.mrf.mxu3  ;;  %v1854_v36 = vpop.f32.mrf.mxu0 }
 0x1e9   : > { %v1517_v13 = vadd.f32 %v6135_v24, %v1132_v21  ;;  %v2640_v24 = vshll.u32 %v6206_v22, 16  ;;  %v2649_v21 = vshll.u32 %v6229_v61, 16 }
 0x1ea   : > { %v2104_v11 = vpop.f32.mrf.mxu1 }
 0x1eb   : > { %v6199_v20 = vadd.f32 %v2104_v11, %v1907_v50  ;;  %2448 = vmatmul.bf16.gmra.mxu2 %v2336_v49  ;;  %v6203_v25 = vadd.f32 %v1851_v44, %v1517_v13  ;;  %3101 = vmatmul.bf16.gmra.mxu0 %v2989_v23  ;;  %v2642_v3 = vrot.slane %v2640_v24, 3  ;;  %v2651_v49 = vrot.slane %v2649_v21, 3 }
 0x1ec   : > { %v2992_v23 = vrot.slane %v6180_v43, 3 }
 0x1ed   : > { %2143 = vmatmul.bf16.gmra.mxu1 %v1983_v28  ;;  %2851 = vmatmul.bf16.gmra.mxu3 %v2635_v60  ;;  %v2643_v56 = vor.u32 %v2642_v3, %v2639_v32 }
 0x1ee   : > { %v1076_v16 = vpop.f32.mrf.mxu2  ;;  %v2993_v40 = vsel %vm2984_vm5, %v2990_v33, %v2992_v23 }
 0x1ef   : > { %v1133_v50 = vadd.f32 %v1076_v16, %v5683_v19  ;;  %v2644_v53 = vsel %vm2591_vm4, %v2634_v5, %v2643_v56 }
 0x1f0   : > { %v1471_v34 = vpop.f32.mrf.mxu3  ;;  %v1856_v29 = vpop.f32.mrf.mxu0 }
 0x1f1   : > { %v1518_v30 = vadd.f32 %v6157_v42, %v1133_v50  ;;  %v2338_v42 = vsel %vm1946_vm3, %v2335_v46, %v2337_v57  ;;  %v2646_v46 = vshrl.u32 %v6229_v61, 16 }
 0x1f2   : > { %v6211_v27 = vpop.f32.mrf.mxu1 }
 0x1f3   : > { %v1911_v6 = vadd.f32 %v1854_v36, %v1518_v30  ;;  %v2648_v28 = vrot.slane %v2646_v46, 2  ;;  %v2339_v36 = vrot.slane %v6180_v43, 2  ;;  %v6248_v43 = vld [vmem:[%s5377_s14 + $0x48] sm:$0xff] }
 0x1f5   : > { %v2652_v16 = vor.u32 %v2651_v49, %v2648_v28 }
 0x1f6   : > { %v1078_v19 = vpop.f32.mrf.mxu2 }
 0x1f7   : > { %v1134_v37 = vadd.f32 %v1078_v19, %v5697_v15  ;;  %v2653_v32 = vsel %vm2591_vm4, %v2643_v56, %v2652_v16  ;;  %v2655_v19 = vshrl.u32 %v6248_v43, 16  ;;  %v5173_v56 = vld [vmem:[%s6877_s3 + $0x10] sm:$0xff] }
 0x1f8   : > { %v1473_v2 = vpop.f32.mrf.mxu3  ;;  %v1859_v8 = vpop.f32.mrf.mxu0  ;;  %4199 = vmatpush.bf16.msra.mxu1 %v5173_v56 }
 0x1f9   : > { %v1519_v44 = vadd.f32 %v6170_v39, %v1134_v37 }
 0x1fa   : > { %v2109_v14 = vpop.f32.mrf.mxu1 }
 0x1fb   : > { %v6222_v55 = vadd.f32 %v2109_v14, %v1909_v41  ;;  %2453 = vmatmul.bf16.gmra.mxu2 %v2338_v42  ;;  %v6226_v58 = vadd.f32 %v1856_v29, %v1519_v44  ;;  %3106 = vmatmul.bf16.gmra.mxu0 %v2991_v59  ;;  %v2657_v42 = vrot.slane %v2655_v19, 2  ;;  %v2341_v59 = vrot.slane %v6206_v22, 2 }
 0x1fc   : > { %v2996_v19 = vrot.slane %v6229_v61, 3 }
 0x1fd   : > { %2856 = vmatmul.bf16.gmra.mxu3 %v2644_v53  ;;  %v2994_v53 = vrot.slane %v6206_v22, 3  ;;  %v6269_v22 = vld [vmem:[%s5377_s14 + $0x50] sm:$0xff] }
 0x1fe   : > { %v1081_v15 = vpop.f32.mrf.mxu2 }
 0x1ff   : > { %v1135_v39 = vadd.f32 %v1081_v15, %v5708_v51  ;;  %v2340_v51 = vsel %vm1946_vm3, %v2337_v57, %v2339_v36  ;;  %v2658_v57 = vshll.u32 %v6248_v43, 16  ;;  %v2995_v49 = vsel %vm2984_vm5, %v2992_v23, %v2994_v53 }
 0x200   : > { %v1476_v11 = vpop.f32.mrf.mxu3  ;;  %v1861_v5 = vpop.f32.mrf.mxu0 }
 0x201   : > { %v1520_v45 = vadd.f32 %v6188_v63, %v1135_v39  ;;  %v2660_v44 = vrot.slane %v2658_v57, 3 }
 0x202   : > { %v6234_v41 = vpop.f32.mrf.mxu1 }
 0x203   : > { %v1913_v13 = vadd.f32 %v1859_v8, %v1520_v45 }
 0x206   : > { %v1083_v60 = vpop.f32.mrf.mxu2 }
 0x207   : > { %v1136_v17 = vadd.f32 %v1083_v60, %v5725_v12 }
 0x208   : > { %v1478_v50 = vpop.f32.mrf.mxu3  ;;  %v1864_v63 = vpop.f32.mrf.mxu0 }
 0x209   : > { %v1521_v30 = vadd.f32 %v1468_v54, %v1136_v17 }
 0x20a   : > { %v2114_v24 = vpop.f32.mrf.mxu1 }
 0x20b   : > { %v6241_v29 = vadd.f32 %v2114_v24, %v1911_v6  ;;  %2458 = vmatmul.bf16.gmra.mxu2 %v2340_v51  ;;  %v6245_v3 = vadd.f32 %v1861_v5, %v1521_v30  ;;  %3111 = vmatmul.bf16.gmra.mxu0 %v2993_v40  ;;  %v2664_v24 = vshrl.u32 %v6269_v22, 16 }
 0x20d   : > { %2861 = vmatmul.bf16.gmra.mxu3 %v2653_v32 }
 0x20e   : > { %v1086_v12 = vpop.f32.mrf.mxu2 }
 0x20f   : > { %v1137_v54 = vadd.f32 %v1086_v12, %v5739_v35  ;;  %v2661_v35 = vor.u32 %v2660_v44, %v2657_v42  ;;  %v2343_v12 = vrot.slane %v6229_v61, 2  ;;  %v6287_v61 = vld [vmem:[%s5377_s14 + $0x58] sm:$0xff] }
 0x210   : > { %v1481_v37 = vpop.f32.mrf.mxu3  ;;  %v1866_v14 = vpop.f32.mrf.mxu0 }
 0x211   : > { %v1522_v33 = vadd.f32 %v1471_v34, %v1137_v54  ;;  %v2342_v34 = vsel %vm1946_vm3, %v2339_v36, %v2341_v59  ;;  %v2662_v60 = vsel %vm2591_vm4, %v2652_v16, %v2661_v35  ;;  %v2667_v36 = vshll.u32 %v6269_v22, 16 }
 0x212   : > { %v6253_v6 = vpop.f32.mrf.mxu1  ;;  %v2666_v16 = vrot.slane %v2664_v24, 2  ;;  %v2344_v42 = vsel %vm1946_vm3, %v2341_v59, %v2343_v12  ;;  %v2676_v59 = vshll.u32 %v6287_v61, 16 }
 0x213   : > { %v1915_v8 = vadd.f32 %v1864_v63, %v1522_v33  ;;  %v2669_v40 = vrot.slane %v2667_v36, 3  ;;  %v6902_v33 = vld [vmem:[#allocation3_spill] sm:$0xff] }
 0x214   : > { %v2678_v36 = vrot.slane %v2676_v59, 3 }
 0x215   : > { %v2670_v54 = vor.u32 %v2669_v40, %v2666_v16  ;;  %v6904_v40 = vld [vmem:[#allocation5_spill] sm:$0xff] }
 0x216   : > { %v1088_v15 = vpop.f32.mrf.mxu2 }
 0x217   : > { %v1138_v46 = vadd.f32 %v1088_v15, %v5749_v52 }
 0x218   : > { %v1483_v39 = vpop.f32.mrf.mxu3  ;;  %v1869_v28 = vpop.f32.mrf.mxu0 }
 0x219   : > { %v1523_v45 = vadd.f32 %v1473_v2, %v1138_v46  ;;  %v6901_v2 = vld [vmem:[#allocation2_spill] sm:$0xff] }
 0x21a   : > { %v2119_v21 = vpop.f32.mrf.mxu1 }
 0x21b   : > { %v6262_v5 = vadd.f32 %v2119_v21, %v1913_v13  ;;  %2463 = vmatmul.bf16.gmra.mxu2 %v2342_v34  ;;  %v6266_v17 = vadd.f32 %v1866_v14, %v1523_v45  ;;  %3116 = vmatmul.bf16.gmra.mxu0 %v2995_v49  ;;  %v2997_v21 = vsel %vm2984_vm5, %v2994_v53, %v2996_v19  ;;  %v2673_v49 = vshrl.u32 %v6287_v61, 16 }
 0x21c   : > { %v2671_v34 = vsel %vm2591_vm4, %v2661_v35, %v2670_v54 }
 0x21d   : > { %2866 = vmatmul.bf16.gmra.mxu3 %v2662_v60  ;;  %v2675_v35 = vrot.slane %v2673_v49, 2 }
 0x21e   : > { %v1091_v52 = vpop.f32.mrf.mxu2 }
 0x21f   : > { %v1139_v13 = vadd.f32 %v1091_v52, %v6901_v2  ;;  %v2679_v16 = vor.u32 %v2678_v36, %v2675_v35  ;;  %v2347_v36 = vrot.slane %v6269_v22, 2 }
 0x220   : > { %v1486_v30 = vpop.f32.mrf.mxu3  ;;  %v1871_v63 = vpop.f32.mrf.mxu0 }
 0x221   : > { %v1524_v23 = vadd.f32 %v1476_v11, %v1139_v13  ;;  %v2345_v13 = vrot.slane %v6248_v43, 2 }
 0x222   : > { %v6274_v51 = vpop.f32.mrf.mxu1 }
 0x223   : > { %v1917_v32 = vadd.f32 %v1869_v28, %v1524_v23  ;;  %v2998_v23 = vrot.slane %v6248_v43, 3  ;;  %v2680_v43 = vsel %vm2591_vm4, %v2670_v54, %v2679_v16 }
 0x226   : > { %v1093_v57 = vpop.f32.mrf.mxu2 }
 0x227   : > { %v1140_v14 = vadd.f32 %v1093_v57, %v6902_v33 }
 0x228   : > { %v1488_v44 = vpop.f32.mrf.mxu3  ;;  %v1874_v11 = vpop.f32.mrf.mxu0 }
 0x229   : > { %v1525_v15 = vadd.f32 %v1478_v50, %v1140_v14  ;;  %v6903_v50 = vld [vmem:[#allocation4_spill] sm:$0xff]  ;;  %v2346_v14 = vsel %vm1946_vm3, %v2343_v12, %v2345_v13 }
 0x22a   : > { %v2124_v56 = vpop.f32.mrf.mxu1 }
 0x22b   : > { %v6280_v46 = vadd.f32 %v2124_v56, %v1915_v8  ;;  %2468 = vmatmul.bf16.gmra.mxu2 %v2344_v42  ;;  %v6284_v45 = vadd.f32 %v1871_v63, %v1525_v15  ;;  %3121 = vmatmul.bf16.gmra.mxu0 %v2997_v21  ;;  %v2999_v21 = vsel %vm2984_vm5, %v2996_v19, %v2998_v23 }
 0x22d   : > { %2871 = vmatmul.bf16.gmra.mxu3 %v2671_v34 }
 0x22e   : > { %v1096_v28 = vpop.f32.mrf.mxu2 }
 0x22f   : > { %v1141_v8 = vadd.f32 %v1096_v28, %v6903_v50  ;;  %v6308_v28 = vld [vmem:[%s5377_s14 + $0x60] sm:$0xff] }
 0x230   : > { %v1491_v52 = vpop.f32.mrf.mxu3  ;;  %v1876_v24 = vpop.f32.mrf.mxu0  ;;  %v2682_v59 = vshrl.u32 %v6308_v28, 16  ;;  %v2685_v50 = vshll.u32 %v6308_v28, 16 }
 0x231   : > { %v1526_v53 = vadd.f32 %v1481_v37, %v1141_v8 }
 0x232   : > { %v6292_v60 = vpop.f32.mrf.mxu1 }
 0x233   : > { %v1919_v2 = vadd.f32 %v1874_v11, %v1526_v53  ;;  %v5172_v11 = vld [vmem:[%s6877_s3 + $0x8] sm:$0xff]  ;;  %v2684_v53 = vrot.slane %v2682_v59, 2  ;;  %v6908_v59 = vld [vmem:[#allocation8_spill] sm:$0xff] }
 0x234   : > { %4200 = vmatpush.bf16.msra.mxu1 %v5172_v11 }
 0x236   : > { %v1098_v63 = vpop.f32.mrf.mxu2 }
 0x237   : > { %v1142_v57 = vadd.f32 %v1098_v63, %v6904_v40  ;;  %v3000_v63 = vrot.slane %v6269_v22, 3 }
 0x238   : > { %v1493_v56 = vpop.f32.mrf.mxu3  ;;  %v1879_v37 = vpop.f32.mrf.mxu0 }
 0x239   : > { %v1527_v42 = vadd.f32 %v1483_v39, %v1142_v57  ;;  %v6905_v39 = vld [vmem:[#allocation6_spill] sm:$0xff] }
 0x23a   : > { %v2129_v33 = vpop.f32.mrf.mxu1 }
 0x23b   : > { %v6298_v15 = vadd.f32 %v2129_v33, %v1917_v32  ;;  %2473 = vmatmul.bf16.gmra.mxu2 %v2346_v14  ;;  %v6305_v34 = vadd.f32 %v1876_v24, %v1527_v42  ;;  %3126 = vmatmul.bf16.gmra.mxu0 %v2999_v21  ;;  %v2687_v24 = vrot.slane %v2685_v50, 3  ;;  %v6906_v33 = vld [vmem:[#allocation7_spill] sm:$0xff]  ;;  %v2348_v21 = vsel %vm1946_vm3, %v2345_v13, %v2347_v36 }
 0x23d   : > { %2876 = vmatmul.bf16.gmra.mxu3 %v2680_v43  ;;  %v2688_v57 = vor.u32 %v2687_v24, %v2684_v53  ;;  %v6333_v53 = vld [vmem:[%s5377_s14 + $0x68] sm:$0xff] }
 0x23e   : > { %v1101_v12 = vpop.f32.mrf.mxu2 }
 0x23f   : > { %v1143_v32 = vadd.f32 %v1101_v12, %v6905_v39  ;;  %v2689_v39 = vsel %vm2591_vm4, %v2679_v16, %v2688_v57  ;;  %v2694_v16 = vshll.u32 %v6333_v53, 16 }
 0x240   : > { %v2837_v19 = vpop.f32.mrf.mxu3  ;;  %v1881_v54 = vpop.f32.mrf.mxu0 }
 0x241   : > { %v1528_v8 = vadd.f32 %v1486_v30, %v1143_v32 }
 0x242   : > { %v6311_v49 = vpop.f32.mrf.mxu1 }
 0x243   : > { %v1921_v35 = vadd.f32 %v1879_v37, %v1528_v8  ;;  %v3001_v37 = vsel %vm2984_vm5, %v2998_v23, %v3000_v63  ;;  %v2691_v23 = vshrl.u32 %v6333_v53, 16 }
 0x246   : > { %v1103_v40 = vpop.f32.mrf.mxu2 }
 0x247   : > { %v1144_v14 = vadd.f32 %v1103_v40, %v6906_v33  ;;  %v3002_v40 = vrot.slane %v6287_v61, 3  ;;  %v2693_v33 = vrot.slane %v2691_v23, 2 }
 0x248   : > { %v6319_v11 = vpop.f32.mrf.mxu3  ;;  %v1884_v12 = vpop.f32.mrf.mxu0 }
 0x249   : > { %v1529_v43 = vadd.f32 %v1488_v44, %v1144_v14  ;;  %v2696_v14 = vrot.slane %v2694_v16, 3 }
 0x24a   : > { %v2134_v42 = vpop.f32.mrf.mxu1 }
 0x24b   : > { %v6321_v30 = vadd.f32 %v2134_v42, %v1919_v2  ;;  %2478 = vmatmul.bf16.gmra.mxu2 %v2348_v21  ;;  %v6325_v22 = vadd.f32 %v1881_v54, %v1529_v43  ;;  %3131 = vmatmul.bf16.gmra.mxu0 %v3001_v37  ;;  %v2349_v54 = vrot.slane %v6287_v61, 2  ;;  %v6910_v21 = vld [vmem:[#allocation9_spill] sm:$0xff]  ;;  %v2697_v37 = vor.u32 %v2696_v14, %v2693_v33 }
 0x24d   : > { %6907 = vst [vmem:[#allocation2_spill] sm:$0xff] %v6325_v22  ;;  %2881 = vmatmul.bf16.gmra.mxu3 %v2689_v39  ;;  %v2698_v61 = vsel %vm2591_vm4, %v2688_v57, %v2697_v37 }
 0x24e   : > { %v1106_v32 = vpop.f32.mrf.mxu2 }
 0x24f   : > { %v1145_v50 = vadd.f32 %v1106_v32, %v6908_v59 }
 0x250   : > { %v6330_v8 = vpop.f32.mrf.mxu3  ;;  %v1886_v2 = vpop.f32.mrf.mxu0 }
 0x251   : > { %v1530_v44 = vadd.f32 %v1491_v52, %v1145_v50  ;;  %v2350_v52 = vsel %vm1946_vm3, %v2347_v36, %v2349_v54 }
 0x252   : > { %v6328_v13 = vpop.f32.mrf.mxu1 }
 0x253   : > { %6909 = vst [vmem:[#allocation3_spill] sm:$0xff] %v6328_v13  ;;  %v1923_v24 = vadd.f32 %v1884_v12, %v1530_v44  ;;  %v3003_v44 = vsel %vm2984_vm5, %v3000_v63, %v3002_v40  ;;  %v6360_v63 = vld [vmem:[%s6876_s2] ss:$0 sm:$0xff] }
 0x256   : > { %v1108_v42 = vpop.f32.mrf.mxu2 }
 0x257   : > { %v1146_v43 = vadd.f32 %v1108_v42, %v6910_v21 }
 0x258   : > { %v6341_v32 = vpop.f32.mrf.mxu3  ;;  %v3097_v50 = vpop.f32.mrf.mxu0 }
 0x259   : > { %v1531_v12 = vadd.f32 %v1493_v56, %v1146_v43  ;;  %v5171_v56 = vld [vmem:[%s6877_s3] sm:$0xff]  ;;  %v6881_v43 = vrot.slane %v6308_v28, 2 }
 0x25a   : > { %v2139_v39 = vpop.f32.mrf.mxu1  ;;  %4201 = vmatpush.bf16.msra.mxu1 %v5171_v56 }
 0x25b   : > { %v6343_v59 = vadd.f32 %v2139_v39, %v1921_v35  ;;  %2483 = vmatmul.bf16.gmra.mxu2 %v2350_v52  ;;  %v6347_v23 = vadd.f32 %v1886_v2, %v1531_v12  ;;  %3136 = vmatmul.bf16.gmra.mxu0 %v3003_v44  ;;  %v6363_v2 = vld [vmem:[%s5377_s14 + $0x70] sm:$0xff]  ;;  %v2352_v56 = vsel %vm1946_vm3, %v2349_v54, %v6881_v43  ;;  %v6396_v43 = vld [vmem:[%s5377_s14 + $0x78] sm:$0xff] }
 0x25c   : > { %v2703_v21 = vshll.u32 %v6363_v2, 16  ;;  %v6934_v13 = vrot.slane %v6396_v43, 3 }
 0x25d   : > { %6911 = vst [vmem:[#allocation4_spill] sm:$0xff] %v6343_v59  ;;  %2886 = vmatmul.bf16.gmra.mxu3 %v2698_v61 }
 0x25e   : > { %6912 = vst [vmem:[#allocation5_spill] sm:$0xff] %v6347_v23  ;;  %v2444_v16 = vpop.f32.mrf.mxu2  ;;  %v2705_v12 = vrot.slane %v2703_v21, 3  ;;  %v6915_v21 = vrot.slane %v6308_v28, 3 }
 0x25f   : > { %v2534_v33 = vadd.f32 %v2444_v16, %v5913_v31  ;;  %v2700_v31 = vshrl.u32 %v6363_v2, 16 }
 0x260   : > { %v6352_v14 = vpop.f32.mrf.mxu3  ;;  %v3099_v57 = vpop.f32.mrf.mxu0 }
 0x261   : > { %v2927_v35 = vadd.f32 %v2837_v19, %v2534_v33  ;;  %v2702_v52 = vrot.slane %v2700_v31, 2 }
 0x262   : > { %v6350_v36 = vpop.f32.mrf.mxu1 }
 0x263   : > { %6913 = vst [vmem:[#allocation6_spill] sm:$0xff] %v6350_v36  ;;  %v3187_v42 = vadd.f32 %v3097_v50, %v2927_v35  ;;  %v6371_v33 = vor.u32 %v2705_v12, %v2702_v52 }
 0x265   : > { %v3227_v39 = vadd.f32 %v6360_v63, %v3187_v42 }
 0x266   : > { %v2446_v44 = vpop.f32.mrf.mxu2 }
 0x267   : > { %v3263_v61 = vmax.f32 %v3227_v39, 0.0  ;;  %v2535_v16 = vadd.f32 %v2446_v44, %v5926_v62  ;;  %v3005_v62 = vsel %vm2984_vm5, %v3002_v40, %v6915_v21  ;;  %v2707_v39 = vsel %vm2591_vm4, %v2697_v37, %v6371_v33 }
 0x268   : > { %v6376_v35 = vpop.f32.mrf.mxu3  ;;  %v3102_v31 = vpop.f32.mrf.mxu0 }
 0x269   : > { %v3299_v23 = vpack.c.bf16 %v3263_v61, %v3263_v61  ;;  %v2928_v42 = vadd.f32 %v6319_v11, %v2535_v16 }
 0x26a   : > { %v2144_v50 = vpop.f32.mrf.mxu1 }
 0x26b   : > { %v6379_v19 = vadd.f32 %v2144_v50, %v1923_v24  ;;  %v3371_v52 = vrot.slane %v3299_v23, 3  ;;  %v3188_v54 = vadd.f32 %v3099_v57, %v2928_v42  ;;  %2488 = vmatmul.bf16.gmra.mxu2 %v2352_v56  ;;  %3141 = vmatmul.bf16.gmra.mxu0 %v3005_v62 }
 0x26d   : > { %6914 = vst [vmem:[#allocation7_spill] sm:$0xff] %v6379_v19  ;;  %v3410_v12 = vsel %vm3407_vm6, %v3299_v23, %v3371_v52  ;;  %v3412_v11 = vsel %vm3411_vm7, %v3299_v23, %v3371_v52  ;;  %v3416_v24 = vsel %vm3415_vm8, %v3299_v23, %v3371_v52  ;;  %v3420_v44 = vsel %vm3419_vm9, %v3299_v23, %v3371_v52 }
 0x26e   : > { %2891 = vmatmul.bf16.gmra.mxu3 %v2707_v39  ;;  %v3414_v40 = vrot.slane %v3412_v11, 1  ;;  %v3418_v61 = vrot.slane %v3416_v24, 2  ;;  %v3422_v16 = vrot.slane %v3420_v44, 3  ;;  %3883 = vst [vmem:[#allocation1] ss:$9 sm:$0xff] %v3410_v12  ;;  %v3228_v37 = vadd.f32 %v6360_v63, %v3188_v54  ;;  %v2449_v50 = vpop.f32.mrf.mxu2 }
 0x26f   : > { %v2536_v57 = vadd.f32 %v2449_v50, %v5943_v10  ;;  %v2709_v52 = vshrl.u32 %v6396_v43, 16  ;;  %v2712_v54 = vshll.u32 %v6396_v43, 16  ;;  %v6916_v10 = vld [vmem:[#allocation10_spill] sm:$0xff]  ;;  %v6917_v24 = vrot.slane %v6333_v53, 2 }
 0x270   : > { %3886 = vst [vmem:[#allocation1 + $0x1] ss:$9 sm:$0xff] %v3414_v40  ;;  %v3264_v56 = vmax.f32 %v3228_v37, 0.0  ;;  %v6392_v42 = vpop.f32.mrf.mxu3  ;;  %v3104_v62 = vpop.f32.mrf.mxu0 }
 0x271   : > { %3889 = vst [vmem:[#allocation1 + $0x2] ss:$9 sm:$0xff] %v3418_v61  ;;  %v2929_v21 = vadd.f32 %v6330_v8, %v2536_v57  ;;  %v2711_v44 = vrot.slane %v2709_v52, 2  ;;  %v2714_v40 = vrot.slane %v2712_v54, 3  ;;  %v6918_v52 = vrot.slane %v6308_v28, 2 }
 0x272   : > { %3892 = vst [vmem:[#allocation1 + $0x3] ss:$9 sm:$0xff] %v3422_v16  ;;  %v3300_v23 = vpack.c.bf16 %v3264_v56, %v3264_v56 }
 0x273   : > { %v3189_v39 = vadd.f32 %v3102_v31, %v2929_v21  ;;  %v2354_v54 = vsel %vm1946_vm3, %v6918_v52, %v6917_v24  ;;  %v6415_v36 = vor.u32 %v2714_v40, %v2711_v44 }
 0x274   : > { %v3372_v12 = vrot.slane %v3300_v23, 3 }
 0x275   : > { %v3229_v11 = vadd.f32 %v6360_v63, %v3189_v39  ;;  %v2716_v24 = vsel %vm2591_vm4, %v6371_v33, %v6415_v36 }
 0x276   : > { %v3425_v8 = vsel %vm3407_vm6, %v3300_v23, %v3372_v12  ;;  %v3426_v61 = vsel %vm3411_vm7, %v3300_v23, %v3372_v12  ;;  %v3429_v16 = vsel %vm3415_vm8, %v3300_v23, %v3372_v12  ;;  %v3432_v31 = vsel %vm3419_vm9, %v3300_v23, %v3372_v12  ;;  %v2451_v37 = vpop.f32.mrf.mxu2 }
 0x277   : > { %v3428_v50 = vrot.slane %v3426_v61, 1  ;;  %v3431_v57 = vrot.slane %v3429_v16, 2  ;;  %3894 = vst [vmem:[#allocation1 + $0x4] ss:$9 sm:$0xff] %v3425_v8  ;;  %v3265_v56 = vmax.f32 %v3229_v11, 0.0  ;;  %v3434_v21 = vrot.slane %v3432_v31, 3 }
 0x278   : > { %v2537_v39 = vadd.f32 %v2451_v37, %v6916_v10  ;;  %v6413_v19 = vpop.f32.mrf.mxu3  ;;  %v3107_v12 = vpop.f32.mrf.mxu0  ;;  %v6919_v61 = vrot.slane %v6333_v53, 3  ;;  %v6920_v11 = vrot.slane %v6308_v28, 3 }
 0x279   : > { %3897 = vst [vmem:[#allocation1 + $0x5] ss:$9 sm:$0xff] %v3428_v50  ;;  %v3301_v23 = vpack.c.bf16 %v3265_v56, %v3265_v56 }
 0x27a   : > { %v3007_v8 = vsel %vm2984_vm5, %v6920_v11, %v6919_v61  ;;  %3900 = vst [vmem:[#allocation1 + $0x6] ss:$9 sm:$0xff] %v3431_v57  ;;  %v2930_v10 = vadd.f32 %v6341_v32, %v2537_v39  ;;  %v6921_v57 = vld [vmem:[#allocation11_spill] sm:$0xff]  ;;  %v6435_v61 = vld [vmem:[%s5377_s14 + $0x80] sm:$0xff] }
 0x27b   : > { %v3373_v16 = vrot.slane %v3301_v23, 3  ;;  %3903 = vst [vmem:[#allocation1 + $0x7] ss:$9 sm:$0xff] %v3434_v21  ;;  %2493 = vmatmul.bf16.gmra.mxu2 %v2354_v54  ;;  %3146 = vmatmul.bf16.gmra.mxu0 %v3007_v8 }
 0x27c   : > { %v3190_v44 = vadd.f32 %v3104_v62, %v2930_v10  ;;  %v2718_v10 = vshrl.u32 %v6435_v61, 16 }
 0x27d   : > { %v3437_v40 = vsel %vm3411_vm7, %v3301_v23, %v3373_v16  ;;  %v3440_v31 = vsel %vm3415_vm8, %v3301_v23, %v3373_v16  ;;  %v3443_v28 = vsel %vm3419_vm9, %v3301_v23, %v3373_v16 }
 0x27e   : > { %2896 = vmatmul.bf16.gmra.mxu3 %v2716_v24  ;;  %v3230_v37 = vadd.f32 %v6360_v63, %v3190_v44  ;;  %v2454_v32 = vpop.f32.mrf.mxu2  ;;  %v3439_v50 = vrot.slane %v3437_v40, 1  ;;  %v3442_v33 = vrot.slane %v3440_v31, 2  ;;  %v3445_v62 = vrot.slane %v3443_v28, 3 }
 0x27f   : > { %v2538_v56 = vadd.f32 %v2454_v32, %v6921_v57  ;;  %v2721_v24 = vshll.u32 %v6435_v61, 16  ;;  %v6882_v44 = vrot.slane %v6363_v2, 2  ;;  %v2720_v31 = vrot.slane %v2718_v10, 2 }
 0x280   : > { %v3266_v39 = vmax.f32 %v3230_v37, 0.0  ;;  %v6431_v21 = vpop.f32.mrf.mxu3  ;;  %v3109_v54 = vpop.f32.mrf.mxu0 }
 0x281   : > { %v2931_v52 = vadd.f32 %v6352_v14, %v2538_v56  ;;  %v2723_v28 = vrot.slane %v2721_v24, 3 }
 0x282   : > { %v3904_v11 = vld [vmem:[#allocation1] sm:$0xff]  ;;  %v3302_v8 = vpack.c.bf16 %v3266_v39, %v3266_v39 }
 0x283   : > { %3906 = vst [vmem:[#allocation1] ss:$9 sm:$0xff] %v3439_v50  ;;  %v3191_v23 = vadd.f32 %v3107_v12, %v2931_v52  ;;  %4202 = vmatmul.bf16.vlgmr.msra.gmra.mxu1 %v3904_v11  ;;  %v6922_v52 = vld [vmem:[#allocation12_spill] sm:$0xff]  ;;  %v6454_v14 = vor.u32 %v2723_v28, %v2720_v31 }
 0x284   : > { %3908 = vst [vmem:[#allocation1 + $0x1] ss:$9 sm:$0xff] %v3442_v33  ;;  %v3374_v16 = vrot.slane %v3302_v8, 3 }
 0x285   : > { %3910 = vst [vmem:[#allocation1 + $0x2] ss:$9 sm:$0xff] %v3445_v62  ;;  %v3231_v40 = vadd.f32 %v6360_v63, %v3191_v23  ;;  %v6923_v23 = vrot.slane %v6333_v53, 2 }
 0x286   : > { %v3448_v37 = vsel %vm3407_vm6, %v3302_v8, %v3374_v16  ;;  %v3449_v12 = vsel %vm3411_vm7, %v3302_v8, %v3374_v16  ;;  %v3452_v32 = vsel %vm3415_vm8, %v3302_v8, %v3374_v16  ;;  %v3455_v50 = vsel %vm3419_vm9, %v3302_v8, %v3374_v16  ;;  %v2456_v57 = vpop.f32.mrf.mxu2 }
 0x287   : > { %v3451_v56 = vrot.slane %v3449_v12, 1  ;;  %v3454_v33 = vrot.slane %v3452_v32, 2  ;;  %v3457_v39 = vrot.slane %v3455_v50, 3  ;;  %3911 = vst [vmem:[#allocation1 + $0x3] ss:$9 sm:$0xff] %v3448_v37  ;;  %v3267_v62 = vmax.f32 %v3231_v40, 0.0 }
 0x288   : > { %v2539_v11 = vadd.f32 %v2456_v57, %v6922_v52  ;;  %v2356_v10 = vsel %vm1946_vm3, %v6923_v23, %v6882_v44  ;;  %v6452_v24 = vpop.f32.mrf.mxu3  ;;  %v3112_v16 = vpop.f32.mrf.mxu0  ;;  %v6924_v12 = vrot.slane %v6363_v2, 3  ;;  %v6925_v37 = vrot.slane %v6333_v53, 3  ;;  %v6473_v23 = vld [vmem:[%s5377_s14 + $0x88] sm:$0xff] }
 0x289   : > { %3913 = vst [vmem:[#allocation1 + $0x4] ss:$9 sm:$0xff] %v3451_v56  ;;  %v3303_v8 = vpack.c.bf16 %v3267_v62, %v3267_v62  ;;  %v2725_v50 = vsel %vm2591_vm4, %v6415_v36, %v6454_v14 }
 0x28a   : > { %v3009_v40 = vsel %vm2984_vm5, %v6925_v37, %v6924_v12  ;;  %3915 = vst [vmem:[#allocation1 + $0x5] ss:$9 sm:$0xff] %v3454_v33  ;;  %v2932_v32 = vadd.f32 %v6376_v35, %v2539_v11  ;;  %v6926_v33 = vld [vmem:[#allocation13_spill] sm:$0xff]  ;;  %v2727_v37 = vshrl.u32 %v6473_v23, 16 }
 0x28b   : > { %3917 = vst [vmem:[#allocation1 + $0x6] ss:$9 sm:$0xff] %v3457_v39  ;;  %v3375_v31 = vrot.slane %v3303_v8, 3  ;;  %2498 = vmatmul.bf16.gmra.mxu2 %v2356_v10  ;;  %3151 = vmatmul.bf16.gmra.mxu0 %v3009_v40  ;;  %v2730_v40 = vshll.u32 %v6473_v23, 16 }
 0x28c   : > { %v3192_v28 = vadd.f32 %v3109_v54, %v2932_v32 }
 0x28d   : > { %v3460_v57 = vsel %vm3407_vm6, %v3303_v8, %v3375_v31  ;;  %v3461_v36 = vsel %vm3415_vm8, %v3303_v8, %v3375_v31  ;;  %v3464_v54 = vsel %vm3419_vm9, %v3303_v8, %v3375_v31 }
 0x28e   : > { %2901 = vmatmul.bf16.gmra.mxu3 %v2725_v50  ;;  %3918 = vst [vmem:[#allocation1 + $0x7] ss:$9 sm:$0xff] %v3460_v57  ;;  %v3232_v53 = vadd.f32 %v6360_v63, %v3192_v28  ;;  %v2459_v56 = vpop.f32.mrf.mxu2  ;;  %v3463_v32 = vrot.slane %v3461_v36, 2  ;;  %v2357_v28 = vrot.slane %v6396_v43, 2 }
 0x28f   : > { %v2540_v62 = vadd.f32 %v2459_v56, %v6926_v33  ;;  %v2729_v33 = vrot.slane %v2727_v37, 2 }
 0x290   : > { %v3268_v35 = vmax.f32 %v3232_v53, 0.0  ;;  %v6468_v52 = vpop.f32.mrf.mxu3  ;;  %v3114_v11 = vpop.f32.mrf.mxu0  ;;  %v3466_v53 = vrot.slane %v3464_v54, 3 }
 0x291   : > { %v2933_v39 = vadd.f32 %v6392_v42, %v2540_v62  ;;  %v2732_v62 = vrot.slane %v2730_v40, 3  ;;  %v6928_v40 = vrot.slane %v6363_v2, 2 }
 0x292   : > { %v3304_v10 = vpack.c.bf16 %v3268_v35, %v3268_v35 }
 0x293   : > { %v3193_v12 = vadd.f32 %v3112_v16, %v2933_v39  ;;  %v2733_v59 = vor.u32 %v2732_v62, %v2729_v33 }
 0x294   : > { %v3376_v50 = vrot.slane %v3304_v10, 3 }
 0x295   : > { %v3919_v56 = vld [vmem:[#allocation1] sm:$0xff]  ;;  %v3233_v42 = vadd.f32 %v6360_v63, %v3193_v12  ;;  %v6927_v12 = vld [vmem:[#allocation14_spill] sm:$0xff] }
 0x296   : > { %3921 = vst [vmem:[#allocation1] ss:$9 sm:$0xff] %v3463_v32  ;;  %v3469_v8 = vsel %vm3407_vm6, %v3304_v10, %v3376_v50  ;;  %v3470_v16 = vsel %vm3411_vm7, %v3304_v10, %v3376_v50  ;;  %v3473_v31 = vsel %vm3415_vm8, %v3304_v10, %v3376_v50  ;;  %v3476_v35 = vsel %vm3419_vm9, %v3304_v10, %v3376_v50  ;;  %v2461_v36 = vpop.f32.mrf.mxu2 }
 0x297   : > { %3923 = vst [vmem:[#allocation1 + $0x1] ss:$9 sm:$0xff] %v3466_v53  ;;  %v3472_v39 = vrot.slane %v3470_v16, 1  ;;  %v3475_v44 = vrot.slane %v3473_v31, 2  ;;  %v3478_v57 = vrot.slane %v3476_v35, 3  ;;  %v3269_v54 = vmax.f32 %v3233_v42, 0.0  ;;  %4207 = vmatmul.bf16.gmra.mxu1 %v3919_v56 }
 0x298   : > { %3924 = vst [vmem:[#allocation1 + $0x2] ss:$9 sm:$0xff] %v3469_v8  ;;  %v2541_v37 = vadd.f32 %v2461_v36, %v6927_v12  ;;  %v2358_v32 = vsel %vm1946_vm3, %v6928_v40, %v2357_v28  ;;  %v6491_v22 = vpop.f32.mrf.mxu3  ;;  %v3117_v50 = vpop.f32.mrf.mxu0  ;;  %v6929_v53 = vrot.slane %v6396_v43, 3  ;;  %v6930_v42 = vrot.slane %v6363_v2, 3  ;;  %v6509_v12 = vld [vmem:[%s5377_s14 + $0x90] sm:$0xff] }
 0x299   : > { %3926 = vst [vmem:[#allocation1 + $0x3] ss:$9 sm:$0xff] %v3472_v39  ;;  %v3305_v10 = vpack.c.bf16 %v3269_v54, %v3269_v54  ;;  %v2734_v16 = vsel %vm2591_vm4, %v6454_v14, %v2733_v59  ;;  %v2359_v40 = vrot.slane %v6435_v61, 2 }
 0x29a   : > { %v3011_v56 = vsel %vm2984_vm5, %v6930_v42, %v6929_v53  ;;  %3928 = vst [vmem:[#allocation1 + $0x4] ss:$9 sm:$0xff] %v3475_v44  ;;  %v2934_v8 = vadd.f32 %v6413_v19, %v2541_v37  ;;  %v6931_v19 = vld [vmem:[#allocation15_spill] sm:$0xff]  ;;  %v2736_v42 = vshrl.u32 %v6509_v12, 16 }
 0x29b   : > { %3930 = vst [vmem:[#allocation1 + $0x5] ss:$9 sm:$0xff] %v3478_v57  ;;  %v3377_v31 = vrot.slane %v3305_v10, 3  ;;  %2503 = vmatmul.bf16.gmra.mxu2 %v2358_v32  ;;  %3156 = vmatmul.bf16.gmra.mxu0 %v3011_v56  ;;  %v2739_v56 = vshll.u32 %v6509_v12, 16 }
 0x29c   : > { %v3194_v33 = vadd.f32 %v3114_v11, %v2934_v8 }
 0x29d   : > { %v3481_v62 = vsel %vm3407_vm6, %v3305_v10, %v3377_v31  ;;  %v3482_v35 = vsel %vm3411_vm7, %v3305_v10, %v3377_v31  ;;  %v3485_v32 = vsel %vm3419_vm9, %v3305_v10, %v3377_v31 }
 0x29e   : > { %2906 = vmatmul.bf16.gmra.mxu3 %v2734_v16  ;;  %v3484_v2 = vrot.slane %v3482_v35, 1  ;;  %3931 = vst [vmem:[#allocation1 + $0x6] ss:$9 sm:$0xff] %v3481_v62  ;;  %v3234_v44 = vadd.f32 %v6360_v63, %v3194_v33  ;;  %v2464_v36 = vpop.f32.mrf.mxu2  ;;  %v2738_v62 = vrot.slane %v2736_v42, 2  ;;  %v3487_v35 = vrot.slane %v3485_v32, 3 }
 0x29f   : > { %v2542_v39 = vadd.f32 %v2464_v36, %v6931_v19 }
 0x2a0   : > { %3933 = vst [vmem:[#allocation1 + $0x7] ss:$9 sm:$0xff] %v3484_v2  ;;  %v3270_v14 = vmax.f32 %v3234_v44, 0.0  ;;  %v6505_v57 = vpop.f32.mrf.mxu3  ;;  %v3119_v11 = vpop.f32.mrf.mxu0 }
 0x2a1   : > { %v2935_v54 = vadd.f32 %v6431_v21, %v2542_v39  ;;  %v2741_v21 = vrot.slane %v2739_v56, 3 }
 0x2a2   : > { %v3306_v37 = vpack.c.bf16 %v3270_v14, %v3270_v14  ;;  %v2360_v14 = vsel %vm1946_vm3, %v2357_v28, %v2359_v40 }
 0x2a3   : > { %v3195_v53 = vadd.f32 %v3117_v50, %v2935_v54  ;;  %v6529_v33 = vor.u32 %v2741_v21, %v2738_v62 }
 0x2a4   : > { %v3378_v8 = vrot.slane %v3306_v37, 3 }
 0x2a5   : > { %v3235_v16 = vadd.f32 %v6360_v63, %v3195_v53  ;;  %v6932_v53 = vld [vmem:[#allocation16_spill] sm:$0xff] }
 0x2a6   : > { %v3491_v2 = vsel %vm3411_vm7, %v3306_v37, %v3378_v8  ;;  %v3494_v44 = vsel %vm3415_vm8, %v3306_v37, %v3378_v8  ;;  %v3497_v36 = vsel %vm3419_vm9, %v3306_v37, %v3378_v8  ;;  %v2466_v10 = vpop.f32.mrf.mxu2  ;;  %v3490_v54 = vsel %vm3407_vm6, %v3306_v37, %v3378_v8 }
 0x2a7   : > { %v3934_v50 = vld [vmem:[#allocation1] sm:$0xff]  ;;  %v3493_v31 = vrot.slane %v3491_v2, 1  ;;  %v3496_v19 = vrot.slane %v3494_v44, 2  ;;  %v3271_v39 = vmax.f32 %v3235_v16, 0.0  ;;  %v3499_v32 = vrot.slane %v3497_v36, 3 }
 0x2a8   : > { %3936 = vst [vmem:[#allocation1] ss:$9 sm:$0xff] %v3487_v35  ;;  %v2543_v42 = vadd.f32 %v2466_v10, %v6932_v53  ;;  %4212 = vmatmul.bf16.gmra.mxu1 %v3934_v50  ;;  %v6527_v56 = vpop.f32.mrf.mxu3  ;;  %v3122_v16 = vpop.f32.mrf.mxu0  ;;  %v6933_v44 = vrot.slane %v6435_v61, 3  ;;  %v2743_v8 = vsel %vm2591_vm4, %v2733_v59, %v6529_v33  ;;  %v6935_v50 = vld [vmem:[#allocation17_spill] sm:$0xff] }
 0x2a9   : > { %3937 = vst [vmem:[#allocation1 + $0x1] ss:$9 sm:$0xff] %v3490_v54  ;;  %v3307_v2 = vpack.c.bf16 %v3271_v39, %v3271_v39  ;;  %v6548_v54 = vld [vmem:[%s5377_s14 + $0x98] sm:$0xff] }
 0x2aa   : > { %v3013_v28 = vsel %vm2984_vm5, %v6934_v13, %v6933_v44  ;;  %3939 = vst [vmem:[#allocation1 + $0x2] ss:$9 sm:$0xff] %v3493_v31  ;;  %v2936_v37 = vadd.f32 %v6452_v24, %v2543_v42  ;;  %v2361_v42 = vrot.slane %v6473_v23, 2  ;;  %v2748_v44 = vshll.u32 %v6548_v54, 16 }
 0x2ab   : > { %3941 = vst [vmem:[#allocation1 + $0x3] ss:$9 sm:$0xff] %v3496_v19  ;;  %v3379_v35 = vrot.slane %v3307_v2, 3  ;;  %2508 = vmatmul.bf16.gmra.mxu2 %v2360_v14  ;;  %3161 = vmatmul.bf16.gmra.mxu0 %v3013_v28 }
 0x2ac   : > { %3943 = vst [vmem:[#allocation1 + $0x4] ss:$9 sm:$0xff] %v3499_v32  ;;  %v3196_v62 = vadd.f32 %v3119_v11, %v2936_v37 }
 0x2ad   : > { %v3502_v21 = vsel %vm3407_vm6, %v3307_v2, %v3379_v35  ;;  %v3503_v36 = vsel %vm3411_vm7, %v3307_v2, %v3379_v35  ;;  %v3506_v43 = vsel %vm3415_vm8, %v3307_v2, %v3379_v35  ;;  %v2745_v2 = vshrl.u32 %v6548_v54, 16 }
 0x2ae   : > { %2911 = vmatmul.bf16.gmra.mxu3 %v2743_v8  ;;  %v3505_v13 = vrot.slane %v3503_v36, 1  ;;  %v3508_v10 = vrot.slane %v3506_v43, 2  ;;  %3944 = vst [vmem:[#allocation1 + $0x5] ss:$9 sm:$0xff] %v3502_v21  ;;  %v3236_v24 = vadd.f32 %v6360_v63, %v3196_v62  ;;  %v2469_v59 = vpop.f32.mrf.mxu2  ;;  %v3014_v8 = vrot.slane %v6473_v23, 3 }
 0x2af   : > { %v2544_v31 = vadd.f32 %v2469_v59, %v6935_v50  ;;  %v2747_v35 = vrot.slane %v2745_v2, 2  ;;  %v2750_v62 = vrot.slane %v2748_v44, 3 }
 0x2b0   : > { %3946 = vst [vmem:[#allocation1 + $0x6] ss:$9 sm:$0xff] %v3505_v13  ;;  %v3272_v19 = vmax.f32 %v3236_v24, 0.0  ;;  %v6544_v11 = vpop.f32.mrf.mxu3  ;;  %v3124_v14 = vpop.f32.mrf.mxu0  ;;  %v2362_v24 = vsel %vm1946_vm3, %v2359_v40, %v2361_v42 }
 0x2b1   : > { %3948 = vst [vmem:[#allocation1 + $0x7] ss:$9 sm:$0xff] %v3508_v10  ;;  %v2937_v39 = vadd.f32 %v6468_v52, %v2544_v31 }
 0x2b2   : > { %v3308_v32 = vpack.c.bf16 %v3272_v19, %v3272_v19 }
 0x2b3   : > { %v3197_v53 = vadd.f32 %v3122_v16, %v2937_v39 }
 0x2b4   : > { %v3380_v28 = vrot.slane %v3308_v32, 3 }
 0x2b5   : > { %v3237_v37 = vadd.f32 %v6360_v63, %v3197_v53  ;;  %v6567_v53 = vor.u32 %v2750_v62, %v2747_v35 }
 0x2b6   : > { %v3512_v52 = vsel %vm3411_vm7, %v3308_v32, %v3380_v28  ;;  %v3515_v21 = vsel %vm3415_vm8, %v3308_v32, %v3380_v28  ;;  %v3518_v36 = vsel %vm3419_vm9, %v3308_v32, %v3380_v28  ;;  %v2471_v16 = vpop.f32.mrf.mxu2  ;;  %v3511_v50 = vsel %vm3407_vm6, %v3308_v32, %v3380_v28 }
 0x2b7   : > { %v3514_v43 = vrot.slane %v3512_v52, 1  ;;  %v3517_v13 = vrot.slane %v3515_v21, 2  ;;  %v3273_v10 = vmax.f32 %v3237_v37, 0.0  ;;  %v3520_v31 = vrot.slane %v3518_v36, 3 }
 0x2b8   : > { %v3949_v59 = vld [vmem:[#allocation1] sm:$0xff]  ;;  %v2545_v19 = vadd.f32 %v2471_v16, %v6096_v7  ;;  %v6565_v39 = vpop.f32.mrf.mxu3  ;;  %v3127_v44 = vpop.f32.mrf.mxu0  ;;  %v6936_v37 = vrot.slane %v6435_v61, 3  ;;  %v2752_v7 = vsel %vm2591_vm4, %v6529_v33, %v6567_v53 }
 0x2b9   : > { %3950 = vst [vmem:[#allocation1] ss:$9 sm:$0xff] %v3511_v50  ;;  %v3309_v2 = vpack.c.bf16 %v3273_v10, %v3273_v10  ;;  %4217 = vmatmul.bf16.gmra.mxu1 %v3949_v59 }
 0x2ba   : > { %v3015_v40 = vsel %vm2984_vm5, %v6936_v37, %v3014_v8  ;;  %3952 = vst [vmem:[#allocation1 + $0x1] ss:$9 sm:$0xff] %v3514_v43  ;;  %v2938_v32 = vadd.f32 %v6491_v22, %v2545_v19 }
 0x2bb   : > { %3954 = vst [vmem:[#allocation1 + $0x2] ss:$9 sm:$0xff] %v3517_v13  ;;  %v3381_v28 = vrot.slane %v3309_v2, 3  ;;  %2513 = vmatmul.bf16.gmra.mxu2 %v2362_v24  ;;  %3166 = vmatmul.bf16.gmra.mxu0 %v3015_v40 }
 0x2bc   : > { %3956 = vst [vmem:[#allocation1 + $0x3] ss:$9 sm:$0xff] %v3520_v31  ;;  %v3198_v35 = vadd.f32 %v3124_v14, %v2938_v32  ;;  %v2570_v14 = vld [vmem:[%s5377_s14 + $0xa0] sm:$0x7]  ;;  %v2363_v32 = vrot.slane %v6509_v12, 2 }
 0x2bd   : > { %v3523_v62 = vsel %vm3407_vm6, %v3309_v2, %v3381_v28  ;;  %v3524_v61 = vsel %vm3411_vm7, %v3309_v2, %v3381_v28  ;;  %v3527_v52 = vsel %vm3415_vm8, %v3309_v2, %v3381_v28  ;;  %v3530_v21 = vsel %vm3419_vm9, %v3309_v2, %v3381_v28  ;;  %v6937_v28 = vld [vmem:[#allocation18_spill] sm:$0xff] }
 0x2be   : > { %2916 = vmatmul.bf16.gmra.mxu3 %v2752_v7  ;;  %v3526_v22 = vrot.slane %v3524_v61, 1  ;;  %v3529_v36 = vrot.slane %v3527_v52, 2  ;;  %v3532_v16 = vrot.slane %v3530_v21, 3  ;;  %3957 = vst [vmem:[#allocation1 + $0x4] ss:$9 sm:$0xff] %v3523_v62  ;;  %v3238_v33 = vadd.f32 %v6360_v63, %v3198_v35  ;;  %v2474_v43 = vpop.f32.mrf.mxu2 }
 0x2bf   : > { %v2546_v13 = vadd.f32 %v2474_v43, %v6108_v9  ;;  %v2589_v59 = vunpack.c.l.b16 %v2570_v14  ;;  %v2162_v35 = vadd.f32 %v6125_v47, %v6937_v28  ;;  %v2364_v47 = vsel %vm1946_vm3, %v2361_v42, %v2363_v32 }
 0x2c0   : > { %3959 = vst [vmem:[#allocation1 + $0x5] ss:$9 sm:$0xff] %v3526_v22  ;;  %v3274_v10 = vmax.f32 %v3238_v33, 0.0  ;;  %v6585_v24 = vpop.f32.mrf.mxu3  ;;  %v3129_v31 = vpop.f32.mrf.mxu0 }
 0x2c1   : > { %3961 = vst [vmem:[#allocation1 + $0x6] ss:$9 sm:$0xff] %v3529_v36  ;;  %v2939_v50 = vadd.f32 %v6505_v57, %v2546_v13  ;;  %v6588_v2 = vpack.c.b16 %v2589_v59, %v2589_v59  ;;  %v3016_v57 = vrot.slane %v6509_v12, 3 }
 0x2c2   : > { %3963 = vst [vmem:[#allocation1 + $0x7] ss:$9 sm:$0xff] %v3532_v16  ;;  %v3310_v19 = vpack.c.bf16 %v3274_v10, %v3274_v10 }
 0x2c3   : > { %v3199_v37 = vadd.f32 %v3127_v44, %v2939_v50  ;;  %v2754_v9 = vshrl.u32 %v6588_v2, 16  ;;  %v2757_v7 = vshll.u32 %v6588_v2, 16 }
 0x2c4   : > { %v3382_v40 = vrot.slane %v3310_v19, 3 }
 0x2c5   : > { %v3239_v62 = vadd.f32 %v6360_v63, %v3199_v37  ;;  %v2756_v22 = vrot.slane %v2754_v9, 2  ;;  %v2759_v10 = vrot.slane %v2757_v7, 3 }
 0x2c6   : > { %v3535_v61 = vsel %vm3411_vm7, %v3310_v19, %v3382_v40  ;;  %v3538_v52 = vsel %vm3415_vm8, %v3310_v19, %v3382_v40  ;;  %v3541_v44 = vsel %vm3419_vm9, %v3310_v19, %v3382_v40  ;;  %v2476_v21 = vpop.f32.mrf.mxu2  ;;  %v3017_v19 = vsel %vm2984_vm5, %v3014_v8, %v3016_v57 }
 0x2c7   : > { %v3537_v36 = vrot.slane %v3535_v61, 1  ;;  %v3540_v16 = vrot.slane %v3538_v52, 2  ;;  %v3275_v33 = vmax.f32 %v3239_v62, 0.0  ;;  %v3543_v43 = vrot.slane %v3541_v44, 3 }
 0x2c8   : > { %v2547_v13 = vadd.f32 %v2476_v21, %v2162_v35  ;;  %v6605_v14 = vpop.f32.mrf.mxu3  ;;  %v3132_v37 = vpop.f32.mrf.mxu0  ;;  %v2760_v9 = vor.u32 %v2759_v10, %v2756_v22  ;;  %v2164_v10 = vadd.f32 %v6155_v18, %v6115_v48 }
 0x2c9   : > { %v3964_v59 = vld [vmem:[#allocation1] sm:$0xff]  ;;  %v3311_v50 = vpack.c.bf16 %v3275_v33, %v3275_v33 }
 0x2ca   : > { %3966 = vst [vmem:[#allocation1] ss:$9 sm:$0xff] %v3537_v36  ;;  %v2940_v40 = vadd.f32 %v6527_v56, %v2547_v13  ;;  %4222 = vmatmul.bf16.gmra.mxu1 %v3964_v59  ;;  %v2761_v7 = vsel %vm2591_vm4, %v6567_v53, %v2760_v9  ;;  %v3018_v59 = vrot.slane %v6548_v54, 3 }
 0x2cb   : > { %3968 = vst [vmem:[#allocation1 + $0x1] ss:$9 sm:$0xff] %v3540_v16  ;;  %v3383_v28 = vrot.slane %v3311_v50, 3  ;;  %2518 = vmatmul.bf16.gmra.mxu2 %v2364_v47  ;;  %3171 = vmatmul.bf16.gmra.mxu0 %v3017_v19  ;;  %v2365_v47 = vrot.slane %v6548_v54, 2 }
 0x2cc   : > { %3970 = vst [vmem:[#allocation1 + $0x2] ss:$9 sm:$0xff] %v3543_v43  ;;  %v3200_v42 = vadd.f32 %v3129_v31, %v2940_v40  ;;  %v3019_v18 = vsel %vm2984_vm5, %v3016_v57, %v3018_v59 }
 0x2cd   : > { %v3546_v35 = vsel %vm3407_vm6, %v3311_v50, %v3383_v28  ;;  %v3547_v23 = vsel %vm3411_vm7, %v3311_v50, %v3383_v28  ;;  %v3550_v8 = vsel %vm3415_vm8, %v3311_v50, %v3383_v28  ;;  %v3553_v62 = vsel %vm3419_vm9, %v3311_v50, %v3383_v28 }
 0x2ce   : > { %2921 = vmatmul.bf16.gmra.mxu3 %v2761_v7  ;;  %v3549_v56 = vrot.slane %v3547_v23, 1  ;;  %v3552_v61 = vrot.slane %v3550_v8, 2  ;;  %v3555_v52 = vrot.slane %v3553_v62, 3  ;;  %3971 = vst [vmem:[#allocation1 + $0x3] ss:$9 sm:$0xff] %v3546_v35  ;;  %v3240_v44 = vadd.f32 %v6360_v63, %v3200_v42  ;;  %v2479_v31 = vpop.f32.mrf.mxu2 }
 0x2cf   : > { %v2548_v21 = vadd.f32 %v2479_v31, %v6138_v0  ;;  %v2221_v42 = vld [vmem:[%s5377_s14 + $0xa0] sm:$0x3]  ;;  %s5046_s14 = sshll.u32 %s6945_s19, 7 }
 0x2d0   : > { %3973 = vst [vmem:[#allocation1 + $0x4] ss:$9 sm:$0xff] %v3549_v56  ;;  %v3276_v53 = vmax.f32 %v3240_v44, 0.0  ;;  %v6621_v22 = vpop.f32.mrf.mxu3  ;;  %v3134_v16 = vpop.f32.mrf.mxu0  ;;  %s6692_s8 = scalar_lea.vmem %s6878_s4, %s5046_s14 }
 0x2d1   : > { %3975 = vst [vmem:[#allocation1 + $0x5] ss:$9 sm:$0xff] %v3552_v61  ;;  %v2941_v36 = vadd.f32 %v6544_v11, %v2548_v21 }
 0x2d2   : > { %3977 = vst [vmem:[#allocation1 + $0x6] ss:$9 sm:$0xff] %v3555_v52  ;;  %v3312_v33 = vpack.c.bf16 %v3276_v53, %v3276_v53 }
 0x2d3   : > { %v3201_v43 = vadd.f32 %v3132_v37, %v2941_v36  ;;  %v2366_v37 = vsel %vm1946_vm3, %v2363_v32, %v2365_v47  ;;  %v2312_v32 = vunpack.c.l.b16 %v2221_v42 }
 0x2d4   : > { %v3384_v13 = vrot.slane %v3312_v33, 3 }
 0x2d5   : > { %v3241_v0 = vadd.f32 %v6360_v63, %v3201_v43 }
 0x2d6   : > { %v3558_v50 = vsel %vm3407_vm6, %v3312_v33, %v3384_v13  ;;  %v2481_v19 = vpop.f32.mrf.mxu2  ;;  %v3559_v35 = vsel %vm3415_vm8, %v3312_v33, %v3384_v13  ;;  %v3562_v23 = vsel %vm3419_vm9, %v3312_v33, %v3384_v13  ;;  %v2331_v13 = vpack.c.b16 %v2312_v32, %v2312_v32 }
 0x2d7   : > { %3978 = vst [vmem:[#allocation1 + $0x7] ss:$9 sm:$0xff] %v3558_v50  ;;  %v3277_v11 = vmax.f32 %v3241_v0, 0.0  ;;  %v2549_v40 = vadd.f32 %v2481_v19, %v2164_v10  ;;  %v3564_v57 = vrot.slane %v3562_v23, 3 }
 0x2d8   : > { %v3137_v48 = vpop.f32.mrf.mxu0  ;;  %v6642_v7 = vpop.f32.mrf.mxu3 }
 0x2d9   : > { %v3313_v9 = vpack.c.bf16 %v3277_v11, %v3277_v11  ;;  %v2942_v28 = vadd.f32 %v6565_v39, %v2549_v40  ;;  %v3561_v39 = vrot.slane %v3559_v35, 2 }
 0x2db   : > { %v3385_v8 = vrot.slane %v3313_v9, 3  ;;  %v3202_v62 = vadd.f32 %v3134_v16, %v2942_v28  ;;  %2523 = vmatmul.bf16.gmra.mxu2 %v2366_v37  ;;  %3176 = vmatmul.bf16.gmra.mxu0 %v3019_v18  ;;  %v2367_v37 = vrot.slane %v2331_v13, 2  ;;  %v3020_v28 = vrot.slane %v6588_v2, 3 }
 0x2dd   : > { %v3568_v56 = vsel %vm3411_vm7, %v3313_v9, %v3385_v8  ;;  %v3571_v61 = vsel %vm3415_vm8, %v3313_v9, %v3385_v8  ;;  %v3574_v12 = vsel %vm3419_vm9, %v3313_v9, %v3385_v8  ;;  %v3567_v44 = vsel %vm3407_vm6, %v3313_v9, %v3385_v8 }
 0x2de   : > { %v3979_v52 = vld [vmem:[#allocation1] sm:$0xff]  ;;  %v3570_v31 = vrot.slane %v3568_v56, 1  ;;  %v3242_v21 = vadd.f32 %v6360_v63, %v3202_v62  ;;  %v2484_v53 = vpop.f32.mrf.mxu2  ;;  %v3573_v36 = vrot.slane %v3571_v61, 2  ;;  %v3576_v33 = vrot.slane %v3574_v12, 3 }
 0x2df   : > { %3981 = vst [vmem:[#allocation1] ss:$9 sm:$0xff] %v3561_v39  ;;  %v2550_v16 = vadd.f32 %v2484_v53, %v6173_v1  ;;  %4227 = vmatmul.bf16.gmra.mxu1 %v3979_v52  ;;  %v2166_v1 = vadd.f32 %v6186_v26, %v6143_v38  ;;  %v2368_v8 = vsel %vm1946_vm3, %v2365_v47, %v2367_v37 }
 0x2e0   : > { %3983 = vst [vmem:[#allocation1 + $0x1] ss:$9 sm:$0xff] %v3564_v57  ;;  %v3278_v43 = vmax.f32 %v3242_v21, 0.0  ;;  %v3139_v0 = vpop.f32.mrf.mxu0  ;;  %v6653_v11 = vpop.f32.mrf.mxu3  ;;  %v3021_v2 = vsel %vm2984_vm5, %v3018_v59, %v3020_v28 }
 0x2e1   : > { %3984 = vst [vmem:[#allocation1 + $0x2] ss:$9 sm:$0xff] %v3567_v44  ;;  %v2943_v10 = vadd.f32 %v6585_v24, %v2550_v16 }
 0x2e2   : > { %3986 = vst [vmem:[#allocation1 + $0x3] ss:$9 sm:$0xff] %v3570_v31  ;;  %v3314_v50 = vpack.c.bf16 %v3278_v43, %v3278_v43 }
 0x2e3   : > { %3988 = vst [vmem:[#allocation1 + $0x4] ss:$9 sm:$0xff] %v3573_v36  ;;  %v3203_v19 = vadd.f32 %v3137_v48, %v2943_v10 }
 0x2e4   : > { %3990 = vst [vmem:[#allocation1 + $0x5] ss:$9 sm:$0xff] %v3576_v33  ;;  %v3386_v40 = vrot.slane %v3314_v50, 3 }
 0x2e5   : > { %v3243_v9 = vadd.f32 %v6360_v63, %v3203_v19 }
 0x2e6   : > { %v3579_v18 = vsel %vm3407_vm6, %v3314_v50, %v3386_v40  ;;  %v3580_v24 = vsel %vm3411_vm7, %v3314_v50, %v3386_v40  ;;  %v2486_v42 = vpop.f32.mrf.mxu2  ;;  %v3583_v56 = vsel %vm3419_vm9, %v3314_v50, %v3386_v40 }
 0x2e7   : > { %v3582_v35 = vrot.slane %v3580_v24, 1  ;;  %3991 = vst [vmem:[#allocation1 + $0x6] ss:$9 sm:$0xff] %v3579_v18  ;;  %v3279_v48 = vmax.f32 %v3243_v9, 0.0  ;;  %v2551_v23 = vadd.f32 %v2486_v42, %v2166_v1  ;;  %v3585_v54 = vrot.slane %v3583_v56, 3  ;;  %v6687_v42 = vpop.f32.mrf.mxu1 }
 0x2e8   : > { %v3142_v26 = vpop.f32.mrf.mxu0  ;;  %v6671_v47 = vpop.f32.mrf.mxu3 }
 0x2e9   : > { %3993 = vst [vmem:[#allocation1 + $0x7] ss:$9 sm:$0xff] %v3582_v35  ;;  %v3315_v62 = vpack.c.bf16 %v3279_v48, %v3279_v48  ;;  %v2944_v38 = vadd.f32 %v6605_v14, %v2551_v23  ;;  %v5184_v23 = vld [vmem:[%s6692_s8] sm:$0xff]  }
 0x2eb   : > { %v3387_v32 = vrot.slane %v3315_v62, 3  ;;  %v3204_v39 = vadd.f32 %v3139_v0, %v2944_v38  ;;  %2528 = vmatmul.bf16.gmra.mxu2 %v2368_v8  ;;  %3181 = vmatmul.bf16.gmra.mxu0 %v3021_v2 }
 0x2ed   : > { %v3589_v61 = vsel %vm3411_vm7, %v3315_v62, %v3387_v32  ;;  %v3592_v12 = vsel %vm3415_vm8, %v3315_v62, %v3387_v32  ;;  %v3595_v57 = vsel %vm3419_vm9, %v3315_v62, %v3387_v32  ;;  %v3244_v14 = vadd.f32 %v6360_v63, %v3204_v39 }
 0x2ee   : > { %v2489_v52 = vpop.f32.mrf.mxu2  ;;  %v3591_v44 = vrot.slane %v3589_v61, 1  ;;  %v3594_v21 = vrot.slane %v3592_v12, 2  ;;  %v3588_v36 = vsel %vm3407_vm6, %v3315_v62, %v3387_v32  ;;  %v3597_v16 = vrot.slane %v3595_v57, 3 }
 0x2ef   : > { %v2552_v59 = vadd.f32 %v2489_v52, %v6199_v20  ;;  %v3280_v53 = vmax.f32 %v3244_v14, 0.0  ;;  %v2168_v20 = vadd.f32 %v6211_v27, %v6177_v4 }
 0x2f0   : > { %v3994_v31 = vld [vmem:[#allocation1] sm:$0xff]  ;;  %v3144_v43 = vpop.f32.mrf.mxu0 }
 0x2f1   : > { %3996 = vst [vmem:[#allocation1] ss:$9 sm:$0xff] %v3585_v54  ;;  %v2945_v33 = vadd.f32 %v6621_v22, %v2552_v59  ;;  %4232 = vmatmul.bf16.gmra.mxu1 %v3994_v31  ;;  %v3316_v13 = vpack.c.bf16 %v3280_v53, %v3280_v53  ;;  %v6685_v24 = vpop.f32.mrf.mxu3 }
 0x2f2   : > { %3997 = vst [vmem:[#allocation1 + $0x1] ss:$9 sm:$0xff] %v3588_v36 }
 0x2f3   : > { %3999 = vst [vmem:[#allocation1 + $0x2] ss:$9 sm:$0xff] %v3591_v44  ;;  %v3205_v10 = vadd.f32 %v3142_v26, %v2945_v33  ;;  %v3388_v0 = vrot.slane %v3316_v13, 3  ;;  %v6702_v26 = vld [vmem:[%s6876_s2] ss:$0 sm:$0xff]  ;;  %v5186_v33 = vunpack.c.h.bf16 %v5184_v23 }
 0x2f4   : > { %4001 = vst [vmem:[#allocation1 + $0x3] ss:$9 sm:$0xff] %v3594_v21 }
 0x2f5   : > { %4003 = vst [vmem:[#allocation1 + $0x4] ss:$9 sm:$0xff] %v3597_v16  ;;  %v3245_v50 = vadd.f32 %v6360_v63, %v3205_v10  ;;  %v3600_v19 = vsel %vm3407_vm6, %v3316_v13, %v3388_v0  ;;  %v3601_v40 = vsel %vm3411_vm7, %v3316_v13, %v3388_v0  ;;  %v3604_v22 = vsel %vm3415_vm8, %v3316_v13, %v3388_v0 }
 0x2f6   : > { %v2491_v37 = vpop.f32.mrf.mxu2  ;;  %v3603_v1 = vrot.slane %v3601_v40, 1  ;;  %v3606_v9 = vrot.slane %v3604_v22, 2  ;;  %4004 = vst [vmem:[#allocation1 + $0x5] ss:$9 sm:$0xff] %v3600_v19 }
 0x2f7   : > { %v3281_v28 = vmax.f32 %v3245_v50, 0.0  ;;  %v2553_v18 = vadd.f32 %v2491_v37, %v2168_v20 }
 0x2f8   : > { %4006 = vst [vmem:[#allocation1 + $0x6] ss:$9 sm:$0xff] %v3603_v1  ;;  %v3147_v63 = vpop.f32.mrf.mxu0 }
 0x2f9   : > { %v3317_v4 = vpack.c.bf16 %v3281_v28, %v3281_v28  ;;  %v2946_v27 = vadd.f32 %v6642_v7, %v2553_v18  ;;  %4008 = vst [vmem:[#allocation1 + $0x7] ss:$9 sm:$0xff] %v3606_v9  ;;  %v5185_v7 = vunpack.c.l.bf16 %v5184_v23  ;;  %v6709_v31 = vpop.f32.mrf.mxu3 }
 0x2fb   : > { %v3389_v35 = vrot.slane %v3317_v4, 3  ;;  %v3206_v48 = vadd.f32 %v3144_v43, %v2946_v27 }
 0x2fd   : > { %v3610_v8 = vsel %vm3411_vm7, %v3317_v4, %v3389_v35  ;;  %v3613_v62 = vsel %vm3415_vm8, %v3317_v4, %v3389_v35  ;;  %v3616_v38 = vsel %vm3419_vm9, %v3317_v4, %v3389_v35  ;;  %v3246_v2 = vadd.f32 %v6702_v26, %v3206_v48 }
 0x2fe   : > { %v2494_v32 = vpop.f32.mrf.mxu2  ;;  %v3612_v39 = vrot.slane %v3610_v8, 1  ;;  %v3615_v61 = vrot.slane %v3613_v62, 2  ;;  %v3609_v52 = vsel %vm3407_vm6, %v3317_v4, %v3389_v35  ;;  %v3618_v54 = vrot.slane %v3616_v38, 3  ;;  %v5250_v62 = vld [vmem:[%s6692_s8 + $0x8] sm:$0xff]  }
 0x2ff   : > { %v2554_v56 = vadd.f32 %v2494_v32, %v6222_v55  ;;  %v3282_v12 = vmax.f32 %v3246_v2, 0.0 }
 0x300   : > { %v4203_v57 = vpop.f32.mrf.mxu1  ;;  %v4009_v14 = vld [vmem:[#allocation1] sm:$0xff]  ;;  %v3149_v59 = vpop.f32.mrf.mxu0 }
 0x301   : > { %v2947_v44 = vadd.f32 %v6653_v11, %v2554_v56  ;;  %4010 = vst [vmem:[#allocation1] ss:$9 sm:$0xff] %v3609_v52  ;;  %v3318_v21 = vpack.c.bf16 %v3282_v12, %v3282_v12  ;;  %v4204_v53 = vadd.f32 %v5185_v7, %v4203_v57  ;;  %4237 = vmatmul.bf16.gmra.mxu1 %v4009_v14  ;;  %v6725_v4 = vpop.f32.mrf.mxu3 }
 0x302   : > { %4012 = vst [vmem:[#allocation1 + $0x1] ss:$9 sm:$0xff] %v3612_v39  ;;  %v2170_v11 = vadd.f32 %v6234_v41, %v6203_v25 }
 0x303   : > { %v3207_v55 = vadd.f32 %v3147_v63, %v2947_v44  ;;  %4014 = vst [vmem:[#allocation1 + $0x2] ss:$9 sm:$0xff] %v3615_v61  ;;  %v3390_v36 = vrot.slane %v3318_v21, 3  ;;  %v5189_v61 = vunpack.c.l.bf16 %v5250_v62  ;;  %v2172_v44 = vadd.f32 %v6253_v6, %v6226_v58 }
 0x304   : > { %4016 = vst [vmem:[#allocation1 + $0x3] ss:$9 sm:$0xff] %v3618_v54 }
 0x305   : > { %v3247_v16 = vadd.f32 %v6702_v26, %v3207_v55  ;;  %v3621_v43 = vsel %vm3407_vm6, %v3318_v21, %v3390_v36  ;;  %v3622_v13 = vsel %vm3411_vm7, %v3318_v21, %v3390_v36  ;;  %v3625_v10 = vsel %vm3415_vm8, %v3318_v21, %v3390_v36  ;;  %4283 = vst [vmem:[%s6714_s15] sm:$0xff] %v4204_v53 }
 0x306   : > { %v3628_v0 = vsel %vm3419_vm9, %v3318_v21, %v3390_v36  ;;  %v2496_v20 = vpop.f32.mrf.mxu2  ;;  %v3624_v50 = vrot.slane %v3622_v13, 1  ;;  %v3627_v19 = vrot.slane %v3625_v10, 2  ;;  %4017 = vst [vmem:[#allocation1 + $0x4] ss:$9 sm:$0xff] %v3621_v43 }
 0x307   : > { %v3630_v40 = vrot.slane %v3628_v0, 3  ;;  %v3283_v25 = vmax.f32 %v3247_v16, 0.0  ;;  %v2555_v22 = vadd.f32 %v2496_v20, %v2170_v11  ;;  %v5190_v0 = vunpack.c.h.bf16 %v5250_v62 }
 0x308   : > { %v4205_v41 = vpop.f32.mrf.mxu1  ;;  %4019 = vst [vmem:[#allocation1 + $0x5] ss:$9 sm:$0xff] %v3624_v50  ;;  %v3152_v9 = vpop.f32.mrf.mxu0 }
 0x309   : > { %v3319_v37 = vpack.c.bf16 %v3283_v25, %v3283_v25  ;;  %v4206_v1 = vadd.f32 %v5186_v33, %v4205_v41  ;;  %4021 = vst [vmem:[#allocation1 + $0x6] ss:$9 sm:$0xff] %v3627_v19  ;;  %v2948_v28 = vadd.f32 %v6671_v47, %v2555_v22  ;;  %v6738_v21 = vpop.f32.mrf.mxu3 }
 0x30a   : > { %4023 = vst [vmem:[#allocation1 + $0x7] ss:$9 sm:$0xff] %v3630_v40 }
 0x30b   : > { %v3391_v18 = vrot.slane %v3319_v37, 3  ;;  %4284 = vst [vmem:[%s6714_s15 + $0x8] sm:$0xff] %v4206_v1  ;;  %v3208_v27 = vadd.f32 %v3149_v59, %v2948_v28 }
 0x30d   : > { %v3633_v63 = vsel %vm3411_vm7, %v3319_v37, %v3391_v18  ;;  %v3636_v35 = vsel %vm3415_vm8, %v3319_v37, %v3391_v18  ;;  %v3639_v48 = vsel %vm3419_vm9, %v3319_v37, %v3391_v18  ;;  %v3248_v23 = vadd.f32 %v6702_v26, %v3208_v27 }
 0x30e   : > { %v2499_v8 = vpop.f32.mrf.mxu2  ;;  %v3635_v38 = vrot.slane %v3633_v63, 1  ;;  %v3638_v47 = vrot.slane %v3636_v35, 2  ;;  %v3641_v32 = vrot.slane %v3639_v48, 3  ;;  %v5251_v63 = vld [vmem:[%s6692_s8 + $0x10] sm:$0xff]  }
 0x30f   : > { %v2556_v2 = vadd.f32 %v2499_v8, %v6241_v29  ;;  %v3284_v7 = vmax.f32 %v3248_v23, 0.0 }
 0x310   : > { %v3154_v56 = vpop.f32.mrf.mxu0 }
 0x311   : > { %v2949_v39 = vadd.f32 %v6685_v24, %v2556_v2  ;;  %v4024_v12 = vld [vmem:[#allocation1] sm:$0xff]  ;;  %v3320_v57 = vpack.c.bf16 %v3284_v7, %v3284_v7  ;;  %v2174_v2 = vadd.f32 %v6274_v51, %v6245_v3 }
 0x312   : > { %4026 = vst [vmem:[#allocation1] ss:$9 sm:$0xff] %v3635_v38  ;;  %4242 = vmatmul.bf16.gmra.mxu1 %v4024_v12  ;;  %v5193_v38 = vunpack.c.l.bf16 %v5251_v63 }
 0x313   : > { %v3209_v14 = vadd.f32 %v3152_v9, %v2949_v39  ;;  %4028 = vst [vmem:[#allocation1 + $0x1] ss:$9 sm:$0xff] %v3638_v47  ;;  %v3392_v52 = vrot.slane %v3320_v57, 3  ;;  %v2902_v9 = vpop.f32.mrf.mxu3 }
 0x314   : > { %v4208_v54 = vpop.f32.mrf.mxu1  ;;  %4030 = vst [vmem:[#allocation1 + $0x2] ss:$9 sm:$0xff] %v3641_v32 }
 0x315   : > { %v3249_v29 = vadd.f32 %v6702_v26, %v3209_v14  ;;  %v4209_v59 = vadd.f32 %v5189_v61, %v4208_v54  ;;  %v3644_v24 = vsel %vm3407_vm6, %v3320_v57, %v3392_v52  ;;  %v3645_v53 = vsel %vm3411_vm7, %v3320_v57, %v3392_v52 }
 0x316   : > { %v3648_v55 = vsel %vm3415_vm8, %v3320_v57, %v3392_v52  ;;  %v3651_v36 = vsel %vm3419_vm9, %v3320_v57, %v3392_v52  ;;  %v2501_v11 = vpop.f32.mrf.mxu2  ;;  %v3647_v16 = vrot.slane %v3645_v53, 1  ;;  %4031 = vst [vmem:[#allocation1 + $0x3] ss:$9 sm:$0xff] %v3644_v24  ;;  %v5194_v53 = vunpack.c.h.bf16 %v5251_v63 }
 0x317   : > { %v3650_v33 = vrot.slane %v3648_v55, 2  ;;  %v3653_v43 = vrot.slane %v3651_v36, 3  ;;  %v3285_v58 = vmax.f32 %v3249_v29, 0.0  ;;  %4285 = vst [vmem:[%s6714_s15 + $0x10] sm:$0xff] %v4209_v59  ;;  %v2557_v6 = vadd.f32 %v2501_v11, %v2172_v44 }
 0x318   : > { %4033 = vst [vmem:[#allocation1 + $0x4] ss:$9 sm:$0xff] %v3647_v16  ;;  %v3157_v10 = vpop.f32.mrf.mxu0 }
 0x319   : > { %v3321_v13 = vpack.c.bf16 %v3285_v58, %v3285_v58  ;;  %4035 = vst [vmem:[#allocation1 + $0x5] ss:$9 sm:$0xff] %v3650_v33  ;;  %v2950_v20 = vadd.f32 %v6709_v31, %v2557_v6 }
 0x31a   : > { %4037 = vst [vmem:[#allocation1 + $0x6] ss:$9 sm:$0xff] %v3653_v43 }
 0x31b   : > { %v3393_v50 = vrot.slane %v3321_v13, 3  ;;  %v3210_v19 = vadd.f32 %v3154_v56, %v2950_v20  ;;  %v2904_v59 = vpop.f32.mrf.mxu3 }
 0x31c   : > { %v4210_v40 = vpop.f32.mrf.mxu1 }
 0x31d   : > { %v3656_v25 = vsel %vm3407_vm6, %v3321_v13, %v3393_v50  ;;  %v4211_v41 = vadd.f32 %v5190_v0, %v4210_v40  ;;  %v3250_v22 = vadd.f32 %v6702_v26, %v3210_v19  ;;  %v3657_v18 = vsel %vm3415_vm8, %v3321_v13, %v3393_v50  ;;  %v5252_v19 = vld [vmem:[%s6692_s8 + $0x18] sm:$0xff]  }
 0x31e   : > { %4038 = vst [vmem:[#allocation1 + $0x7] ss:$9 sm:$0xff] %v3656_v25  ;;  %v2504_v37 = vpop.f32.mrf.mxu2  ;;  %v3660_v35 = vsel %vm3419_vm9, %v3321_v13, %v3393_v50  ;;  %v3659_v8 = vrot.slane %v3657_v18, 2 }
 0x31f   : > { %4286 = vst [vmem:[%s6714_s15 + $0x18] sm:$0xff] %v4211_v41  ;;  %v2558_v1 = vadd.f32 %v2504_v37, %v6262_v5  ;;  %v3286_v28 = vmax.f32 %v3250_v22, 0.0  ;;  %v3662_v47 = vrot.slane %v3660_v35, 3  ;;  %v2176_v37 = vadd.f32 %v6292_v60, %v6266_v17 }
 0x320   : > { %v3159_v27 = vpop.f32.mrf.mxu0 }
 0x321   : > { %v2951_v31 = vadd.f32 %v6725_v4, %v2558_v1  ;;  %v3322_v48 = vpack.c.bf16 %v3286_v28, %v3286_v28  ;;  %v5197_v28 = vunpack.c.l.bf16 %v5252_v19 }
 0x323   : > { %v3211_v23 = vadd.f32 %v3157_v10, %v2951_v31  ;;  %v3394_v62 = vrot.slane %v3322_v48, 3  ;;  %v2907_v41 = vpop.f32.mrf.mxu3 }
 0x325   : > { %v4039_v5 = vld [vmem:[#allocation1] sm:$0xff]  ;;  %v3251_v7 = vadd.f32 %v6702_v26, %v3211_v23  ;;  %v4213_v32 = vpop.f32.mrf.mxu1  ;;  %v3665_v4 = vsel %vm3407_vm6, %v3322_v48, %v3394_v62  ;;  %v3666_v39 = vsel %vm3411_vm7, %v3322_v48, %v3394_v62  ;;  %v3669_v56 = vsel %vm3415_vm8, %v3322_v48, %v3394_v62 }
 0x326   : > { %4041 = vst [vmem:[#allocation1] ss:$9 sm:$0xff] %v3659_v8  ;;  %v3672_v61 = vsel %vm3419_vm9, %v3322_v48, %v3394_v62  ;;  %v2506_v12 = vpop.f32.mrf.mxu2  ;;  %v3668_v57 = vrot.slane %v3666_v39, 1  ;;  %v3671_v14 = vrot.slane %v3669_v56, 2  ;;  %4247 = vmatmul.bf16.gmra.mxu1 %v4039_v5  ;;  %v4214_v52 = vadd.f32 %v5193_v38, %v4213_v32 }
 0x327   : > { %4043 = vst [vmem:[#allocation1 + $0x1] ss:$9 sm:$0xff] %v3662_v47  ;;  %v3674_v3 = vrot.slane %v3672_v61, 3  ;;  %v3287_v51 = vmax.f32 %v3251_v7, 0.0  ;;  %v2559_v54 = vadd.f32 %v2506_v12, %v2174_v2  ;;  %v5198_v32 = vunpack.c.h.bf16 %v5252_v19 }
 0x328   : > { %4044 = vst [vmem:[#allocation1 + $0x2] ss:$9 sm:$0xff] %v3665_v4  ;;  %v3162_v29 = vpop.f32.mrf.mxu0 }
 0x329   : > { %4046 = vst [vmem:[#allocation1 + $0x3] ss:$9 sm:$0xff] %v3668_v57  ;;  %v3323_v44 = vpack.c.bf16 %v3287_v51, %v3287_v51  ;;  %v2952_v24 = vadd.f32 %v6738_v21, %v2559_v54 }
 0x32a   : > { %4048 = vst [vmem:[#allocation1 + $0x4] ss:$9 sm:$0xff] %v3671_v14 }
 0x32b   : > { %4050 = vst [vmem:[#allocation1 + $0x5] ss:$9 sm:$0xff] %v3674_v3  ;;  %v3395_v55 = vrot.slane %v3323_v44, 3  ;;  %v3212_v36 = vadd.f32 %v3159_v27, %v2952_v24  ;;  %v2909_v12 = vpop.f32.mrf.mxu3 }
 0x32c   : > { %4287 = vst [vmem:[%s6714_s15 + $0x20] sm:$0xff] %v4214_v52 }
 0x32d   : > { %v3677_v11 = vsel %vm3407_vm6, %v3323_v44, %v3395_v55  ;;  %v3678_v16 = vsel %vm3411_vm7, %v3323_v44, %v3395_v55  ;;  %v4215_v33 = vpop.f32.mrf.mxu1  ;;  %v3252_v58 = vadd.f32 %v6702_v26, %v3212_v36  ;;  %v3681_v40 = vsel %vm3419_vm9, %v3323_v44, %v3395_v55  ;;  %v5253_v55 = vld [vmem:[%s6692_s8 + $0x20] sm:$0xff]  }
 0x32e   : > { %v3680_v43 = vrot.slane %v3678_v16, 1  ;;  %4051 = vst [vmem:[#allocation1 + $0x6] ss:$9 sm:$0xff] %v3677_v11  ;;  %v4216_v6 = vadd.f32 %v5194_v53, %v4215_v33  ;;  %v2509_v13 = vpop.f32.mrf.mxu2  ;;  %v3683_v18 = vrot.slane %v3681_v40, 3  ;;  %v5201_v33 = vunpack.c.l.bf16 %v5253_v55 }
 0x32f   : > { %v2560_v21 = vadd.f32 %v2509_v13, %v6280_v46  ;;  %v3288_v10 = vmax.f32 %v3252_v58, 0.0 }
 0x330   : > { %4053 = vst [vmem:[#allocation1 + $0x7] ss:$9 sm:$0xff] %v3680_v43  ;;  %v3164_v20 = vpop.f32.mrf.mxu0  ;;  %v2178_v43 = vadd.f32 %v6311_v49, %v6284_v45 }
 0x331   : > { %4288 = vst [vmem:[%s6714_s15 + $0x28] sm:$0xff] %v4216_v6  ;;  %v2953_v0 = vadd.f32 %v2902_v9, %v2560_v21  ;;  %v3324_v50 = vpack.c.bf16 %v3288_v10, %v3288_v10 }
 0x333   : > { %v3213_v25 = vadd.f32 %v3162_v29, %v2953_v0  ;;  %v3396_v22 = vrot.slane %v3324_v50, 3 }
 0x335   : > { %v3253_v1 = vadd.f32 %v6702_v26, %v3213_v25  ;;  %v3687_v46 = vsel %vm3411_vm7, %v3324_v50, %v3396_v22  ;;  %v3690_v31 = vsel %vm3415_vm8, %v3324_v50, %v3396_v22  ;;  %v3693_v9 = vsel %vm3419_vm9, %v3324_v50, %v3396_v22 }
 0x336   : > { %v4218_v27 = vpop.f32.mrf.mxu1  ;;  %v2511_v63 = vpop.f32.mrf.mxu2  ;;  %v3689_v48 = vrot.slane %v3687_v46, 1  ;;  %v3692_v23 = vrot.slane %v3690_v31, 2  ;;  %v3686_v62 = vsel %vm3407_vm6, %v3324_v50, %v3396_v22  ;;  %v3695_v17 = vrot.slane %v3693_v9, 3 }
 0x337   : > { %v4054_v35 = vld [vmem:[#allocation1] sm:$0xff]  ;;  %v3289_v8 = vmax.f32 %v3253_v1, 0.0  ;;  %v2561_v60 = vadd.f32 %v2511_v63, %v2176_v37  ;;  %v4219_v2 = vadd.f32 %v5197_v28, %v4218_v27  ;;  %v2912_v50 = vpop.f32.mrf.mxu3 }
 0x338   : > { %4056 = vst [vmem:[#allocation1] ss:$9 sm:$0xff] %v3683_v18  ;;  %4252 = vmatmul.bf16.gmra.mxu1 %v4054_v35  ;;  %v3167_v47 = vpop.f32.mrf.mxu0  ;;  %v5202_v18 = vunpack.c.h.bf16 %v5253_v55 }
 0x339   : > { %4057 = vst [vmem:[#allocation1 + $0x1] ss:$9 sm:$0xff] %v3686_v62  ;;  %v3325_v38 = vpack.c.bf16 %v3289_v8, %v3289_v8  ;;  %v2954_v5 = vadd.f32 %v2904_v59, %v2561_v60 }
 0x33a   : > { %4059 = vst [vmem:[#allocation1 + $0x2] ss:$9 sm:$0xff] %v3689_v48 }
 0x33b   : > { %4061 = vst [vmem:[#allocation1 + $0x3] ss:$9 sm:$0xff] %v3692_v23  ;;  %v3397_v7 = vrot.slane %v3325_v38, 3  ;;  %v3214_v4 = vadd.f32 %v3164_v20, %v2954_v5 }
 0x33c   : > { %4063 = vst [vmem:[#allocation1 + $0x4] ss:$9 sm:$0xff] %v3695_v17 }
 0x33d   : > { %v3698_v39 = vsel %vm3407_vm6, %v3325_v38, %v3397_v7  ;;  %v3699_v56 = vsel %vm3411_vm7, %v3325_v38, %v3397_v7  ;;  %v3702_v61 = vsel %vm3415_vm8, %v3325_v38, %v3397_v7  ;;  %4289 = vst [vmem:[%s6714_s15 + $0x30] sm:$0xff] %v4219_v2  ;;  %v3254_v3 = vadd.f32 %v6702_v26, %v3214_v4 }
 0x33e   : > { %v3701_v57 = vrot.slane %v3699_v56, 1  ;;  %v3704_v14 = vrot.slane %v3702_v61, 2  ;;  %4064 = vst [vmem:[#allocation1 + $0x5] ss:$9 sm:$0xff] %v3698_v39  ;;  %v4220_v51 = vpop.f32.mrf.mxu1  ;;  %v2514_v52 = vpop.f32.mrf.mxu2  ;;  %v6938_v56 = vld [vmem:[#allocation3_spill] sm:$0xff] }
 0x33f   : > { %v4221_v54 = vadd.f32 %v5198_v32, %v4220_v51  ;;  %v2562_v44 = vadd.f32 %v2514_v52, %v6298_v15  ;;  %v3290_v29 = vmax.f32 %v3254_v3, 0.0  ;;  %v2180_v61 = vadd.f32 %v6938_v56, %v6305_v34 }
 0x340   : > { %4066 = vst [vmem:[#allocation1 + $0x6] ss:$9 sm:$0xff] %v3701_v57  ;;  %v3169_v24 = vpop.f32.mrf.mxu0 }
 0x341   : > { %4068 = vst [vmem:[#allocation1 + $0x7] ss:$9 sm:$0xff] %v3704_v14  ;;  %v2955_v59 = vadd.f32 %v2907_v41, %v2562_v44  ;;  %v3326_v53 = vpack.c.bf16 %v3290_v29, %v3290_v29  ;;  %v5254_v29 = vld [vmem:[%s6692_s8 + $0x28] sm:$0xff]  }
 0x342   : > { %4290 = vst [vmem:[%s6714_s15 + $0x38] sm:$0xff] %v4221_v54 }
 0x343   : > { %v3215_v36 = vadd.f32 %v3167_v47, %v2955_v59  ;;  %v3398_v11 = vrot.slane %v3326_v53, 3  ;;  %v2914_v47 = vpop.f32.mrf.mxu3 }
 0x345   : > { %v3255_v16 = vadd.f32 %v6702_v26, %v3215_v36  ;;  %v3708_v58 = vsel %vm3411_vm7, %v3326_v53, %v3398_v11  ;;  %v3711_v15 = vsel %vm3415_vm8, %v3326_v53, %v3398_v11  ;;  %v3714_v6 = vsel %vm3419_vm9, %v3326_v53, %v3398_v11 }
 0x346   : > { %v2516_v13 = vpop.f32.mrf.mxu2  ;;  %v3710_v21 = vrot.slane %v3708_v58, 1  ;;  %v3713_v10 = vrot.slane %v3711_v15, 2  ;;  %v3707_v40 = vsel %vm3407_vm6, %v3326_v53, %v3398_v11  ;;  %v3716_v25 = vrot.slane %v3714_v6, 3 }
 0x347   : > { %v3291_v0 = vmax.f32 %v3255_v16, 0.0  ;;  %v4223_v20 = vpop.f32.mrf.mxu1  ;;  %v2563_v41 = vadd.f32 %v2516_v13, %v2178_v43  ;;  %v5205_v36 = vunpack.c.l.bf16 %v5254_v29 }
 0x348   : > { %v4069_v19 = vld [vmem:[#allocation1] sm:$0xff]  ;;  %v4224_v49 = vadd.f32 %v5201_v33, %v4223_v20  ;;  %v3172_v22 = vpop.f32.mrf.mxu0 }
 0x349   : > { %4070 = vst [vmem:[#allocation1] ss:$9 sm:$0xff] %v3707_v40  ;;  %v3327_v45 = vpack.c.bf16 %v3291_v0, %v3291_v0  ;;  %4257 = vmatmul.bf16.gmra.mxu1 %v4069_v19  ;;  %v2956_v37 = vadd.f32 %v2909_v12, %v2563_v41  ;;  %v6939_v19 = vld [vmem:[#allocation4_spill] sm:$0xff] }
 0x34a   : > { %4072 = vst [vmem:[#allocation1 + $0x1] ss:$9 sm:$0xff] %v3710_v21 }
 0x34b   : > { %4074 = vst [vmem:[#allocation1 + $0x2] ss:$9 sm:$0xff] %v3713_v10  ;;  %v3399_v1 = vrot.slane %v3327_v45, 3  ;;  %v3216_v28 = vadd.f32 %v3169_v24, %v2956_v37  ;;  %v2917_v55 = vpop.f32.mrf.mxu3 }
 0x34c   : > { %4076 = vst [vmem:[#allocation1 + $0x3] ss:$9 sm:$0xff] %v3716_v25 }
 0x34d   : > { %v3719_v46 = vsel %vm3407_vm6, %v3327_v45, %v3399_v1  ;;  %v3720_v31 = vsel %vm3411_vm7, %v3327_v45, %v3399_v1  ;;  %v3723_v9 = vsel %vm3415_vm8, %v3327_v45, %v3399_v1  ;;  %v3726_v27 = vsel %vm3419_vm9, %v3327_v45, %v3399_v1  ;;  %4291 = vst [vmem:[%s6714_s15 + $0x40] sm:$0xff] %v4224_v49 }
 0x34e   : > { %v3722_v63 = vrot.slane %v3720_v31, 1  ;;  %v3725_v35 = vrot.slane %v3723_v9, 2  ;;  %v3728_v48 = vrot.slane %v3726_v27, 3  ;;  %4077 = vst [vmem:[#allocation1 + $0x4] ss:$9 sm:$0xff] %v3719_v46  ;;  %v3256_v23 = vadd.f32 %v6702_v26, %v3216_v28  ;;  %v2519_v8 = vpop.f32.mrf.mxu2  ;;  %v6940_v28 = vld [vmem:[#allocation2_spill] sm:$0xff] }
 0x34f   : > { %v4225_v62 = vpop.f32.mrf.mxu1  ;;  %v2564_v17 = vadd.f32 %v2519_v8, %v6321_v30  ;;  %v5206_v45 = vunpack.c.h.bf16 %v5254_v29 }
 0x350   : > { %4079 = vst [vmem:[#allocation1 + $0x5] ss:$9 sm:$0xff] %v3722_v63  ;;  %v3292_v60 = vmax.f32 %v3256_v23, 0.0  ;;  %v4226_v38 = vadd.f32 %v5202_v18, %v4225_v62  ;;  %v3174_v32 = vpop.f32.mrf.mxu0  ;;  %v6941_v18 = vld [vmem:[#allocation6_spill] sm:$0xff]  ;;  %v5255_v62 = vld [vmem:[%s6692_s8 + $0x30] sm:$0xff]  }
 0x351   : > { %4081 = vst [vmem:[#allocation1 + $0x6] ss:$9 sm:$0xff] %v3725_v35  ;;  %v2957_v2 = vadd.f32 %v2912_v50, %v2564_v17  ;;  %v2182_v46 = vadd.f32 %v6941_v18, %v6940_v28 }
 0x352   : > { %4083 = vst [vmem:[#allocation1 + $0x7] ss:$9 sm:$0xff] %v3728_v48  ;;  %v3328_v5 = vpack.c.bf16 %v3292_v60, %v3292_v60 }
 0x353   : > { %4292 = vst [vmem:[%s6714_s15 + $0x48] sm:$0xff] %v4226_v38  ;;  %v3217_v7 = vadd.f32 %v3172_v22, %v2957_v2  ;;  %v2919_v9 = vpop.f32.mrf.mxu3 }
 0x354   : > { %v3400_v4 = vrot.slane %v3328_v5, 3 }
 0x355   : > { %v3257_v39 = vadd.f32 %v6702_v26, %v3217_v7  ;;  %v5209_v7 = vunpack.c.l.bf16 %v5255_v62 }
 0x356   : > { %v3731_v30 = vsel %vm3411_vm7, %v3328_v5, %v3400_v4  ;;  %v3734_v12 = vsel %vm3415_vm8, %v3328_v5, %v3400_v4  ;;  %v3737_v57 = vsel %vm3419_vm9, %v3328_v5, %v3400_v4  ;;  %v2521_v14 = vpop.f32.mrf.mxu2 }
 0x357   : > { %v3733_v3 = vrot.slane %v3731_v30, 1  ;;  %v3736_v51 = vrot.slane %v3734_v12, 2  ;;  %v3293_v52 = vmax.f32 %v3257_v39, 0.0  ;;  %v3739_v54 = vrot.slane %v3737_v57, 3 }
 0x358   : > { %v2565_v44 = vadd.f32 %v2521_v14, %v2180_v61  ;;  %v3177_v6 = vpop.f32.mrf.mxu0 }
 0x359   : > { %v4084_v59 = vld [vmem:[#allocation1] sm:$0xff]  ;;  %v3329_v24 = vpack.c.bf16 %v3293_v52, %v3293_v52 }
 0x35a   : > { %4086 = vst [vmem:[#allocation1] ss:$9 sm:$0xff] %v3733_v3  ;;  %v2958_v53 = vadd.f32 %v2914_v47, %v2565_v44  ;;  %4262 = vmatmul.bf16.gmra.mxu1 %v4084_v59  ;;  %v6942_v44 = vld [vmem:[#allocation7_spill] sm:$0xff] }
 0x35b   : > { %4088 = vst [vmem:[#allocation1 + $0x1] ss:$9 sm:$0xff] %v3736_v51  ;;  %v3401_v34 = vrot.slane %v3329_v24, 3  ;;  %v2922_v52 = vpop.f32.mrf.mxu3 }
 0x35c   : > { %4090 = vst [vmem:[#allocation1 + $0x2] ss:$9 sm:$0xff] %v3739_v54  ;;  %v3218_v11 = vadd.f32 %v3174_v32, %v2958_v53  ;;  %v4228_v16 = vpop.f32.mrf.mxu1 }
 0x35d   : > { %v3742_v33 = vsel %vm3407_vm6, %v3329_v24, %v3401_v34  ;;  %v3743_v43 = vsel %vm3411_vm7, %v3329_v24, %v3401_v34  ;;  %v3746_v58 = vsel %vm3415_vm8, %v3329_v24, %v3401_v34  ;;  %v3749_v15 = vsel %vm3419_vm9, %v3329_v24, %v3401_v34 }
 0x35e   : > { %v3745_v13 = vrot.slane %v3743_v43, 1  ;;  %v3748_v21 = vrot.slane %v3746_v58, 2  ;;  %v3751_v10 = vrot.slane %v3749_v15, 3  ;;  %4091 = vst [vmem:[#allocation1 + $0x3] ss:$9 sm:$0xff] %v3742_v33  ;;  %v3258_v0 = vadd.f32 %v6702_v26, %v3218_v11  ;;  %v2524_v20 = vpop.f32.mrf.mxu2  ;;  %v6943_v58 = vld [vmem:[#allocation5_spill] sm:$0xff] }
 0x35f   : > { %v4229_v50 = vadd.f32 %v5205_v36, %v4228_v16  ;;  %v2566_v40 = vadd.f32 %v2524_v20, %v6939_v19  ;;  %v5210_v16 = vunpack.c.h.bf16 %v5255_v62  ;;  %v2184_v15 = vadd.f32 %v6687_v42, %v6943_v58  ;;  %v5260_v58 = vld [vmem:[%s6692_s8 + $0x58] sm:$0xff]  }
 0x360   : > { %4093 = vst [vmem:[#allocation1 + $0x4] ss:$9 sm:$0xff] %v3745_v13  ;;  %v3294_v25 = vmax.f32 %v3258_v0, 0.0  ;;  %v3179_v23 = vpop.f32.mrf.mxu0 }
 0x361   : > { %4095 = vst [vmem:[#allocation1 + $0x5] ss:$9 sm:$0xff] %v3748_v21  ;;  %v2959_v41 = vadd.f32 %v2917_v55, %v2566_v40 }
 0x362   : > { %4097 = vst [vmem:[#allocation1 + $0x6] ss:$9 sm:$0xff] %v3751_v10  ;;  %v3330_v49 = vpack.c.bf16 %v3294_v25, %v3294_v25 }
 0x363   : > { %4293 = vst [vmem:[%s6714_s15 + $0x50] sm:$0xff] %v4229_v50  ;;  %v3219_v22 = vadd.f32 %v3177_v6, %v2959_v41  ;;  %v2924_v25 = vpop.f32.mrf.mxu3  ;;  %v5256_v41 = vld [vmem:[%s6692_s8 + $0x38] sm:$0xff]  }
 0x364   : > { %v3402_v37 = vrot.slane %v3330_v49, 3  ;;  %v4230_v1 = vpop.f32.mrf.mxu1 }
 0x365   : > { %v3259_v31 = vadd.f32 %v6702_v26, %v3219_v22  ;;  %v4231_v27 = vadd.f32 %v5206_v45, %v4230_v1  ;;  %v5213_v1 = vunpack.c.l.bf16 %v5256_v41 }
 0x366   : > { %v3754_v63 = vsel %vm3407_vm6, %v3330_v49, %v3402_v37  ;;  %v2526_v35 = vpop.f32.mrf.mxu2  ;;  %v3755_v38 = vsel %vm3415_vm8, %v3330_v49, %v3402_v37  ;;  %v3758_v2 = vsel %vm3419_vm9, %v3330_v49, %v3402_v37 }
 0x367   : > { %4098 = vst [vmem:[#allocation1 + $0x7] ss:$9 sm:$0xff] %v3754_v63  ;;  %v3295_v48 = vmax.f32 %v3259_v31, 0.0  ;;  %v2567_v8 = vadd.f32 %v2526_v35, %v2182_v46  ;;  %v3757_v32 = vrot.slane %v3755_v38, 2  ;;  %v3760_v56 = vrot.slane %v3758_v2, 3 }
 0x368   : > { %4294 = vst [vmem:[%s6714_s15 + $0x58] sm:$0xff] %v4231_v27  ;;  %v3182_v34 = vpop.f32.mrf.mxu0 }
 0x369   : > { %v3331_v17 = vpack.c.bf16 %v3295_v48, %v3295_v48  ;;  %v2960_v60 = vadd.f32 %v2919_v9, %v2567_v8 }
 0x36b   : > { %v3403_v47 = vrot.slane %v3331_v17, 3  ;;  %v3220_v5 = vadd.f32 %v3179_v23, %v2960_v60 }
 0x36d   : > { %v3764_v4 = vsel %vm3411_vm7, %v3331_v17, %v3403_v47  ;;  %v3767_v39 = vsel %vm3415_vm8, %v3331_v17, %v3403_v47  ;;  %v3770_v61 = vsel %vm3419_vm9, %v3331_v17, %v3403_v47  ;;  %v3260_v30 = vadd.f32 %v6702_v26, %v3220_v5 }
 0x36e   : > { %v4233_v12 = vpop.f32.mrf.mxu1  ;;  %v2529_v57 = vpop.f32.mrf.mxu2  ;;  %v4099_v14 = vld [vmem:[#allocation1] sm:$0xff]  ;;  %v3763_v3 = vsel %vm3407_vm6, %v3331_v17, %v3403_v47  ;;  %v3766_v51 = vrot.slane %v3764_v4, 1  ;;  %v3769_v59 = vrot.slane %v3767_v39, 2  ;;  %v3772_v53 = vrot.slane %v3770_v61, 3 }
 0x36f   : > { %v4234_v54 = vadd.f32 %v5209_v7, %v4233_v12  ;;  %v2568_v29 = vadd.f32 %v2529_v57, %v6942_v44  ;;  %4267 = vmatmul.bf16.gmra.mxu1 %v4099_v14  ;;  %4101 = vst [vmem:[#allocation1] ss:$9 sm:$0xff] %v3757_v32  ;;  %v3296_v24 = vmax.f32 %v3260_v30, 0.0 }
 0x370   : > { %4103 = vst [vmem:[#allocation1 + $0x1] ss:$9 sm:$0xff] %v3760_v56  ;;  %v3184_v22 = vpop.f32.mrf.mxu0  ;;  %v5257_v56 = vld [vmem:[%s6692_s8 + $0x40] sm:$0xff]  }
 0x371   : > { %4295 = vst [vmem:[%s6714_s15 + $0x60] sm:$0xff] %v4234_v54  ;;  %v2961_v55 = vadd.f32 %v2922_v52, %v2568_v29  ;;  %v3332_v36 = vpack.c.bf16 %v3296_v24, %v3296_v24  ;;  %v5217_v61 = vunpack.c.l.bf16 %v5257_v56  ;;  %v5218_v14 = vunpack.c.h.bf16 %v5257_v56  ;;  %v5258_v52 = vld [vmem:[%s6692_s8 + $0x48] sm:$0xff]  }
 0x372   : > { %4104 = vst [vmem:[#allocation1 + $0x2] ss:$9 sm:$0xff] %v3763_v3  ;;  %v5221_v54 = vunpack.c.l.bf16 %v5258_v52 }
 0x373   : > { %v3221_v11 = vadd.f32 %v3182_v34, %v2961_v55  ;;  %4106 = vst [vmem:[#allocation1 + $0x3] ss:$9 sm:$0xff] %v3766_v51  ;;  %v3404_v33 = vrot.slane %v3332_v36, 3  ;;  %v5259_v34 = vld [vmem:[%s6692_s8 + $0x50] sm:$0xff]  }
 0x374   : > { %4108 = vst [vmem:[#allocation1 + $0x4] ss:$9 sm:$0xff] %v3769_v59  ;;  %v5222_v59 = vunpack.c.h.bf16 %v5258_v52  ;;  %v5225_v55 = vunpack.c.l.bf16 %v5259_v34 }
 0x375   : > { %v3261_v43 = vadd.f32 %v6702_v26, %v3221_v11  ;;  %4110 = vst [vmem:[#allocation1 + $0x5] ss:$9 sm:$0xff] %v3772_v53  ;;  %v3775_v6 = vsel %vm3407_vm6, %v3332_v36, %v3404_v33  ;;  %v3776_v13 = vsel %vm3411_vm7, %v3332_v36, %v3404_v33  ;;  %v3779_v42 = vsel %vm3419_vm9, %v3332_v36, %v3404_v33 }
 0x376   : > { %v4235_v21 = vpop.f32.mrf.mxu1  ;;  %v2531_v10 = vpop.f32.mrf.mxu2  ;;  %v3778_v0 = vrot.slane %v3776_v13, 1  ;;  %4111 = vst [vmem:[#allocation1 + $0x6] ss:$9 sm:$0xff] %v3775_v6  ;;  %v3781_v31 = vrot.slane %v3779_v42, 3 }
 0x377   : > { %v3297_v20 = vmax.f32 %v3261_v43, 0.0  ;;  %v4236_v50 = vadd.f32 %v5210_v16, %v4235_v21  ;;  %v2569_v19 = vadd.f32 %v2531_v10, %v2184_v15  ;;  %v5226_v16 = vunpack.c.h.bf16 %v5259_v34 }
 0x378   : > { %4113 = vst [vmem:[#allocation1 + $0x7] ss:$9 sm:$0xff] %v3778_v0  ;;  %v5229_v15 = vunpack.c.l.bf16 %v5260_v58  ;;  %v5230_v21 = vunpack.c.h.bf16 %v5260_v58 }
 0x379   : > { %v3333_v40 = vpack.c.bf16 %v3297_v20, %v3297_v20  ;;  %4296 = vst [vmem:[%s6714_s15 + $0x68] sm:$0xff] %v4236_v50  ;;  %v2962_v45 = vadd.f32 %v2924_v25, %v2569_v19  ;;  %v5261_v20 = vld [vmem:[%s6692_s8 + $0x60] sm:$0xff]  }
 0x37a   : > { %v5233_v50 = vunpack.c.l.bf16 %v5261_v20  ;;  %v5234_v25 = vunpack.c.h.bf16 %v5261_v20 }
 0x37b   : > { %v3405_v49 = vrot.slane %v3333_v40, 3  ;;  %v3222_v37 = vadd.f32 %v3184_v22, %v2962_v45 }
 0x37d   : > { %v3785_v28 = vsel %vm3411_vm7, %v3333_v40, %v3405_v49  ;;  %v3788_v18 = vsel %vm3415_vm8, %v3333_v40, %v3405_v49  ;;  %v3262_v46 = vadd.f32 %v6702_v26, %v3222_v37  ;;  %v3791_v9 = vsel %vm3419_vm9, %v3333_v40, %v3405_v49 }
 0x37e   : > { %v4238_v27 = vpop.f32.mrf.mxu1  ;;  %v3787_v63 = vrot.slane %v3785_v28, 1  ;;  %v3790_v8 = vrot.slane %v3788_v18, 2  ;;  %v3784_v62 = vsel %vm3407_vm6, %v3333_v40, %v3405_v49  ;;  %v3793_v17 = vrot.slane %v3791_v9, 3  ;;  %v5262_v49 = vld [vmem:[%s6692_s8 + $0x68] sm:$0xff]  }
 0x37f   : > { %v3298_v35 = vmax.f32 %v3262_v46, 0.0  ;;  %v4239_v48 = vadd.f32 %v5213_v1, %v4238_v27  ;;  %v4114_v23 = vld [vmem:[#allocation1] sm:$0xff]  ;;  %v5214_v26 = vunpack.c.h.bf16 %v5256_v41  ;;  %v5237_v22 = vunpack.c.l.bf16 %v5262_v49  ;;  %v5263_v46 = vld [vmem:[%s6692_s8 + $0x70] sm:$0xff]  }
 0x380   : > { %4272 = vmatmul.bf16.gmra.mxu1 %v4114_v23  ;;  %4116 = vst [vmem:[#allocation1] ss:$9 sm:$0xff] %v3781_v31  ;;  %v5238_v1 = vunpack.c.h.bf16 %v5262_v49  ;;  %v5241_v31 = vunpack.c.l.bf16 %v5263_v46  ;;  %v5264_v23 = vld [vmem:[%s6692_s8 + $0x78] sm:$0xff]  }
 0x381   : > { %v3334_v60 = vpack.c.bf16 %v3298_v35, %v3298_v35  ;;  %4297 = vst [vmem:[%s6714_s15 + $0x70] sm:$0xff] %v4239_v48 }
 0x382   : > { %4117 = vst [vmem:[#allocation1 + $0x1] ss:$9 sm:$0xff] %v3784_v62 }
 0x383   : > { %v3406_v38 = vrot.slane %v3334_v60, 3  ;;  %4119 = vst [vmem:[#allocation1 + $0x2] ss:$9 sm:$0xff] %v3787_v63  ;;  %v5242_v63 = vunpack.c.h.bf16 %v5263_v46 }
 0x384   : > { %4121 = vst [vmem:[#allocation1 + $0x3] ss:$9 sm:$0xff] %v3790_v8  ;;  %v5245_v8 = vunpack.c.l.bf16 %v5264_v23 }
 0x385   : > { %v3796_v2 = vsel %vm3407_vm6, %v3334_v60, %v3406_v38  ;;  %v3797_v47 = vsel %vm3411_vm7, %v3334_v60, %v3406_v38  ;;  %v3800_v5 = vsel %vm3415_vm8, %v3334_v60, %v3406_v38  ;;  %4123 = vst [vmem:[#allocation1 + $0x4] ss:$9 sm:$0xff] %v3793_v17  ;;  %v5246_v60 = vunpack.c.h.bf16 %v5264_v23 }
 0x386   : > { %v3799_v7 = vrot.slane %v3797_v47, 1  ;;  %v3802_v32 = vrot.slane %v3800_v5, 2  ;;  %4124 = vst [vmem:[#allocation1 + $0x5] ss:$9 sm:$0xff] %v3796_v2  ;;  %v4240_v4 = vpop.f32.mrf.mxu1 }
 0x387   : > { %v4241_v39 = vadd.f32 %v5214_v26, %v4240_v4 }
 0x388   : > { %4126 = vst [vmem:[#allocation1 + $0x6] ss:$9 sm:$0xff] %v3799_v7 }
 0x389   : > { %4128 = vst [vmem:[#allocation1 + $0x7] ss:$9 sm:$0xff] %v3802_v32 }
 0x38a   : > { %4298 = vst [vmem:[%s6714_s15 + $0x78] sm:$0xff] %v4241_v39 }
 0x38f   : > { %v4243_v30 = vpop.f32.mrf.mxu1 }
 0x390   : > { %v4244_v12 = vadd.f32 %v5217_v61, %v4243_v30  ;;  %v4129_v57 = vld [vmem:[#allocation1] sm:$0xff] }
 0x391   : > { %4277 = vmatmul.bf16.gmra.mxu1 %v4129_v57 }
 0x392   : > { %4299 = vst [vmem:[%s6714_s15 + $0x80] sm:$0xff] %v4244_v12 }
 0x397   : > { %v4245_v3 = vpop.f32.mrf.mxu1 }
 0x398   : > { %v4246_v51 = vadd.f32 %v5218_v14, %v4245_v3 }
 0x39a   : > { %4300 = vst [vmem:[%s6714_s15 + $0x88] sm:$0xff] %v4246_v51 }
 0x3a3   : > { %v4248_v44 = vpop.f32.mrf.mxu1 }
 0x3a4   : > { %v4249_v29 = vadd.f32 %v5221_v54, %v4248_v44 }
 0x3a6   : > { %4301 = vst [vmem:[%s6714_s15 + $0x90] sm:$0xff] %v4249_v29 }
 0x3ab   : > { %v4250_v24 = vpop.f32.mrf.mxu1 }
 0x3ac   : > { %v4251_v53 = vadd.f32 %v5222_v59, %v4250_v24 }
 0x3ae   : > { %4302 = vst [vmem:[%s6714_s15 + $0x98] sm:$0xff] %v4251_v53 }
 0x3b5   : > { %v4253_v36 = vpop.f32.mrf.mxu1 }
 0x3b6   : > { %v4254_v11 = vadd.f32 %v5225_v55, %v4253_v36 }
 0x3b8   : > { %4303 = vst [vmem:[%s6714_s15 + $0xa0] sm:$0xff] %v4254_v11 }
 0x3bd   : > { %v4255_v33 = vpop.f32.mrf.mxu1 }
 0x3be   : > { %v4256_v43 = vadd.f32 %v5226_v16, %v4255_v33 }
 0x3c0   : > { %4304 = vst [vmem:[%s6714_s15 + $0xa8] sm:$0xff] %v4256_v43 }
 0x3c6   : > { %v4258_v6 = vpop.f32.mrf.mxu1 }
 0x3c7   : > { %v4259_v13 = vadd.f32 %v5229_v15, %v4258_v6 }
 0x3c9   : > { %4305 = vst [vmem:[%s6714_s15 + $0xb0] sm:$0xff] %v4259_v13 }
 0x3ce   : > { %v4260_v10 = vpop.f32.mrf.mxu1 }
 0x3cf   : > { %v4261_v0 = vadd.f32 %v5230_v21, %v4260_v10 }
 0x3d1   : > { %4306 = vst [vmem:[%s6714_s15 + $0xb8] sm:$0xff] %v4261_v0 }
 0x3d7   : > { %v4263_v19 = vpop.f32.mrf.mxu1 }
 0x3d8   : > { %v4264_v40 = vadd.f32 %v5233_v50, %v4263_v19 }
 0x3da   : > { %4307 = vst [vmem:[%s6714_s15 + $0xc0] sm:$0xff] %v4264_v40 }
 0x3df   : > { %v4265_v41 = vpop.f32.mrf.mxu1 }
 0x3e0   : > { %v4266_v45 = vadd.f32 %v5234_v25, %v4265_v41 }
 0x3e2   : > { %4308 = vst [vmem:[%s6714_s15 + $0xc8] sm:$0xff] %v4266_v45 }
 0x3ec   : > { %v4268_v42 = vpop.f32.mrf.mxu1 }
 0x3ed   : > { %v4269_v37 = vadd.f32 %v5237_v22, %v4268_v42 }
 0x3ef   : > { %4309 = vst [vmem:[%s6714_s15 + $0xd0] sm:$0xff] %v4269_v37 }
 0x3f4   : > { %v4270_v28 = vpop.f32.mrf.mxu1 }
 0x3f5   : > { %v4271_v18 = vadd.f32 %v5238_v1, %v4270_v28 }
 0x3f7   : > { %4310 = vst [vmem:[%s6714_s15 + $0xd8] sm:$0xff] %v4271_v18 }
 0x3fd   : > { %v4273_v9 = vpop.f32.mrf.mxu1 }
 0x3fe   : > { %v4274_v27 = vadd.f32 %v5241_v31, %v4273_v9 }
 0x400   : > { %4311 = vst [vmem:[%s6714_s15 + $0xe0] sm:$0xff] %v4274_v27 }
 0x405   : > { %v4275_v35 = vpop.f32.mrf.mxu1 }
 0x406   : > { %v4276_v48 = vadd.f32 %v5242_v63, %v4275_v35 }
 0x408   : > { %4312 = vst [vmem:[%s6714_s15 + $0xe8] sm:$0xff] %v4276_v48 }
 0x40e   : > { %v4278_v62 = vpop.f32.mrf.mxu1 }
 0x40f   : > { %v4279_v17 = vadd.f32 %v5245_v8, %v4278_v62 }
 0x411   : > { %4313 = vst [vmem:[%s6714_s15 + $0xf0] sm:$0xff] %v4279_v17 }
 0x416   : > { %v4280_v38 = vpop.f32.mrf.mxu1 }
 0x417   : > { %v4281_v26 = vadd.f32 %v5246_v60, %v4280_v38 }
 0x419   : > { %4314 = vst [vmem:[%s6714_s15 + $0xf8] sm:$0xff] %v4281_v26 }
 0x41a PF: > { %s15_s18 = sadd.s32 1, %s5307_s18  }
 0x41b   : > { %p12_p4 = scmp.ge.s32.totalorder %s15_s18, 4  }
 0x41d   :  { %14 = sbr.rel (!%p12_p4) target bundleno = 1 (0x1), region = 88 }

</bundles_post_ra>
